<compile_context>
chip_gen: v6e
topology: v6e:2x2x1
jax: 0.10.0
libtpu: 0.0.40
codegen_flags: <defaults>
</compile_context>

<pallas_src>
import numpy as np
import jax
import jax.numpy as jnp
from jax.experimental import pallas as pl
from jax.experimental.pallas import tpu as pltpu


def _round_up(x, m):
    return ((x + m - 1) // m) * m


# --------------------------------------------------------------------------- #
# Kernel: row-tiled matmul with K-reduction accumulator + L2-norm epilogue.
# --------------------------------------------------------------------------- #
def mlp_projector_kernel(x_ref, w_ref, o_ref, acc_ref):
    # x_ref  : (tile_m, tile_k)  rows of the flattened (N*C) batch, chunk of H*W
    # w_ref  : (tile_k, out_pad) fused (height-mean + width-pool + linear1 + linear2)
    # o_ref  : (tile_m, out_pad)
    # acc_ref: (tile_m, out_pad) f32 scratch, resident across the K grid axis
    k = pl.program_id(1)

    @pl.when(k == 0)
    def _init():
        acc_ref[...] = jnp.zeros_like(acc_ref)

    acc_ref[...] += jnp.dot(x_ref[...], w_ref[...],
                            preferred_element_type=jnp.float32)

    @pl.when(k == pl.num_programs(1) - 1)
    def _finalize():
        h = acc_ref[...]
        # Padded output lanes are exactly zero -> they do not affect the norm.
        # Tiny clamp only guards exact-zero rows (PyTorch would emit NaN there).
        sumsq = jnp.maximum(jnp.sum(h * h, axis=-1, keepdims=True), 1e-24)
        o_ref[...] = (h * jax.lax.rsqrt(sumsq)).astype(o_ref.dtype)


# --------------------------------------------------------------------------- #
# Wrapper-side weight folding (hoist / cache when the weights are static).
# --------------------------------------------------------------------------- #
def _width_pool_matrix(w, target=1024):
    # Exact AdaptiveAvgPool2d width windows: start=floor(j*W/t), end=ceil((j+1)*W/t).
    p = np.zeros((w, target), dtype=np.float32)
    for j in range(target):
        s = (j * w) // target
        e = -((-(j + 1) * w) // target)  # ceil division
        p[s:e, j] = 1.0 / (e - s)
    return p


def fold_projector_weights(w1_t, w2_t, *, H, W, x_dtype):
    """Fold pooling (height mean + width adaptive-avg) and both linears into a
    single (H*W, out_pad) weight.  Depends only on weights + static (H, W)."""
    in_dim, out_dim = w1_t.shape
    assert in_dim == 1024, "linear1 in_dim must equal the pooled width (1024)"
    assert w2_t.shape == (out_dim, out_dim)

    w_eff = jnp.dot(w1_t.astype(jnp.float32), w2_t.astype(jnp.float32))   # (1024, out)
    if W != 1024:
        w_eff = jnp.dot(jnp.asarray(_width_pool_matrix(W)), w_eff)        # (W, out)
    out_pad = _round_up(out_dim, 128)
    if out_pad != out_dim:
        w_eff = jnp.pad(w_eff, ((0, 0), (0, out_pad - out_dim)))
    # Height mean rides the MXU: repeat (w_eff / H) for each of the H rows.
    w_big = jnp.tile(w_eff * (1.0 / H), (H, 1))                           # (H*W, out_pad)
    w_dtype = jnp.bfloat16 if x_dtype == jnp.bfloat16 else jnp.float32
    return w_big.astype(w_dtype), out_dim


# --------------------------------------------------------------------------- #
# Generation-aware tile selection.
# --------------------------------------------------------------------------- #
def _vmem_limit_bytes():
    try:
        phys = int(pltpu.get_tpu_info().vmem_capacity_bytes)
    except Exception:
        phys = 64 * 1024 * 1024                      # conservative (v7x-sized) fallback
    return max(16 * 1024 * 1024, min(int(phys * 0.6), 96 * 1024 * 1024))


def _pick_tile_k(K, max_k):
    if K <= max_k:
        return K
    d = (max_k // 128) * 128
    while d >= 128:
        if K % d == 0:
            return d
        d -= 128
    # TODO(synk): K has no 128-aligned divisor under the VMEM budget; fall back to a
    # single (oversized) K block instead of risking ragged reads on the reduction axis.
    return K


def _select_tiles(M, K, out_pad, x_bytes, w_bytes, o_bytes, vmem_limit):
    budget = int(vmem_limit * 0.8)
    if M <= 8:
        tile_m = M
    else:
        # Keep >= 2 row blocks so the "parallel" axis can span both TensorCores (v7x).
        tile_m = min(512, _round_up((M + 1) // 2, 8))
    while True:
        fixed = tile_m * out_pad * (2 * o_bytes + 4)            # out (dbl-buf) + f32 acc
        per_k = 2 * tile_m * x_bytes + 2 * out_pad * w_bytes    # dbl-buffered x + w blocks
        max_k = (budget - fixed) // per_k
        if max_k >= min(K, 128) or tile_m <= 8:
            break
        tile_m = max(8, ((tile_m // 2) // 8) * 8)
    tile_k = _pick_tile_k(K, max(int(max_k), 128))
    return tile_m, tile_k


# --------------------------------------------------------------------------- #
# Pallas call wrapper.
# --------------------------------------------------------------------------- #
def mlp_projector_apply(x, w_big, out_dim):
    """x: (N, C, H, W);  w_big: (H*W, out_pad) pre-folded weight."""
    N, C, H, W = x.shape
    K, out_pad = w_big.shape
    assert K == H * W
    M = N * C
    x2d = x.reshape(M, K)                                   # free reshape, no extra HBM pass

    vmem_limit = _vmem_limit_bytes()
    tile_m, tile_k = _select_tiles(M, K, out_pad, x.dtype.itemsize,
                                   w_big.dtype.itemsize, x.dtype.itemsize,
                                   vmem_limit)
    n_m = pl.cdiv(M, tile_m)                                # ragged last row block: no x padding
    n_k = pl.cdiv(K, tile_k)                                # tile_k divides K (or equals it)

    out = pl.pallas_call(
        mlp_projector_kernel,
        out_shape=jax.ShapeDtypeStruct((M, out_pad), x.dtype),
        grid_spec=pltpu.PrefetchScalarGridSpec(
            num_scalar_prefetch=0,
            grid=(n_m, n_k),
            in_specs=[
                pl.BlockSpec((tile_m, tile_k), lambda i, k: (i, k)),
                pl.BlockSpec((tile_k, out_pad), lambda i, k: (k, 0)),
            ],
            out_specs=pl.BlockSpec((tile_m, out_pad), lambda i, k: (i, 0)),
            scratch_shapes=[pltpu.VMEM((tile_m, out_pad), jnp.float32)],
        ),
        compiler_params=pltpu.CompilerParams(
            dimension_semantics=("parallel", "arbitrary"),
            vmem_limit_bytes=vmem_limit),
    )(x2d, w_big)

    # Slice away lane padding; restore the (N, C, 1, out_dim) module output shape.
    return out[:, :out_dim].reshape(N, C, 1, out_dim)


def mlp_projector(x, w1_t, w2_t):
    """One-shot convenience.  For repeated inference, call fold_projector_weights
    once (static weights/shape) and reuse w_big with mlp_projector_apply."""
    N, C, H, W = x.shape
    w_big, out_dim = fold_projector_weights(w1_t, w2_t, H=H, W=W, x_dtype=x.dtype)
    return mlp_projector_apply(x, w_big, out_dim)


# --------------------------------------------------------------------------- #
# Self-test
# --------------------------------------------------------------------------- #
if __name__ == "__main__":
    key = jax.random.PRNGKey(0)
    k_x, k_w1, k_w2, k_x2, k_w1b, k_w2b = jax.random.split(key, 6)

    # ---- Test 1: W == 1024 (width pool = identity) -------------------------
    N, C, H, W = 2, 4, 8, 1024
    in_dim, out_dim = 1024, 32
    x = jax.random.normal(k_x, (N, C, H, W), dtype=jnp.float32)
    w1_t = jax.random.normal(k_w1, (in_dim, out_dim), dtype=jnp.float32) / (in_dim ** 0.5)
    w2_t = jax.random.normal(k_w2, (out_dim, out_dim), dtype=jnp.float32) / (out_dim ** 0.5)

    out = jax.block_until_ready(mlp_projector(x, w1_t, w2_t))
    assert out.shape == (N, C, 1, out_dim)

    x64 = np.asarray(x, np.float64)
    pooled = x64.mean(axis=2, keepdims=True)                 # width pooling is identity here
    y = pooled @ np.asarray(w1_t, np.float64) @ np.asarray(w2_t, np.float64)
    ref = y / np.linalg.norm(y, axis=-1, keepdims=True)
    assert np.allclose(np.asarray(out, np.float64), ref, atol=2e-4, rtol=2e-4)

    # ---- Test 2: ragged rows (M=15) and a real adaptive width pool (W=512) -
    N2, C2, H2, W2 = 3, 5, 4, 512
    out_dim2 = 48
    x2 = jax.random.normal(k_x2, (N2, C2, H2, W2), dtype=jnp.float32)
    w1b = jax.random.normal(k_w1b, (1024, out_dim2), dtype=jnp.float32) / (1024.0 ** 0.5)
    w2b = jax.random.normal(k_w2b, (out_dim2, out_dim2), dtype=jnp.float32) / (out_dim2 ** 0.5)

    out2 = jax.block_until_ready(mlp_projector(x2, w1b, w2b))
    assert out2.shape == (N2, C2, 1, out_dim2)

    p64 = np.asarray(_width_pool_matrix(W2), np.float64)
    pooled2 = np.asarray(x2, np.float64).mean(axis=2, keepdims=True) @ p64
    y2 = pooled2 @ np.asarray(w1b, np.float64) @ np.asarray(w2b, np.float64)
    ref2 = y2 / np.linalg.norm(y2, axis=-1, keepdims=True)
    assert np.allclose(np.asarray(out2, np.float64), ref2, atol=2e-4, rtol=2e-4)

    print("KERNEL_OK")
</pallas_src>

<mosaic_0001>
module attributes {stable_mosaic.version = 11 : i64} {
  func.func @mlp_projector_kernel(%arg0: i32, %arg1: i32, %arg2: memref<8x8192xf32, #tpu.memory_space<vmem>>, %arg3: memref<8192x128xf32, #tpu.memory_space<vmem>>, %arg4: memref<8x128xf32, #tpu.memory_space<vmem>>, %arg5: memref<8x128xf32, #tpu.memory_space<vmem>>) attributes {dimension_semantics = [#tpu.dimension_semantics<parallel>, #tpu.dimension_semantics<arbitrary>], iteration_bounds = array<i64: 1, 1>, scalar_prefetch = 0 : i64, scratch_operands = 1 : i64, tpu.core_type = #tpu.core_type<tc>, window_params = [{transform_indices = @transform_0, window_bounds = array<i64: 8, 8192>}, {transform_indices = @transform_1, window_bounds = array<i64: 8192, 128>}, {transform_indices = @transform_2, window_bounds = array<i64: 8, 128>}]} {
    %c0_i32 = arith.constant 0 : i32
    %0 = arith.cmpi eq, %arg1, %c0_i32 : i32
    %1 = arith.extui %0 : i1 to i32
    %c0_i32_0 = arith.constant 0 : i32
    %2 = arith.cmpi ne, %1, %c0_i32_0 : i32
    scf.if %2 {
      %cst_10 = arith.constant 0.000000e+00 : f32
      %12 = vector.broadcast %cst_10 : f32 to vector<8x128xf32>
      %c0_11 = arith.constant 0 : index
      %c0_12 = arith.constant 0 : index
      %13 = vector.load %arg5[%c0_11, %c0_12] : memref<8x128xf32, #tpu.memory_space<vmem>>, vector<8x128xf32>
      tpu.vector_store %arg5[%c0_11, %c0_12], %12 {strides = array<i32>} : memref<8x128xf32, #tpu.memory_space<vmem>>, vector<8x128xf32>,
    } else {
    }
    %c0 = arith.constant 0 : index
    %c0_1 = arith.constant 0 : index
    %3 = vector.load %arg5[%c0, %c0_1] : memref<8x128xf32, #tpu.memory_space<vmem>>, vector<8x128xf32>
    %c0_2 = arith.constant 0 : index
    %c0_3 = arith.constant 0 : index
    %4 = vector.load %arg2[%c0_2, %c0_3] : memref<8x8192xf32, #tpu.memory_space<vmem>>, vector<8x8192xf32>
    %c0_4 = arith.constant 0 : index
    %c0_5 = arith.constant 0 : index
    %5 = vector.load %arg3[%c0_4, %c0_5] : memref<8192x128xf32, #tpu.memory_space<vmem>>, vector<8192x128xf32>
    %cst = arith.constant dense<0.000000e+00> : vector<8x128xf32>
    %6 = tpu.matmul %4, %5, %cst {dimension_numbers = #tpu.dot_dimension_numbers<[1], [0], [0], [1], [0, 0, 1, 1], [], []>} : vector<8x8192xf32>, vector<8192x128xf32>, vector<8x128xf32> -> vector<8x128xf32>
    %7 = arith.addf %3, %6 : vector<8x128xf32>
    %c0_6 = arith.constant 0 : index
    %c0_7 = arith.constant 0 : index
    %8 = vector.load %arg5[%c0_6, %c0_7] : memref<8x128xf32, #tpu.memory_space<vmem>>, vector<8x128xf32>
    tpu.vector_store %arg5[%c0_6, %c0_7], %7 {strides = array<i32>} : memref<8x128xf32, #tpu.memory_space<vmem>>, vector<8x128xf32>,
    %c0_i32_8 = arith.constant 0 : i32
    %9 = arith.cmpi eq, %arg1, %c0_i32_8 : i32
    %10 = arith.extui %9 : i1 to i32
    %c0_i32_9 = arith.constant 0 : i32
    %11 = arith.cmpi ne, %10, %c0_i32_9 : i32
    scf.if %11 {
      %c0_10 = arith.constant 0 : index
      %c0_11 = arith.constant 0 : index
      %12 = vector.load %arg5[%c0_10, %c0_11] : memref<8x128xf32, #tpu.memory_space<vmem>>, vector<8x128xf32>
      %13 = arith.mulf %12, %12 : vector<8x128xf32>
      %cst_12 = arith.constant dense<0.000000e+00> : vector<8xf32>
      %14 = vector.multi_reduction <add>, %13, %cst_12 [1] : vector<8x128xf32> to vector<8xf32>
      %15 = vector.shape_cast %14 : vector<8xf32> to vector<8x1xf32>
      %cst_13 = arith.constant 1.000000e-24 : f32
      %16 = vector.broadcast %cst_13 : f32 to vector<8x1xf32>
      %17 = arith.maximumf %15, %16 : vector<8x1xf32>
      %18 = math.rsqrt %17 : vector<8x1xf32>
      %19 = vector.broadcast %18 : vector<8x1xf32> to vector<8x128xf32>
      %20 = arith.mulf %12, %19 : vector<8x128xf32>
      %c0_14 = arith.constant 0 : index
      %c0_15 = arith.constant 0 : index
      %21 = vector.load %arg4[%c0_14, %c0_15] : memref<8x128xf32, #tpu.memory_space<vmem>>, vector<8x128xf32>
      tpu.vector_store %arg4[%c0_14, %c0_15], %20 {strides = array<i32>} : memref<8x128xf32, #tpu.memory_space<vmem>>, vector<8x128xf32>,
    } else {
    }
    return
  }
  func.func @transform_0(%arg0: i32, %arg1: i32) -> (i32, i32) {
    %c0_i32 = arith.constant 0 : i32
    return %arg0, %arg1 : i32, i32
  }
  func.func @transform_1(%arg0: i32, %arg1: i32) -> (i32, i32) {
    %c0_i32 = arith.constant 0 : i32
    %c0_i32_0 = arith.constant 0 : i32
    return %arg1, %c0_i32 : i32, i32
  }
  func.func @transform_2(%arg0: i32, %arg1: i32) -> (i32, i32) {
    %c0_i32 = arith.constant 0 : i32
    %c0_i32_0 = arith.constant 0 : i32
    return %arg0, %c0_i32 : i32, i32
  }
}

</mosaic_0001>

<bundles_post_ra>
// kernel: tpu_custom_call.1
= control target key start
LH: loop header
LB: loop body
LE: loop exit
PB: predicated region body
PF: predicated region fallthrough
CT: control target
= control target key end

     0   :  { %7 = vsyncpa [#allocation4], 0  ;;  %s4623_s0 = inlined_call_operand.hbm [shape: f32[8,8192], index: 0, kind: input, shape index: {}]   ;;  %s4624_s1 = inlined_call_operand.hbm [shape: f32[8192,128], index: 1, kind: input, shape index: {}]   ;;  %s4625_s2 = inlined_call_operand.hbm [shape: f32[8,128], index: 2, kind: output, shape index: {}]  }
   0x1   :  { %8 = vsyncpa [#allocation7], 0 }
   0x2   :  { %9 = vsyncpa [#allocation5], 0  ;;  %s4594_s9 = smov [#allocation3]   ;;  %s4595_s11 = smov [#allocation6]  }
   0x3   :  { %s16_s10 = sshll.u32 %s4594_s9, 4  ;;  %s25_s12 = sshll.u32 %s4595_s11, 4  ;;  %s17_s10 = int_to_ptr.vmem [resolvable:$true] %s16_s10  ;;  %s26_s12 = int_to_ptr.vmem [resolvable:$true] %s25_s12 }
   0x4   :  { %s4536_s13 = scalar_lea.vmem %s17_s10, 8192  ;;  %p4541_p1 = scmp.lt.s32.totalorder %s17_s10, %s17_s10 }
   0x5   :  { %p4537_p0 = scmp.ne.s32.totalorder %s17_s10, %s4536_s13  ;;  %p4542_p2 = scmp.lt.s32.totalorder %s4536_s13, %s4536_s13 }
   0x7   :  { %p4543_p3 = por %p4542_p2, %p4541_p1 }
   0x9   :  { %p4544_p4 = pnand %p4543_p3, %p4537_p0 }
   0xb   :  { %4547 = shalt.err (!%p4544_p4)
}
   0xc   :  { %19 = dma.hbm_to_vmem [thread:$0]  %s4623_s0, 8192, %s17_s10, [#allocation4]  }
   0xd   :  { %s4556_s16 = scalar_lea.vmem %s26_s12, 131072  ;;  %p4561_p6 = scmp.lt.s32.totalorder %s26_s12, %s26_s12 }
   0xe   :  { %p4557_p5 = scmp.ne.s32.totalorder %s26_s12, %s4556_s16  ;;  %p4562_p7 = scmp.lt.s32.totalorder %s4556_s16, %s4556_s16 }
  0x10   :  { %p4563_p8 = por %p4562_p7, %p4561_p6 }
  0x12   :  { %p4564_p9 = pnand %p4563_p8, %p4557_p5 }
  0x14   :  { %4567 = shalt.err (!%p4564_p9)
}
  0x15   :  { %s4596_s17 = smov 128   ;;  %s4597_s18 = smov 8  }
  0x16   :  { %31 = dma.hbm_to_vmem [thread:$0]  %s4624_s1, 131072, %s26_s12, [#allocation7], %s4596_s17, %s4596_s17, %s4597_s18  }
  0x17   :  { %4588 = dma.done.wait [#allocation4], 8192  }
  0x18   :  { %4589 = vsyncadd [#allocation4], 4294959104 }
  0x19   :  { %4590 = dma.done.wait [#allocation7], 131072  }
  0x1a   :  { %4591 = vsyncadd [#allocation7], 4294836224  ;;  %v139_v0 = vld [vmem:[#allocation6 + $0xf8] sm:$0xff]  ;;  %v138_v4 = vld [vmem:[#allocation6 + $0xf0] sm:$0xff]  ;;  %s4598_s0 = smov [#allocation8]  }
  0x1b   :  { %v171_v1 = vld [vmem:[#allocation6 + $0x1f8] sm:$0xff]  ;;  %3401 = vmatprep.subr.mxu0 %v139_v0  ;;  %v170_v5 = vld [vmem:[#allocation6 + $0x1f0] sm:$0xff]  ;;  %v137_v8 = vld [vmem:[#allocation6 + $0xe8] sm:$0xff]  ;;  %s3391_s1 = sshll.u32 %s4598_s0, 4  ;;  %s3392_s1 = int_to_ptr.vmem [resolvable:$true] %s3391_s1 }
  0x1c   :  { %v123_v2 = vld [vmem:[#allocation6 + $0x78] sm:$0xff]  ;;  %3436 = vmatprep.subr.mxu1 %v171_v1  ;;  %v122_v6 = vld [vmem:[#allocation6 + $0x70] sm:$0xff]  ;;  %v169_v9 = vld [vmem:[#allocation6 + $0x1e8] sm:$0xff]  ;;  %s4568_s21 = scalar_lea.vmem %s3392_s1, 128  ;;  %p4573_p11 = scmp.lt.s32.totalorder %s3392_s1, %s3392_s1 }
  0x1d   :  { %v155_v3 = vld [vmem:[#allocation6 + $0x178] sm:$0xff]  ;;  %3402 = vmatpush3.msra.mxu0 %v123_v2  ;;  %v154_v7 = vld [vmem:[#allocation6 + $0x170] sm:$0xff]  ;;  %v121_v10 = vld [vmem:[#allocation6 + $0x68] sm:$0xff]  ;;  %p4569_p10 = scmp.ne.s32.totalorder %s3392_s1, %s4568_s21  ;;  %p4574_p12 = scmp.lt.s32.totalorder %s4568_s21, %s4568_s21 }
  0x1e   :  { %3437 = vmatpush3.msra.mxu1 %v155_v3  ;;  %3403 = vmatprep.subr.mxu0 %v138_v4  ;;  %v153_v11 = vld [vmem:[#allocation6 + $0x168] sm:$0xff]  ;;  %v136_v12 = vld [vmem:[#allocation6 + $0xe0] sm:$0xff]  ;;  %v135_v16 = vld [vmem:[#allocation6 + $0xd8] sm:$0xff] }
  0x1f   :  { %3438 = vmatprep.subr.mxu1 %v170_v5  ;;  %3404 = vmatpush3.msra.mxu0 %v122_v6  ;;  %v168_v13 = vld [vmem:[#allocation6 + $0x1e0] sm:$0xff]  ;;  %v167_v17 = vld [vmem:[#allocation6 + $0x1d8] sm:$0xff]  ;;  %v134_v20 = vld [vmem:[#allocation6 + $0xd0] sm:$0xff]  ;;  %p4575_p13 = por %p4574_p12, %p4573_p11 }
  0x20   :  { %3439 = vmatpush3.msra.mxu1 %v154_v7  ;;  %3405 = vmatprep.subr.mxu0 %v137_v8  ;;  %v120_v14 = vld [vmem:[#allocation6 + $0x60] sm:$0xff]  ;;  %v119_v18 = vld [vmem:[#allocation6 + $0x58] sm:$0xff]  ;;  %v166_v21 = vld [vmem:[#allocation6 + $0x1d0] sm:$0xff] }
  0x21   :  { %3440 = vmatprep.subr.mxu1 %v169_v9  ;;  %v152_v15 = vld [vmem:[#allocation6 + $0x160] sm:$0xff]  ;;  %3406 = vmatpush3.msra.mxu0 %v121_v10  ;;  %v151_v19 = vld [vmem:[#allocation6 + $0x158] sm:$0xff]  ;;  %v118_v22 = vld [vmem:[#allocation6 + $0x50] sm:$0xff]  ;;  %p4576_p0 = pnand %p4575_p13, %p4569_p10 }
  0x22   :  { %3441 = vmatpush3.msra.mxu1 %v153_v11  ;;  %3407 = vmatprep.subr.mxu0 %v136_v12  ;;  %v150_v23 = vld [vmem:[#allocation6 + $0x150] sm:$0xff]  ;;  %v133_v24 = vld [vmem:[#allocation6 + $0xc8] sm:$0xff]  ;;  %v132_v28 = vld [vmem:[#allocation6 + $0xc0] sm:$0xff] }
  0x23   :  { %3442 = vmatprep.subr.mxu1 %v168_v13  ;;  %3408 = vmatpush3.msra.mxu0 %v120_v14  ;;  %v165_v25 = vld [vmem:[#allocation6 + $0x1c8] sm:$0xff]  ;;  %v164_v29 = vld [vmem:[#allocation6 + $0x1c0] sm:$0xff]  ;;  %v131_v32 = vld [vmem:[#allocation6 + $0xb8] sm:$0xff] }
  0x24   :  { %3443 = vmatpush3.msra.mxu1 %v152_v15  ;;  %3409 = vmatprep.subr.mxu0 %v135_v16  ;;  %v117_v26 = vld [vmem:[#allocation6 + $0x48] sm:$0xff]  ;;  %v116_v30 = vld [vmem:[#allocation6 + $0x40] sm:$0xff]  ;;  %v163_v33 = vld [vmem:[#allocation6 + $0x1b8] sm:$0xff] }
  0x25   :  { %3444 = vmatprep.subr.mxu1 %v167_v17  ;;  %3410 = vmatpush3.msra.mxu0 %v119_v18  ;;  %v149_v27 = vld [vmem:[#allocation6 + $0x148] sm:$0xff]  ;;  %v148_v31 = vld [vmem:[#allocation6 + $0x140] sm:$0xff]  ;;  %v115_v34 = vld [vmem:[#allocation6 + $0x38] sm:$0xff] }
  0x26   :  { %3445 = vmatpush3.msra.mxu1 %v151_v19  ;;  %3411 = vmatprep.subr.mxu0 %v134_v20  ;;  %v147_v35 = vld [vmem:[#allocation6 + $0x138] sm:$0xff]  ;;  %v130_v36 = vld [vmem:[#allocation6 + $0xb0] sm:$0xff]  ;;  %v129_v40 = vld [vmem:[#allocation6 + $0xa8] sm:$0xff] }
  0x27   :  { %3446 = vmatprep.subr.mxu1 %v166_v21  ;;  %3412 = vmatpush3.msra.mxu0 %v118_v22  ;;  %v162_v37 = vld [vmem:[#allocation6 + $0x1b0] sm:$0xff]  ;;  %v161_v41 = vld [vmem:[#allocation6 + $0x1a8] sm:$0xff]  ;;  %v128_v44 = vld [vmem:[#allocation6 + $0xa0] sm:$0xff] }
  0x28   :  { %3447 = vmatpush3.msra.mxu1 %v150_v23  ;;  %3413 = vmatprep.subr.mxu0 %v133_v24  ;;  %v114_v38 = vld [vmem:[#allocation6 + $0x30] sm:$0xff]  ;;  %v113_v42 = vld [vmem:[#allocation6 + $0x28] sm:$0xff]  ;;  %v160_v45 = vld [vmem:[#allocation6 + $0x1a0] sm:$0xff] }
  0x29   :  { %3448 = vmatprep.subr.mxu1 %v165_v25  ;;  %3414 = vmatpush3.msra.mxu0 %v117_v26  ;;  %v146_v39 = vld [vmem:[#allocation6 + $0x130] sm:$0xff]  ;;  %v145_v43 = vld [vmem:[#allocation6 + $0x128] sm:$0xff]  ;;  %v112_v46 = vld [vmem:[#allocation6 + $0x20] sm:$0xff] }
  0x2a   :  { %3449 = vmatpush3.msra.mxu1 %v149_v27  ;;  %3415 = vmatprep.subr.mxu0 %v132_v28  ;;  %v144_v47 = vld [vmem:[#allocation6 + $0x120] sm:$0xff]  ;;  %v127_v48 = vld [vmem:[#allocation6 + $0x98] sm:$0xff]  ;;  %v126_v52 = vld [vmem:[#allocation6 + $0x90] sm:$0xff] }
  0x2b   :  { %3450 = vmatprep.subr.mxu1 %v164_v29  ;;  %3416 = vmatpush3.msra.mxu0 %v116_v30  ;;  %v159_v49 = vld [vmem:[#allocation6 + $0x198] sm:$0xff]  ;;  %v158_v53 = vld [vmem:[#allocation6 + $0x190] sm:$0xff]  ;;  %v125_v56 = vld [vmem:[#allocation6 + $0x88] sm:$0xff] }
  0x2c   :  { %3451 = vmatpush3.msra.mxu1 %v148_v31  ;;  %3417 = vmatprep.subr.mxu0 %v131_v32  ;;  %v111_v50 = vld [vmem:[#allocation6 + $0x18] sm:$0xff]  ;;  %v110_v54 = vld [vmem:[#allocation6 + $0x10] sm:$0xff]  ;;  %v157_v57 = vld [vmem:[#allocation6 + $0x188] sm:$0xff] }
  0x2d   :  { %3452 = vmatprep.subr.mxu1 %v163_v33  ;;  %3418 = vmatpush3.msra.mxu0 %v115_v34  ;;  %v143_v51 = vld [vmem:[#allocation6 + $0x118] sm:$0xff]  ;;  %v142_v55 = vld [vmem:[#allocation6 + $0x110] sm:$0xff]  ;;  %v109_v58 = vld [vmem:[#allocation6 + $0x8] sm:$0xff] }
  0x2e   :  { %3453 = vmatpush3.msra.mxu1 %v147_v35  ;;  %3419 = vmatprep.subr.mxu0 %v130_v36  ;;  %v141_v59 = vld [vmem:[#allocation6 + $0x108] sm:$0xff]  ;;  %v124_v60 = vld [vmem:[#allocation6 + $0x80] sm:$0xff]  ;;  %v47_v1 = vld [vmem:[#allocation3 + $0x18] sm:$0xff] }
  0x2f   :  { %3454 = vmatprep.subr.mxu1 %v162_v37  ;;  %3420 = vmatpush3.msra.mxu0 %v114_v38  ;;  %v156_v61 = vld [vmem:[#allocation6 + $0x180] sm:$0xff]  ;;  %v45_v63 = vld [vmem:[#allocation3 + $0x8] sm:$0xff]  ;;  %v46_v3 = vld [vmem:[#allocation3 + $0x10] sm:$0xff] }
  0x30   :  { %3455 = vmatpush3.msra.mxu1 %v146_v39  ;;  %3421 = vmatprep.subr.mxu0 %v129_v40  ;;  %v108_v62 = vld [vmem:[#allocation6] sm:$0xff]  ;;  %v203_v4 = vld [vmem:[#allocation6 + $0x2f8] sm:$0xff]  ;;  %v202_v8 = vld [vmem:[#allocation6 + $0x2f0] sm:$0xff] }
  0x31   :  { %3456 = vmatprep.subr.mxu1 %v161_v41  ;;  %3422 = vmatpush3.msra.mxu0 %v113_v42  ;;  %v140_v0 = vld [vmem:[#allocation6 + $0x100] sm:$0xff]  ;;  %v235_v5 = vld [vmem:[#allocation6 + $0x3f8] sm:$0xff]  ;;  %v234_v9 = vld [vmem:[#allocation6 + $0x3f0] sm:$0xff] }
  0x32   :  { %3457 = vmatpush3.msra.mxu1 %v145_v43  ;;  %3423 = vmatprep.subr.mxu0 %v128_v44  ;;  %v44_v2 = vld [vmem:[#allocation3] sm:$0xff]  ;;  %v187_v6 = vld [vmem:[#allocation6 + $0x278] sm:$0xff]  ;;  %v186_v10 = vld [vmem:[#allocation6 + $0x270] sm:$0xff] }
  0x33   :  { %3458 = vmatprep.subr.mxu1 %v160_v45  ;;  %3424 = vmatpush3.msra.mxu0 %v112_v46  ;;  %v219_v7 = vld [vmem:[#allocation6 + $0x378] sm:$0xff]  ;;  %v218_v11 = vld [vmem:[#allocation6 + $0x370] sm:$0xff]  ;;  %v201_v12 = vld [vmem:[#allocation6 + $0x2e8] sm:$0xff] }
  0x34   :  { %3459 = vmatpush3.msra.mxu1 %v144_v47  ;;  %3425 = vmatprep.subr.mxu0 %v127_v48  ;;  %v233_v13 = vld [vmem:[#allocation6 + $0x3e8] sm:$0xff]  ;;  %v200_v16 = vld [vmem:[#allocation6 + $0x2e0] sm:$0xff]  ;;  %v199_v20 = vld [vmem:[#allocation6 + $0x2d8] sm:$0xff] }
  0x35   :  { %3460 = vmatprep.subr.mxu1 %v159_v49  ;;  %3426 = vmatpush3.msra.mxu0 %v111_v50  ;;  %v185_v14 = vld [vmem:[#allocation6 + $0x268] sm:$0xff]  ;;  %v232_v17 = vld [vmem:[#allocation6 + $0x3e0] sm:$0xff]  ;;  %v231_v21 = vld [vmem:[#allocation6 + $0x3d8] sm:$0xff] }
  0x36   :  { %3461 = vmatpush3.msra.mxu1 %v143_v51  ;;  %3427 = vmatprep.subr.mxu0 %v126_v52  ;;  %v217_v15 = vld [vmem:[#allocation6 + $0x368] sm:$0xff]  ;;  %v184_v18 = vld [vmem:[#allocation6 + $0x260] sm:$0xff]  ;;  %v183_v22 = vld [vmem:[#allocation6 + $0x258] sm:$0xff] }
  0x37   :  { %3462 = vmatprep.subr.mxu1 %v158_v53  ;;  %3428 = vmatpush3.msra.mxu0 %v110_v54  ;;  %v216_v19 = vld [vmem:[#allocation6 + $0x360] sm:$0xff]  ;;  %v215_v23 = vld [vmem:[#allocation6 + $0x358] sm:$0xff]  ;;  %v198_v24 = vld [vmem:[#allocation6 + $0x2d0] sm:$0xff] }
  0x38   :  { %3463 = vmatpush3.msra.mxu1 %v142_v55  ;;  %3429 = vmatprep.subr.mxu0 %v125_v56  ;;  %v230_v25 = vld [vmem:[#allocation6 + $0x3d0] sm:$0xff]  ;;  %v197_v28 = vld [vmem:[#allocation6 + $0x2c8] sm:$0xff]  ;;  %v196_v32 = vld [vmem:[#allocation6 + $0x2c0] sm:$0xff] }
  0x39   :  { %3464 = vmatprep.subr.mxu1 %v157_v57  ;;  %3430 = vmatpush3.msra.mxu0 %v109_v58  ;;  %v182_v26 = vld [vmem:[#allocation6 + $0x250] sm:$0xff]  ;;  %v229_v29 = vld [vmem:[#allocation6 + $0x3c8] sm:$0xff]  ;;  %v228_v33 = vld [vmem:[#allocation6 + $0x3c0] sm:$0xff] }
  0x3a   :  { %3465 = vmatpush3.msra.mxu1 %v141_v59  ;;  %3431 = vmatprep.subr.mxu0 %v124_v60  ;;  %v214_v27 = vld [vmem:[#allocation6 + $0x350] sm:$0xff]  ;;  %v181_v30 = vld [vmem:[#allocation6 + $0x248] sm:$0xff]  ;;  %v180_v34 = vld [vmem:[#allocation6 + $0x240] sm:$0xff] }
  0x3b   :  { %3466 = vmatprep.subr.mxu1 %v156_v61  ;;  %3432 = vmatpush3.msra.mxu0 %v108_v62  ;;  %v213_v31 = vld [vmem:[#allocation6 + $0x348] sm:$0xff]  ;;  %v212_v35 = vld [vmem:[#allocation6 + $0x340] sm:$0xff]  ;;  %v195_v36 = vld [vmem:[#allocation6 + $0x2b8] sm:$0xff] }
  0x3c   :  { %1196 = vmatprep.mubr.f32.mxu0 %v45_v63  ;;  %3467 = vmatpush3.msra.mxu1 %v140_v0  ;;  %v227_v37 = vld [vmem:[#allocation6 + $0x3b8] sm:$0xff]  ;;  %v194_v40 = vld [vmem:[#allocation6 + $0x2b0] sm:$0xff]  ;;  %v193_v44 = vld [vmem:[#allocation6 + $0x2a8] sm:$0xff] }
  0x3d   :  { %1266 = vmatprep.mubr.f32.mxu1 %v47_v1  ;;  %1197 = vmatmul.mubr.f32.vlgmr.msra.gmra.mxu0 %v44_v2  ;;  %v179_v38 = vld [vmem:[#allocation6 + $0x238] sm:$0xff]  ;;  %v226_v41 = vld [vmem:[#allocation6 + $0x3b0] sm:$0xff]  ;;  %v225_v45 = vld [vmem:[#allocation6 + $0x3a8] sm:$0xff] }
  0x3e   :  { %1267 = vmatmul.mubr.f32.vlgmr.msra.gmra.mxu1 %v46_v3  ;;  %3471 = vmatprep.subr.mxu0 %v203_v4  ;;  %v211_v39 = vld [vmem:[#allocation6 + $0x338] sm:$0xff]  ;;  %v178_v42 = vld [vmem:[#allocation6 + $0x230] sm:$0xff]  ;;  %v177_v46 = vld [vmem:[#allocation6 + $0x228] sm:$0xff] }
  0x3f   :  { %3506 = vmatprep.subr.mxu1 %v235_v5  ;;  %3472 = vmatpush3.msra.mxu0 %v187_v6  ;;  %v210_v43 = vld [vmem:[#allocation6 + $0x330] sm:$0xff]  ;;  %v209_v47 = vld [vmem:[#allocation6 + $0x328] sm:$0xff]  ;;  %v192_v48 = vld [vmem:[#allocation6 + $0x2a0] sm:$0xff] }
  0x40   :  { %3507 = vmatpush3.msra.mxu1 %v219_v7  ;;  %3473 = vmatprep.subr.mxu0 %v202_v8  ;;  %v224_v49 = vld [vmem:[#allocation6 + $0x3a0] sm:$0xff]  ;;  %v191_v52 = vld [vmem:[#allocation6 + $0x298] sm:$0xff]  ;;  %v190_v56 = vld [vmem:[#allocation6 + $0x290] sm:$0xff] }
  0x41   :  { %3508 = vmatprep.subr.mxu1 %v234_v9  ;;  %3474 = vmatpush3.msra.mxu0 %v186_v10  ;;  %v176_v50 = vld [vmem:[#allocation6 + $0x220] sm:$0xff]  ;;  %v223_v53 = vld [vmem:[#allocation6 + $0x398] sm:$0xff]  ;;  %v222_v57 = vld [vmem:[#allocation6 + $0x390] sm:$0xff] }
  0x42   :  { %3509 = vmatpush3.msra.mxu1 %v218_v11  ;;  %3475 = vmatprep.subr.mxu0 %v201_v12  ;;  %v208_v51 = vld [vmem:[#allocation6 + $0x320] sm:$0xff]  ;;  %v175_v54 = vld [vmem:[#allocation6 + $0x218] sm:$0xff]  ;;  %v174_v58 = vld [vmem:[#allocation6 + $0x210] sm:$0xff] }
  0x43   :  { %3510 = vmatprep.subr.mxu1 %v233_v13  ;;  %3476 = vmatpush3.msra.mxu0 %v185_v14  ;;  %v207_v55 = vld [vmem:[#allocation6 + $0x318] sm:$0xff]  ;;  %v206_v59 = vld [vmem:[#allocation6 + $0x310] sm:$0xff]  ;;  %v189_v60 = vld [vmem:[#allocation6 + $0x288] sm:$0xff] }
  0x44   :  { %3511 = vmatpush3.msra.mxu1 %v217_v15  ;;  %3477 = vmatprep.subr.mxu0 %v200_v16  ;;  %v221_v61 = vld [vmem:[#allocation6 + $0x388] sm:$0xff]  ;;  %v188_v0 = vld [vmem:[#allocation6 + $0x280] sm:$0xff]  ;;  %v51_v6 = vld [vmem:[#allocation3 + $0x38] sm:$0xff] }
  0x45   :  { %3512 = vmatprep.subr.mxu1 %v232_v17  ;;  %3478 = vmatpush3.msra.mxu0 %v184_v18  ;;  %v173_v62 = vld [vmem:[#allocation6 + $0x208] sm:$0xff]  ;;  %v220_v1 = vld [vmem:[#allocation6 + $0x380] sm:$0xff]  ;;  %v267_v7 = vld [vmem:[#allocation6 + $0x4f8] sm:$0xff] }
  0x46   :  { %3513 = vmatpush3.msra.mxu1 %v216_v19  ;;  %3479 = vmatprep.subr.mxu0 %v199_v20  ;;  %v205_v63 = vld [vmem:[#allocation6 + $0x308] sm:$0xff]  ;;  %v172_v2 = vld [vmem:[#allocation6 + $0x200] sm:$0xff]  ;;  %v299_v8 = vld [vmem:[#allocation6 + $0x5f8] sm:$0xff] }
  0x47   :  { %3514 = vmatprep.subr.mxu1 %v231_v21  ;;  %3480 = vmatpush3.msra.mxu0 %v183_v22  ;;  %v49_v3 = vld [vmem:[#allocation3 + $0x28] sm:$0xff]  ;;  %v204_v4 = vld [vmem:[#allocation6 + $0x300] sm:$0xff]  ;;  %v50_v9 = vld [vmem:[#allocation3 + $0x30] sm:$0xff] }
  0x48   :  { %3515 = vmatpush3.msra.mxu1 %v215_v23  ;;  %3481 = vmatprep.subr.mxu0 %v198_v24  ;;  %v48_v5 = vld [vmem:[#allocation3 + $0x20] sm:$0xff]  ;;  %v251_v10 = vld [vmem:[#allocation6 + $0x478] sm:$0xff]  ;;  %v266_v12 = vld [vmem:[#allocation6 + $0x4f0] sm:$0xff] }
  0x49   :  { %3516 = vmatprep.subr.mxu1 %v230_v25  ;;  %3482 = vmatpush3.msra.mxu0 %v182_v26  ;;  %v283_v11 = vld [vmem:[#allocation6 + $0x578] sm:$0xff]  ;;  %v298_v13 = vld [vmem:[#allocation6 + $0x5f0] sm:$0xff]  ;;  %v265_v16 = vld [vmem:[#allocation6 + $0x4e8] sm:$0xff] }
  0x4a   :  { %3517 = vmatpush3.msra.mxu1 %v214_v27  ;;  %3483 = vmatprep.subr.mxu0 %v197_v28  ;;  %v250_v14 = vld [vmem:[#allocation6 + $0x470] sm:$0xff]  ;;  %v297_v17 = vld [vmem:[#allocation6 + $0x5e8] sm:$0xff]  ;;  %v264_v20 = vld [vmem:[#allocation6 + $0x4e0] sm:$0xff] }
  0x4b   :  { %3518 = vmatprep.subr.mxu1 %v229_v29  ;;  %3484 = vmatpush3.msra.mxu0 %v181_v30  ;;  %v282_v15 = vld [vmem:[#allocation6 + $0x570] sm:$0xff]  ;;  %v249_v18 = vld [vmem:[#allocation6 + $0x468] sm:$0xff]  ;;  %v296_v21 = vld [vmem:[#allocation6 + $0x5e0] sm:$0xff] }
  0x4c   :  { %3519 = vmatpush3.msra.mxu1 %v213_v31  ;;  %3485 = vmatprep.subr.mxu0 %v196_v32  ;;  %v281_v19 = vld [vmem:[#allocation6 + $0x568] sm:$0xff]  ;;  %v248_v22 = vld [vmem:[#allocation6 + $0x460] sm:$0xff]  ;;  %v263_v24 = vld [vmem:[#allocation6 + $0x4d8] sm:$0xff] }
  0x4d   :  { %3520 = vmatprep.subr.mxu1 %v228_v33  ;;  %3486 = vmatpush3.msra.mxu0 %v180_v34  ;;  %v280_v23 = vld [vmem:[#allocation6 + $0x560] sm:$0xff]  ;;  %v295_v25 = vld [vmem:[#allocation6 + $0x5d8] sm:$0xff]  ;;  %v262_v28 = vld [vmem:[#allocation6 + $0x4d0] sm:$0xff] }
  0x4e   :  { %3521 = vmatpush3.msra.mxu1 %v212_v35  ;;  %3487 = vmatprep.subr.mxu0 %v195_v36  ;;  %v247_v26 = vld [vmem:[#allocation6 + $0x458] sm:$0xff]  ;;  %v294_v29 = vld [vmem:[#allocation6 + $0x5d0] sm:$0xff]  ;;  %v261_v32 = vld [vmem:[#allocation6 + $0x4c8] sm:$0xff] }
  0x4f   :  { %3522 = vmatprep.subr.mxu1 %v227_v37  ;;  %3488 = vmatpush3.msra.mxu0 %v179_v38  ;;  %v279_v27 = vld [vmem:[#allocation6 + $0x558] sm:$0xff]  ;;  %v246_v30 = vld [vmem:[#allocation6 + $0x450] sm:$0xff]  ;;  %v293_v33 = vld [vmem:[#allocation6 + $0x5c8] sm:$0xff] }
  0x50   :  { %3523 = vmatpush3.msra.mxu1 %v211_v39  ;;  %3489 = vmatprep.subr.mxu0 %v194_v40  ;;  %v278_v31 = vld [vmem:[#allocation6 + $0x550] sm:$0xff]  ;;  %v245_v34 = vld [vmem:[#allocation6 + $0x448] sm:$0xff]  ;;  %v260_v36 = vld [vmem:[#allocation6 + $0x4c0] sm:$0xff] }
  0x51   :  { %3524 = vmatprep.subr.mxu1 %v226_v41  ;;  %3490 = vmatpush3.msra.mxu0 %v178_v42  ;;  %v277_v35 = vld [vmem:[#allocation6 + $0x548] sm:$0xff]  ;;  %v292_v37 = vld [vmem:[#allocation6 + $0x5c0] sm:$0xff]  ;;  %v259_v40 = vld [vmem:[#allocation6 + $0x4b8] sm:$0xff] }
  0x52   :  { %3525 = vmatpush3.msra.mxu1 %v210_v43  ;;  %3491 = vmatprep.subr.mxu0 %v193_v44  ;;  %v244_v38 = vld [vmem:[#allocation6 + $0x440] sm:$0xff]  ;;  %v291_v41 = vld [vmem:[#allocation6 + $0x5b8] sm:$0xff]  ;;  %v258_v44 = vld [vmem:[#allocation6 + $0x4b0] sm:$0xff] }
  0x53   :  { %3526 = vmatprep.subr.mxu1 %v225_v45  ;;  %3492 = vmatpush3.msra.mxu0 %v177_v46  ;;  %v276_v39 = vld [vmem:[#allocation6 + $0x540] sm:$0xff]  ;;  %v243_v42 = vld [vmem:[#allocation6 + $0x438] sm:$0xff]  ;;  %v290_v45 = vld [vmem:[#allocation6 + $0x5b0] sm:$0xff] }
  0x54   :  { %3527 = vmatpush3.msra.mxu1 %v209_v47  ;;  %3493 = vmatprep.subr.mxu0 %v192_v48  ;;  %v275_v43 = vld [vmem:[#allocation6 + $0x538] sm:$0xff]  ;;  %v242_v46 = vld [vmem:[#allocation6 + $0x430] sm:$0xff]  ;;  %v257_v48 = vld [vmem:[#allocation6 + $0x4a8] sm:$0xff] }
  0x55   :  { %3528 = vmatprep.subr.mxu1 %v224_v49  ;;  %3494 = vmatpush3.msra.mxu0 %v176_v50  ;;  %v274_v47 = vld [vmem:[#allocation6 + $0x530] sm:$0xff]  ;;  %v289_v49 = vld [vmem:[#allocation6 + $0x5a8] sm:$0xff] }
  0x56   :  { %3529 = vmatpush3.msra.mxu1 %v208_v51  ;;  %3495 = vmatprep.subr.mxu0 %v191_v52  ;;  %v241_v50 = vld [vmem:[#allocation6 + $0x428] sm:$0xff]  ;;  %v256_v52 = vld [vmem:[#allocation6 + $0x4a0] sm:$0xff] }
  0x57   :  { %3530 = vmatprep.subr.mxu1 %v223_v53  ;;  %3496 = vmatpush3.msra.mxu0 %v175_v54  ;;  %v273_v51 = vld [vmem:[#allocation6 + $0x528] sm:$0xff]  ;;  %v288_v53 = vld [vmem:[#allocation6 + $0x5a0] sm:$0xff] }
  0x58   :  { %3531 = vmatpush3.msra.mxu1 %v207_v55  ;;  %3497 = vmatprep.subr.mxu0 %v190_v56  ;;  %v240_v54 = vld [vmem:[#allocation6 + $0x420] sm:$0xff]  ;;  %v255_v56 = vld [vmem:[#allocation6 + $0x498] sm:$0xff] }
  0x59   :  { %3532 = vmatprep.subr.mxu1 %v222_v57  ;;  %3498 = vmatpush3.msra.mxu0 %v174_v58  ;;  %v272_v55 = vld [vmem:[#allocation6 + $0x520] sm:$0xff]  ;;  %v287_v57 = vld [vmem:[#allocation6 + $0x598] sm:$0xff] }
  0x5a   :  { %3533 = vmatpush3.msra.mxu1 %v206_v59  ;;  %3499 = vmatprep.subr.mxu0 %v189_v60  ;;  %v239_v58 = vld [vmem:[#allocation6 + $0x418] sm:$0xff]  ;;  %v254_v60 = vld [vmem:[#allocation6 + $0x490] sm:$0xff] }
  0x5b   :  { %3534 = vmatprep.subr.mxu1 %v221_v61  ;;  %3500 = vmatpush3.msra.mxu0 %v173_v62  ;;  %v271_v59 = vld [vmem:[#allocation6 + $0x518] sm:$0xff]  ;;  %v286_v61 = vld [vmem:[#allocation6 + $0x590] sm:$0xff] }
  0x5c   :  { %3535 = vmatpush3.msra.mxu1 %v205_v63  ;;  %3501 = vmatprep.subr.mxu0 %v188_v0  ;;  %v238_v62 = vld [vmem:[#allocation6 + $0x410] sm:$0xff]  ;;  %v253_v0 = vld [vmem:[#allocation6 + $0x488] sm:$0xff] }
  0x5d   :  { %3536 = vmatprep.subr.mxu1 %v220_v1  ;;  %3502 = vmatpush3.msra.mxu0 %v172_v2  ;;  %v270_v63 = vld [vmem:[#allocation6 + $0x510] sm:$0xff]  ;;  %v285_v1 = vld [vmem:[#allocation6 + $0x588] sm:$0xff] }
  0x5e   :  { %1336 = vmatprep.mubr.f32.mxu0 %v49_v3  ;;  %3537 = vmatpush3.msra.mxu1 %v204_v4  ;;  %v237_v2 = vld [vmem:[#allocation6 + $0x408] sm:$0xff]  ;;  %v252_v4 = vld [vmem:[#allocation6 + $0x480] sm:$0xff] }
  0x5f   :  { %1337 = vmatmul.mubr.f32.vlgmr.msra.gmra.mxu0 %v48_v5  ;;  %1406 = vmatprep.mubr.f32.mxu1 %v51_v6  ;;  %v269_v3 = vld [vmem:[#allocation6 + $0x508] sm:$0xff]  ;;  %v284_v5 = vld [vmem:[#allocation6 + $0x580] sm:$0xff] }
  0x60   :  { %3541 = vmatprep.subr.mxu0 %v267_v7  ;;  %3576 = vmatprep.subr.mxu1 %v299_v8  ;;  %v236_v6 = vld [vmem:[#allocation6 + $0x400] sm:$0xff]  ;;  %v53_v7 = vld [vmem:[#allocation3 + $0x48] sm:$0xff] }
  0x61   :  { %1407 = vmatmul.mubr.f32.vlgmr.msra.gmra.mxu1 %v50_v9  ;;  %3542 = vmatpush3.msra.mxu0 %v251_v10  ;;  %v268_v8 = vld [vmem:[#allocation6 + $0x500] sm:$0xff]  ;;  %v55_v10 = vld [vmem:[#allocation3 + $0x58] sm:$0xff] }
  0x62   :  { %3577 = vmatpush3.msra.mxu1 %v283_v11  ;;  %3543 = vmatprep.subr.mxu0 %v266_v12  ;;  %v52_v9 = vld [vmem:[#allocation3 + $0x40] sm:$0xff]  ;;  %v331_v11 = vld [vmem:[#allocation6 + $0x6f8] sm:$0xff] }
  0x63   :  { %3578 = vmatprep.subr.mxu1 %v298_v13  ;;  %3544 = vmatpush3.msra.mxu0 %v250_v14  ;;  %v363_v12 = vld [vmem:[#allocation6 + $0x7f8] sm:$0xff]  ;;  %v54_v13 = vld [vmem:[#allocation3 + $0x50] sm:$0xff] }
  0x64   :  { %3579 = vmatpush3.msra.mxu1 %v282_v15  ;;  %3545 = vmatprep.subr.mxu0 %v265_v16  ;;  %v315_v14 = vld [vmem:[#allocation6 + $0x678] sm:$0xff]  ;;  %v330_v16 = vld [vmem:[#allocation6 + $0x6f0] sm:$0xff] }
  0x65   :  { %3580 = vmatprep.subr.mxu1 %v297_v17  ;;  %3546 = vmatpush3.msra.mxu0 %v249_v18  ;;  %v347_v15 = vld [vmem:[#allocation6 + $0x778] sm:$0xff]  ;;  %v362_v17 = vld [vmem:[#allocation6 + $0x7f0] sm:$0xff] }
  0x66   :  { %3581 = vmatpush3.msra.mxu1 %v281_v19  ;;  %3547 = vmatprep.subr.mxu0 %v264_v20  ;;  %v314_v18 = vld [vmem:[#allocation6 + $0x670] sm:$0xff]  ;;  %v329_v20 = vld [vmem:[#allocation6 + $0x6e8] sm:$0xff] }
  0x67   :  { %3582 = vmatprep.subr.mxu1 %v296_v21  ;;  %3548 = vmatpush3.msra.mxu0 %v248_v22  ;;  %v346_v19 = vld [vmem:[#allocation6 + $0x770] sm:$0xff]  ;;  %v361_v21 = vld [vmem:[#allocation6 + $0x7e8] sm:$0xff] }
  0x68   :  { %3583 = vmatpush3.msra.mxu1 %v280_v23  ;;  %3549 = vmatprep.subr.mxu0 %v263_v24  ;;  %v313_v22 = vld [vmem:[#allocation6 + $0x668] sm:$0xff]  ;;  %v328_v24 = vld [vmem:[#allocation6 + $0x6e0] sm:$0xff] }
  0x69   :  { %3584 = vmatprep.subr.mxu1 %v295_v25  ;;  %3550 = vmatpush3.msra.mxu0 %v247_v26  ;;  %v345_v23 = vld [vmem:[#allocation6 + $0x768] sm:$0xff]  ;;  %v360_v25 = vld [vmem:[#allocation6 + $0x7e0] sm:$0xff] }
  0x6a   :  { %3585 = vmatpush3.msra.mxu1 %v279_v27  ;;  %3551 = vmatprep.subr.mxu0 %v262_v28  ;;  %v312_v26 = vld [vmem:[#allocation6 + $0x660] sm:$0xff]  ;;  %v327_v28 = vld [vmem:[#allocation6 + $0x6d8] sm:$0xff] }
  0x6b   :  { %3586 = vmatprep.subr.mxu1 %v294_v29  ;;  %3552 = vmatpush3.msra.mxu0 %v246_v30  ;;  %v344_v27 = vld [vmem:[#allocation6 + $0x760] sm:$0xff]  ;;  %v359_v29 = vld [vmem:[#allocation6 + $0x7d8] sm:$0xff] }
  0x6c   :  { %3587 = vmatpush3.msra.mxu1 %v278_v31  ;;  %3553 = vmatprep.subr.mxu0 %v261_v32  ;;  %v311_v30 = vld [vmem:[#allocation6 + $0x658] sm:$0xff]  ;;  %v326_v32 = vld [vmem:[#allocation6 + $0x6d0] sm:$0xff] }
  0x6d   :  { %3588 = vmatprep.subr.mxu1 %v293_v33  ;;  %3554 = vmatpush3.msra.mxu0 %v245_v34  ;;  %v343_v31 = vld [vmem:[#allocation6 + $0x758] sm:$0xff]  ;;  %v358_v33 = vld [vmem:[#allocation6 + $0x7d0] sm:$0xff] }
  0x6e   :  { %3589 = vmatpush3.msra.mxu1 %v277_v35  ;;  %3555 = vmatprep.subr.mxu0 %v260_v36  ;;  %v310_v34 = vld [vmem:[#allocation6 + $0x650] sm:$0xff]  ;;  %v325_v36 = vld [vmem:[#allocation6 + $0x6c8] sm:$0xff] }
  0x6f   :  { %3590 = vmatprep.subr.mxu1 %v292_v37  ;;  %3556 = vmatpush3.msra.mxu0 %v244_v38  ;;  %v342_v35 = vld [vmem:[#allocation6 + $0x750] sm:$0xff]  ;;  %v357_v37 = vld [vmem:[#allocation6 + $0x7c8] sm:$0xff] }
  0x70   :  { %3591 = vmatpush3.msra.mxu1 %v276_v39  ;;  %3557 = vmatprep.subr.mxu0 %v259_v40  ;;  %v309_v38 = vld [vmem:[#allocation6 + $0x648] sm:$0xff]  ;;  %v324_v40 = vld [vmem:[#allocation6 + $0x6c0] sm:$0xff] }
  0x71   :  { %3592 = vmatprep.subr.mxu1 %v291_v41  ;;  %3558 = vmatpush3.msra.mxu0 %v243_v42  ;;  %v341_v39 = vld [vmem:[#allocation6 + $0x748] sm:$0xff]  ;;  %v356_v41 = vld [vmem:[#allocation6 + $0x7c0] sm:$0xff] }
  0x72   :  { %3593 = vmatpush3.msra.mxu1 %v275_v43  ;;  %3559 = vmatprep.subr.mxu0 %v258_v44  ;;  %v308_v42 = vld [vmem:[#allocation6 + $0x640] sm:$0xff]  ;;  %v323_v44 = vld [vmem:[#allocation6 + $0x6b8] sm:$0xff] }
  0x73   :  { %3594 = vmatprep.subr.mxu1 %v290_v45  ;;  %3560 = vmatpush3.msra.mxu0 %v242_v46  ;;  %v340_v43 = vld [vmem:[#allocation6 + $0x740] sm:$0xff]  ;;  %v355_v45 = vld [vmem:[#allocation6 + $0x7b8] sm:$0xff] }
  0x74   :  { %3595 = vmatpush3.msra.mxu1 %v274_v47  ;;  %3561 = vmatprep.subr.mxu0 %v257_v48  ;;  %v307_v46 = vld [vmem:[#allocation6 + $0x638] sm:$0xff]  ;;  %v322_v48 = vld [vmem:[#allocation6 + $0x6b0] sm:$0xff] }
  0x75   :  { %3596 = vmatprep.subr.mxu1 %v289_v49  ;;  %3562 = vmatpush3.msra.mxu0 %v241_v50  ;;  %v339_v47 = vld [vmem:[#allocation6 + $0x738] sm:$0xff]  ;;  %v354_v49 = vld [vmem:[#allocation6 + $0x7b0] sm:$0xff] }
  0x76   :  { %3597 = vmatpush3.msra.mxu1 %v273_v51  ;;  %3563 = vmatprep.subr.mxu0 %v256_v52  ;;  %v306_v50 = vld [vmem:[#allocation6 + $0x630] sm:$0xff]  ;;  %v321_v52 = vld [vmem:[#allocation6 + $0x6a8] sm:$0xff] }
  0x77   :  { %3598 = vmatprep.subr.mxu1 %v288_v53  ;;  %3564 = vmatpush3.msra.mxu0 %v240_v54  ;;  %v338_v51 = vld [vmem:[#allocation6 + $0x730] sm:$0xff]  ;;  %v353_v53 = vld [vmem:[#allocation6 + $0x7a8] sm:$0xff] }
  0x78   :  { %3599 = vmatpush3.msra.mxu1 %v272_v55  ;;  %3565 = vmatprep.subr.mxu0 %v255_v56  ;;  %v305_v54 = vld [vmem:[#allocation6 + $0x628] sm:$0xff]  ;;  %v320_v56 = vld [vmem:[#allocation6 + $0x6a0] sm:$0xff] }
  0x79   :  { %3600 = vmatprep.subr.mxu1 %v287_v57  ;;  %3566 = vmatpush3.msra.mxu0 %v239_v58  ;;  %v337_v55 = vld [vmem:[#allocation6 + $0x728] sm:$0xff]  ;;  %v352_v57 = vld [vmem:[#allocation6 + $0x7a0] sm:$0xff] }
  0x7a   :  { %3601 = vmatpush3.msra.mxu1 %v271_v59  ;;  %3567 = vmatprep.subr.mxu0 %v254_v60  ;;  %v304_v58 = vld [vmem:[#allocation6 + $0x620] sm:$0xff]  ;;  %v319_v60 = vld [vmem:[#allocation6 + $0x698] sm:$0xff] }
  0x7b   :  { %3602 = vmatprep.subr.mxu1 %v286_v61  ;;  %3568 = vmatpush3.msra.mxu0 %v238_v62  ;;  %v336_v59 = vld [vmem:[#allocation6 + $0x720] sm:$0xff]  ;;  %v351_v61 = vld [vmem:[#allocation6 + $0x798] sm:$0xff] }
  0x7c   :  { %3603 = vmatpush3.msra.mxu1 %v270_v63  ;;  %3569 = vmatprep.subr.mxu0 %v253_v0  ;;  %v303_v62 = vld [vmem:[#allocation6 + $0x618] sm:$0xff]  ;;  %v318_v0 = vld [vmem:[#allocation6 + $0x690] sm:$0xff] }
  0x7d   :  { %3604 = vmatprep.subr.mxu1 %v285_v1  ;;  %3570 = vmatpush3.msra.mxu0 %v237_v2  ;;  %v335_v63 = vld [vmem:[#allocation6 + $0x718] sm:$0xff]  ;;  %v350_v1 = vld [vmem:[#allocation6 + $0x790] sm:$0xff] }
  0x7e   :  { %3605 = vmatpush3.msra.mxu1 %v269_v3  ;;  %3571 = vmatprep.subr.mxu0 %v252_v4  ;;  %v302_v2 = vld [vmem:[#allocation6 + $0x610] sm:$0xff]  ;;  %v317_v4 = vld [vmem:[#allocation6 + $0x688] sm:$0xff] }
  0x7f   :  { %3606 = vmatprep.subr.mxu1 %v284_v5  ;;  %3572 = vmatpush3.msra.mxu0 %v236_v6  ;;  %v334_v3 = vld [vmem:[#allocation6 + $0x710] sm:$0xff]  ;;  %v349_v5 = vld [vmem:[#allocation6 + $0x788] sm:$0xff] }
  0x80   :  { %1476 = vmatprep.mubr.f32.mxu0 %v53_v7  ;;  %3607 = vmatpush3.msra.mxu1 %v268_v8  ;;  %v301_v6 = vld [vmem:[#allocation6 + $0x608] sm:$0xff]  ;;  %v316_v8 = vld [vmem:[#allocation6 + $0x680] sm:$0xff] }
  0x81   :  { %1477 = vmatmul.mubr.f32.vlgmr.msra.gmra.mxu0 %v52_v9  ;;  %1546 = vmatprep.mubr.f32.mxu1 %v55_v10  ;;  %v333_v7 = vld [vmem:[#allocation6 + $0x708] sm:$0xff]  ;;  %v348_v9 = vld [vmem:[#allocation6 + $0x780] sm:$0xff] }
  0x82   :  { %3611 = vmatprep.subr.mxu0 %v331_v11  ;;  %3646 = vmatprep.subr.mxu1 %v363_v12  ;;  %v300_v10 = vld [vmem:[#allocation6 + $0x600] sm:$0xff]  ;;  %v57_v11 = vld [vmem:[#allocation3 + $0x68] sm:$0xff] }
  0x83   :  { %1547 = vmatmul.mubr.f32.vlgmr.msra.gmra.mxu1 %v54_v13  ;;  %3612 = vmatpush3.msra.mxu0 %v315_v14  ;;  %v332_v12 = vld [vmem:[#allocation6 + $0x700] sm:$0xff]  ;;  %v59_v14 = vld [vmem:[#allocation3 + $0x78] sm:$0xff] }
  0x84   :  { %3647 = vmatpush3.msra.mxu1 %v347_v15  ;;  %3613 = vmatprep.subr.mxu0 %v330_v16  ;;  %v56_v13 = vld [vmem:[#allocation3 + $0x60] sm:$0xff]  ;;  %v395_v15 = vld [vmem:[#allocation6 + $0x8f8] sm:$0xff] }
  0x85   :  { %3648 = vmatprep.subr.mxu1 %v362_v17  ;;  %3614 = vmatpush3.msra.mxu0 %v314_v18  ;;  %v427_v16 = vld [vmem:[#allocation6 + $0x9f8] sm:$0xff]  ;;  %v58_v17 = vld [vmem:[#allocation3 + $0x70] sm:$0xff] }
  0x86   :  { %3649 = vmatpush3.msra.mxu1 %v346_v19  ;;  %3615 = vmatprep.subr.mxu0 %v329_v20  ;;  %v379_v18 = vld [vmem:[#allocation6 + $0x878] sm:$0xff]  ;;  %v394_v20 = vld [vmem:[#allocation6 + $0x8f0] sm:$0xff] }
  0x87   :  { %3650 = vmatprep.subr.mxu1 %v361_v21  ;;  %3616 = vmatpush3.msra.mxu0 %v313_v22  ;;  %v411_v19 = vld [vmem:[#allocation6 + $0x978] sm:$0xff]  ;;  %v426_v21 = vld [vmem:[#allocation6 + $0x9f0] sm:$0xff] }
  0x88   :  { %3651 = vmatpush3.msra.mxu1 %v345_v23  ;;  %3617 = vmatprep.subr.mxu0 %v328_v24  ;;  %v378_v22 = vld [vmem:[#allocation6 + $0x870] sm:$0xff]  ;;  %v393_v24 = vld [vmem:[#allocation6 + $0x8e8] sm:$0xff] }
  0x89   :  { %3652 = vmatprep.subr.mxu1 %v360_v25  ;;  %3618 = vmatpush3.msra.mxu0 %v312_v26  ;;  %v410_v23 = vld [vmem:[#allocation6 + $0x970] sm:$0xff]  ;;  %v425_v25 = vld [vmem:[#allocation6 + $0x9e8] sm:$0xff] }
  0x8a   :  { %3653 = vmatpush3.msra.mxu1 %v344_v27  ;;  %3619 = vmatprep.subr.mxu0 %v327_v28  ;;  %v377_v26 = vld [vmem:[#allocation6 + $0x868] sm:$0xff]  ;;  %v392_v28 = vld [vmem:[#allocation6 + $0x8e0] sm:$0xff] }
  0x8b   :  { %3654 = vmatprep.subr.mxu1 %v359_v29  ;;  %3620 = vmatpush3.msra.mxu0 %v311_v30  ;;  %v409_v27 = vld [vmem:[#allocation6 + $0x968] sm:$0xff]  ;;  %v424_v29 = vld [vmem:[#allocation6 + $0x9e0] sm:$0xff] }
  0x8c   :  { %3655 = vmatpush3.msra.mxu1 %v343_v31  ;;  %3621 = vmatprep.subr.mxu0 %v326_v32  ;;  %v376_v30 = vld [vmem:[#allocation6 + $0x860] sm:$0xff]  ;;  %v391_v32 = vld [vmem:[#allocation6 + $0x8d8] sm:$0xff] }
  0x8d   :  { %3656 = vmatprep.subr.mxu1 %v358_v33  ;;  %3622 = vmatpush3.msra.mxu0 %v310_v34  ;;  %v408_v31 = vld [vmem:[#allocation6 + $0x960] sm:$0xff]  ;;  %v423_v33 = vld [vmem:[#allocation6 + $0x9d8] sm:$0xff] }
  0x8e   :  { %3657 = vmatpush3.msra.mxu1 %v342_v35  ;;  %3623 = vmatprep.subr.mxu0 %v325_v36  ;;  %v375_v34 = vld [vmem:[#allocation6 + $0x858] sm:$0xff]  ;;  %v390_v36 = vld [vmem:[#allocation6 + $0x8d0] sm:$0xff] }
  0x8f   :  { %3658 = vmatprep.subr.mxu1 %v357_v37  ;;  %3624 = vmatpush3.msra.mxu0 %v309_v38  ;;  %v407_v35 = vld [vmem:[#allocation6 + $0x958] sm:$0xff]  ;;  %v422_v37 = vld [vmem:[#allocation6 + $0x9d0] sm:$0xff] }
  0x90   :  { %3659 = vmatpush3.msra.mxu1 %v341_v39  ;;  %3625 = vmatprep.subr.mxu0 %v324_v40  ;;  %v374_v38 = vld [vmem:[#allocation6 + $0x850] sm:$0xff]  ;;  %v389_v40 = vld [vmem:[#allocation6 + $0x8c8] sm:$0xff] }
  0x91   :  { %3660 = vmatprep.subr.mxu1 %v356_v41  ;;  %3626 = vmatpush3.msra.mxu0 %v308_v42  ;;  %v406_v39 = vld [vmem:[#allocation6 + $0x950] sm:$0xff]  ;;  %v421_v41 = vld [vmem:[#allocation6 + $0x9c8] sm:$0xff] }
  0x92   :  { %3661 = vmatpush3.msra.mxu1 %v340_v43  ;;  %3627 = vmatprep.subr.mxu0 %v323_v44  ;;  %v373_v42 = vld [vmem:[#allocation6 + $0x848] sm:$0xff]  ;;  %v388_v44 = vld [vmem:[#allocation6 + $0x8c0] sm:$0xff] }
  0x93   :  { %3662 = vmatprep.subr.mxu1 %v355_v45  ;;  %3628 = vmatpush3.msra.mxu0 %v307_v46  ;;  %v405_v43 = vld [vmem:[#allocation6 + $0x948] sm:$0xff]  ;;  %v420_v45 = vld [vmem:[#allocation6 + $0x9c0] sm:$0xff] }
  0x94   :  { %3663 = vmatpush3.msra.mxu1 %v339_v47  ;;  %3629 = vmatprep.subr.mxu0 %v322_v48  ;;  %v372_v46 = vld [vmem:[#allocation6 + $0x840] sm:$0xff]  ;;  %v387_v48 = vld [vmem:[#allocation6 + $0x8b8] sm:$0xff] }
  0x95   :  { %3664 = vmatprep.subr.mxu1 %v354_v49  ;;  %3630 = vmatpush3.msra.mxu0 %v306_v50  ;;  %v404_v47 = vld [vmem:[#allocation6 + $0x940] sm:$0xff]  ;;  %v419_v49 = vld [vmem:[#allocation6 + $0x9b8] sm:$0xff] }
  0x96   :  { %3665 = vmatpush3.msra.mxu1 %v338_v51  ;;  %3631 = vmatprep.subr.mxu0 %v321_v52  ;;  %v371_v50 = vld [vmem:[#allocation6 + $0x838] sm:$0xff]  ;;  %v386_v52 = vld [vmem:[#allocation6 + $0x8b0] sm:$0xff] }
  0x97   :  { %3666 = vmatprep.subr.mxu1 %v353_v53  ;;  %3632 = vmatpush3.msra.mxu0 %v305_v54  ;;  %v403_v51 = vld [vmem:[#allocation6 + $0x938] sm:$0xff]  ;;  %v418_v53 = vld [vmem:[#allocation6 + $0x9b0] sm:$0xff] }
  0x98   :  { %3667 = vmatpush3.msra.mxu1 %v337_v55  ;;  %3633 = vmatprep.subr.mxu0 %v320_v56  ;;  %v370_v54 = vld [vmem:[#allocation6 + $0x830] sm:$0xff]  ;;  %v385_v56 = vld [vmem:[#allocation6 + $0x8a8] sm:$0xff] }
  0x99   :  { %3668 = vmatprep.subr.mxu1 %v352_v57  ;;  %3634 = vmatpush3.msra.mxu0 %v304_v58  ;;  %v402_v55 = vld [vmem:[#allocation6 + $0x930] sm:$0xff]  ;;  %v417_v57 = vld [vmem:[#allocation6 + $0x9a8] sm:$0xff] }
  0x9a   :  { %3669 = vmatpush3.msra.mxu1 %v336_v59  ;;  %3635 = vmatprep.subr.mxu0 %v319_v60  ;;  %v369_v58 = vld [vmem:[#allocation6 + $0x828] sm:$0xff]  ;;  %v384_v60 = vld [vmem:[#allocation6 + $0x8a0] sm:$0xff] }
  0x9b   :  { %3670 = vmatprep.subr.mxu1 %v351_v61  ;;  %3636 = vmatpush3.msra.mxu0 %v303_v62  ;;  %v401_v59 = vld [vmem:[#allocation6 + $0x928] sm:$0xff]  ;;  %v416_v61 = vld [vmem:[#allocation6 + $0x9a0] sm:$0xff] }
  0x9c   :  { %3671 = vmatpush3.msra.mxu1 %v335_v63  ;;  %3637 = vmatprep.subr.mxu0 %v318_v0  ;;  %v368_v62 = vld [vmem:[#allocation6 + $0x820] sm:$0xff]  ;;  %v383_v0 = vld [vmem:[#allocation6 + $0x898] sm:$0xff] }
  0x9d   :  { %3672 = vmatprep.subr.mxu1 %v350_v1  ;;  %3638 = vmatpush3.msra.mxu0 %v302_v2  ;;  %v400_v63 = vld [vmem:[#allocation6 + $0x920] sm:$0xff]  ;;  %v415_v1 = vld [vmem:[#allocation6 + $0x998] sm:$0xff] }
  0x9e   :  { %3673 = vmatpush3.msra.mxu1 %v334_v3  ;;  %3639 = vmatprep.subr.mxu0 %v317_v4  ;;  %v367_v2 = vld [vmem:[#allocation6 + $0x818] sm:$0xff]  ;;  %v382_v4 = vld [vmem:[#allocation6 + $0x890] sm:$0xff] }
  0x9f   :  { %3674 = vmatprep.subr.mxu1 %v349_v5  ;;  %3640 = vmatpush3.msra.mxu0 %v301_v6  ;;  %v399_v3 = vld [vmem:[#allocation6 + $0x918] sm:$0xff]  ;;  %v414_v5 = vld [vmem:[#allocation6 + $0x990] sm:$0xff] }
  0xa0   :  { %3675 = vmatpush3.msra.mxu1 %v333_v7  ;;  %3641 = vmatprep.subr.mxu0 %v316_v8  ;;  %v366_v6 = vld [vmem:[#allocation6 + $0x810] sm:$0xff]  ;;  %v381_v8 = vld [vmem:[#allocation6 + $0x888] sm:$0xff] }
  0xa1   :  { %3676 = vmatprep.subr.mxu1 %v348_v9  ;;  %3642 = vmatpush3.msra.mxu0 %v300_v10  ;;  %v398_v7 = vld [vmem:[#allocation6 + $0x910] sm:$0xff]  ;;  %v413_v9 = vld [vmem:[#allocation6 + $0x988] sm:$0xff] }
  0xa2   :  { %1616 = vmatprep.mubr.f32.mxu0 %v57_v11  ;;  %3677 = vmatpush3.msra.mxu1 %v332_v12  ;;  %v365_v10 = vld [vmem:[#allocation6 + $0x808] sm:$0xff]  ;;  %v380_v12 = vld [vmem:[#allocation6 + $0x880] sm:$0xff] }
  0xa3   :  { %1617 = vmatmul.mubr.f32.vlgmr.msra.gmra.mxu0 %v56_v13  ;;  %1686 = vmatprep.mubr.f32.mxu1 %v59_v14  ;;  %v397_v11 = vld [vmem:[#allocation6 + $0x908] sm:$0xff]  ;;  %v412_v13 = vld [vmem:[#allocation6 + $0x980] sm:$0xff] }
  0xa4   :  { %3681 = vmatprep.subr.mxu0 %v395_v15  ;;  %3716 = vmatprep.subr.mxu1 %v427_v16  ;;  %v364_v14 = vld [vmem:[#allocation6 + $0x800] sm:$0xff]  ;;  %v61_v15 = vld [vmem:[#allocation3 + $0x88] sm:$0xff] }
  0xa5   :  { %1687 = vmatmul.mubr.f32.vlgmr.msra.gmra.mxu1 %v58_v17  ;;  %3682 = vmatpush3.msra.mxu0 %v379_v18  ;;  %v396_v16 = vld [vmem:[#allocation6 + $0x900] sm:$0xff]  ;;  %v63_v18 = vld [vmem:[#allocation3 + $0x98] sm:$0xff] }
  0xa6   :  { %3717 = vmatpush3.msra.mxu1 %v411_v19  ;;  %3683 = vmatprep.subr.mxu0 %v394_v20  ;;  %v60_v17 = vld [vmem:[#allocation3 + $0x80] sm:$0xff]  ;;  %v459_v19 = vld [vmem:[#allocation6 + $0xaf8] sm:$0xff] }
  0xa7   :  { %3718 = vmatprep.subr.mxu1 %v426_v21  ;;  %3684 = vmatpush3.msra.mxu0 %v378_v22  ;;  %v491_v20 = vld [vmem:[#allocation6 + $0xbf8] sm:$0xff]  ;;  %v62_v21 = vld [vmem:[#allocation3 + $0x90] sm:$0xff] }
  0xa8   :  { %3719 = vmatpush3.msra.mxu1 %v410_v23  ;;  %3685 = vmatprep.subr.mxu0 %v393_v24  ;;  %v443_v22 = vld [vmem:[#allocation6 + $0xa78] sm:$0xff]  ;;  %v458_v24 = vld [vmem:[#allocation6 + $0xaf0] sm:$0xff] }
  0xa9   :  { %3720 = vmatprep.subr.mxu1 %v425_v25  ;;  %3686 = vmatpush3.msra.mxu0 %v377_v26  ;;  %v475_v23 = vld [vmem:[#allocation6 + $0xb78] sm:$0xff]  ;;  %v490_v25 = vld [vmem:[#allocation6 + $0xbf0] sm:$0xff] }
  0xaa   :  { %3721 = vmatpush3.msra.mxu1 %v409_v27  ;;  %3687 = vmatprep.subr.mxu0 %v392_v28  ;;  %v442_v26 = vld [vmem:[#allocation6 + $0xa70] sm:$0xff]  ;;  %v457_v28 = vld [vmem:[#allocation6 + $0xae8] sm:$0xff] }
  0xab   :  { %3722 = vmatprep.subr.mxu1 %v424_v29  ;;  %3688 = vmatpush3.msra.mxu0 %v376_v30  ;;  %v474_v27 = vld [vmem:[#allocation6 + $0xb70] sm:$0xff]  ;;  %v489_v29 = vld [vmem:[#allocation6 + $0xbe8] sm:$0xff] }
  0xac   :  { %3723 = vmatpush3.msra.mxu1 %v408_v31  ;;  %3689 = vmatprep.subr.mxu0 %v391_v32  ;;  %v441_v30 = vld [vmem:[#allocation6 + $0xa68] sm:$0xff]  ;;  %v456_v32 = vld [vmem:[#allocation6 + $0xae0] sm:$0xff] }
  0xad   :  { %3724 = vmatprep.subr.mxu1 %v423_v33  ;;  %3690 = vmatpush3.msra.mxu0 %v375_v34  ;;  %v473_v31 = vld [vmem:[#allocation6 + $0xb68] sm:$0xff]  ;;  %v488_v33 = vld [vmem:[#allocation6 + $0xbe0] sm:$0xff] }
  0xae   :  { %3725 = vmatpush3.msra.mxu1 %v407_v35  ;;  %3691 = vmatprep.subr.mxu0 %v390_v36  ;;  %v440_v34 = vld [vmem:[#allocation6 + $0xa60] sm:$0xff]  ;;  %v455_v36 = vld [vmem:[#allocation6 + $0xad8] sm:$0xff] }
  0xaf   :  { %3726 = vmatprep.subr.mxu1 %v422_v37  ;;  %3692 = vmatpush3.msra.mxu0 %v374_v38  ;;  %v472_v35 = vld [vmem:[#allocation6 + $0xb60] sm:$0xff]  ;;  %v487_v37 = vld [vmem:[#allocation6 + $0xbd8] sm:$0xff] }
  0xb0   :  { %3727 = vmatpush3.msra.mxu1 %v406_v39  ;;  %3693 = vmatprep.subr.mxu0 %v389_v40  ;;  %v439_v38 = vld [vmem:[#allocation6 + $0xa58] sm:$0xff]  ;;  %v454_v40 = vld [vmem:[#allocation6 + $0xad0] sm:$0xff] }
  0xb1   :  { %3728 = vmatprep.subr.mxu1 %v421_v41  ;;  %3694 = vmatpush3.msra.mxu0 %v373_v42  ;;  %v471_v39 = vld [vmem:[#allocation6 + $0xb58] sm:$0xff]  ;;  %v486_v41 = vld [vmem:[#allocation6 + $0xbd0] sm:$0xff] }
  0xb2   :  { %3729 = vmatpush3.msra.mxu1 %v405_v43  ;;  %3695 = vmatprep.subr.mxu0 %v388_v44  ;;  %v438_v42 = vld [vmem:[#allocation6 + $0xa50] sm:$0xff]  ;;  %v453_v44 = vld [vmem:[#allocation6 + $0xac8] sm:$0xff] }
  0xb3   :  { %3730 = vmatprep.subr.mxu1 %v420_v45  ;;  %3696 = vmatpush3.msra.mxu0 %v372_v46  ;;  %v470_v43 = vld [vmem:[#allocation6 + $0xb50] sm:$0xff]  ;;  %v485_v45 = vld [vmem:[#allocation6 + $0xbc8] sm:$0xff] }
  0xb4   :  { %3731 = vmatpush3.msra.mxu1 %v404_v47  ;;  %3697 = vmatprep.subr.mxu0 %v387_v48  ;;  %v437_v46 = vld [vmem:[#allocation6 + $0xa48] sm:$0xff]  ;;  %v452_v48 = vld [vmem:[#allocation6 + $0xac0] sm:$0xff] }
  0xb5   :  { %3732 = vmatprep.subr.mxu1 %v419_v49  ;;  %3698 = vmatpush3.msra.mxu0 %v371_v50  ;;  %v469_v47 = vld [vmem:[#allocation6 + $0xb48] sm:$0xff]  ;;  %v484_v49 = vld [vmem:[#allocation6 + $0xbc0] sm:$0xff] }
  0xb6   :  { %3733 = vmatpush3.msra.mxu1 %v403_v51  ;;  %3699 = vmatprep.subr.mxu0 %v386_v52  ;;  %v436_v50 = vld [vmem:[#allocation6 + $0xa40] sm:$0xff]  ;;  %v451_v52 = vld [vmem:[#allocation6 + $0xab8] sm:$0xff] }
  0xb7   :  { %3734 = vmatprep.subr.mxu1 %v418_v53  ;;  %3700 = vmatpush3.msra.mxu0 %v370_v54  ;;  %v468_v51 = vld [vmem:[#allocation6 + $0xb40] sm:$0xff]  ;;  %v483_v53 = vld [vmem:[#allocation6 + $0xbb8] sm:$0xff] }
  0xb8   :  { %3735 = vmatpush3.msra.mxu1 %v402_v55  ;;  %3701 = vmatprep.subr.mxu0 %v385_v56  ;;  %v435_v54 = vld [vmem:[#allocation6 + $0xa38] sm:$0xff]  ;;  %v450_v56 = vld [vmem:[#allocation6 + $0xab0] sm:$0xff] }
  0xb9   :  { %3736 = vmatprep.subr.mxu1 %v417_v57  ;;  %3702 = vmatpush3.msra.mxu0 %v369_v58  ;;  %v467_v55 = vld [vmem:[#allocation6 + $0xb38] sm:$0xff]  ;;  %v482_v57 = vld [vmem:[#allocation6 + $0xbb0] sm:$0xff] }
  0xba   :  { %3737 = vmatpush3.msra.mxu1 %v401_v59  ;;  %3703 = vmatprep.subr.mxu0 %v384_v60  ;;  %v434_v58 = vld [vmem:[#allocation6 + $0xa30] sm:$0xff]  ;;  %v449_v60 = vld [vmem:[#allocation6 + $0xaa8] sm:$0xff] }
  0xbb   :  { %3738 = vmatprep.subr.mxu1 %v416_v61  ;;  %3704 = vmatpush3.msra.mxu0 %v368_v62  ;;  %v466_v59 = vld [vmem:[#allocation6 + $0xb30] sm:$0xff]  ;;  %v481_v61 = vld [vmem:[#allocation6 + $0xba8] sm:$0xff] }
  0xbc   :  { %3739 = vmatpush3.msra.mxu1 %v400_v63  ;;  %3705 = vmatprep.subr.mxu0 %v383_v0  ;;  %v433_v62 = vld [vmem:[#allocation6 + $0xa28] sm:$0xff]  ;;  %v448_v0 = vld [vmem:[#allocation6 + $0xaa0] sm:$0xff] }
  0xbd   :  { %3740 = vmatprep.subr.mxu1 %v415_v1  ;;  %3706 = vmatpush3.msra.mxu0 %v367_v2  ;;  %v465_v63 = vld [vmem:[#allocation6 + $0xb28] sm:$0xff]  ;;  %v480_v1 = vld [vmem:[#allocation6 + $0xba0] sm:$0xff] }
  0xbe   :  { %3741 = vmatpush3.msra.mxu1 %v399_v3  ;;  %3707 = vmatprep.subr.mxu0 %v382_v4  ;;  %v432_v2 = vld [vmem:[#allocation6 + $0xa20] sm:$0xff]  ;;  %v447_v4 = vld [vmem:[#allocation6 + $0xa98] sm:$0xff] }
  0xbf   :  { %3742 = vmatprep.subr.mxu1 %v414_v5  ;;  %3708 = vmatpush3.msra.mxu0 %v366_v6  ;;  %v464_v3 = vld [vmem:[#allocation6 + $0xb20] sm:$0xff]  ;;  %v479_v5 = vld [vmem:[#allocation6 + $0xb98] sm:$0xff] }
  0xc0   :  { %3743 = vmatpush3.msra.mxu1 %v398_v7  ;;  %3709 = vmatprep.subr.mxu0 %v381_v8  ;;  %v431_v6 = vld [vmem:[#allocation6 + $0xa18] sm:$0xff]  ;;  %v446_v8 = vld [vmem:[#allocation6 + $0xa90] sm:$0xff] }
  0xc1   :  { %3744 = vmatprep.subr.mxu1 %v413_v9  ;;  %3710 = vmatpush3.msra.mxu0 %v365_v10  ;;  %v463_v7 = vld [vmem:[#allocation6 + $0xb18] sm:$0xff]  ;;  %v478_v9 = vld [vmem:[#allocation6 + $0xb90] sm:$0xff] }
  0xc2   :  { %3745 = vmatpush3.msra.mxu1 %v397_v11  ;;  %3711 = vmatprep.subr.mxu0 %v380_v12  ;;  %v430_v10 = vld [vmem:[#allocation6 + $0xa10] sm:$0xff]  ;;  %v445_v12 = vld [vmem:[#allocation6 + $0xa88] sm:$0xff] }
  0xc3   :  { %3746 = vmatprep.subr.mxu1 %v412_v13  ;;  %3712 = vmatpush3.msra.mxu0 %v364_v14  ;;  %v462_v11 = vld [vmem:[#allocation6 + $0xb10] sm:$0xff]  ;;  %v477_v13 = vld [vmem:[#allocation6 + $0xb88] sm:$0xff] }
  0xc4   :  { %1756 = vmatprep.mubr.f32.mxu0 %v61_v15  ;;  %3747 = vmatpush3.msra.mxu1 %v396_v16  ;;  %v429_v14 = vld [vmem:[#allocation6 + $0xa08] sm:$0xff]  ;;  %v444_v16 = vld [vmem:[#allocation6 + $0xa80] sm:$0xff] }
  0xc5   :  { %1757 = vmatmul.mubr.f32.vlgmr.msra.gmra.mxu0 %v60_v17  ;;  %1826 = vmatprep.mubr.f32.mxu1 %v63_v18  ;;  %v461_v15 = vld [vmem:[#allocation6 + $0xb08] sm:$0xff]  ;;  %v476_v17 = vld [vmem:[#allocation6 + $0xb80] sm:$0xff] }
  0xc6   :  { %3751 = vmatprep.subr.mxu0 %v459_v19  ;;  %3786 = vmatprep.subr.mxu1 %v491_v20  ;;  %v428_v18 = vld [vmem:[#allocation6 + $0xa00] sm:$0xff]  ;;  %v65_v19 = vld [vmem:[#allocation3 + $0xa8] sm:$0xff] }
  0xc7   :  { %1827 = vmatmul.mubr.f32.vlgmr.msra.gmra.mxu1 %v62_v21  ;;  %3752 = vmatpush3.msra.mxu0 %v443_v22  ;;  %v460_v20 = vld [vmem:[#allocation6 + $0xb00] sm:$0xff]  ;;  %v67_v22 = vld [vmem:[#allocation3 + $0xb8] sm:$0xff] }
  0xc8   :  { %3787 = vmatpush3.msra.mxu1 %v475_v23  ;;  %3753 = vmatprep.subr.mxu0 %v458_v24  ;;  %v64_v21 = vld [vmem:[#allocation3 + $0xa0] sm:$0xff]  ;;  %v523_v23 = vld [vmem:[#allocation6 + $0xcf8] sm:$0xff] }
  0xc9   :  { %3788 = vmatprep.subr.mxu1 %v490_v25  ;;  %3754 = vmatpush3.msra.mxu0 %v442_v26  ;;  %v555_v24 = vld [vmem:[#allocation6 + $0xdf8] sm:$0xff]  ;;  %v66_v25 = vld [vmem:[#allocation3 + $0xb0] sm:$0xff] }
  0xca   :  { %3789 = vmatpush3.msra.mxu1 %v474_v27  ;;  %3755 = vmatprep.subr.mxu0 %v457_v28  ;;  %v507_v26 = vld [vmem:[#allocation6 + $0xc78] sm:$0xff]  ;;  %v522_v28 = vld [vmem:[#allocation6 + $0xcf0] sm:$0xff] }
  0xcb   :  { %3790 = vmatprep.subr.mxu1 %v489_v29  ;;  %3756 = vmatpush3.msra.mxu0 %v441_v30  ;;  %v539_v27 = vld [vmem:[#allocation6 + $0xd78] sm:$0xff]  ;;  %v554_v29 = vld [vmem:[#allocation6 + $0xdf0] sm:$0xff] }
  0xcc   :  { %3791 = vmatpush3.msra.mxu1 %v473_v31  ;;  %3757 = vmatprep.subr.mxu0 %v456_v32  ;;  %v506_v30 = vld [vmem:[#allocation6 + $0xc70] sm:$0xff]  ;;  %v521_v32 = vld [vmem:[#allocation6 + $0xce8] sm:$0xff] }
  0xcd   :  { %3792 = vmatprep.subr.mxu1 %v488_v33  ;;  %3758 = vmatpush3.msra.mxu0 %v440_v34  ;;  %v538_v31 = vld [vmem:[#allocation6 + $0xd70] sm:$0xff]  ;;  %v553_v33 = vld [vmem:[#allocation6 + $0xde8] sm:$0xff] }
  0xce   :  { %3793 = vmatpush3.msra.mxu1 %v472_v35  ;;  %3759 = vmatprep.subr.mxu0 %v455_v36  ;;  %v505_v34 = vld [vmem:[#allocation6 + $0xc68] sm:$0xff]  ;;  %v520_v36 = vld [vmem:[#allocation6 + $0xce0] sm:$0xff] }
  0xcf   :  { %3794 = vmatprep.subr.mxu1 %v487_v37  ;;  %3760 = vmatpush3.msra.mxu0 %v439_v38  ;;  %v537_v35 = vld [vmem:[#allocation6 + $0xd68] sm:$0xff]  ;;  %v552_v37 = vld [vmem:[#allocation6 + $0xde0] sm:$0xff] }
  0xd0   :  { %3795 = vmatpush3.msra.mxu1 %v471_v39  ;;  %3761 = vmatprep.subr.mxu0 %v454_v40  ;;  %v504_v38 = vld [vmem:[#allocation6 + $0xc60] sm:$0xff]  ;;  %v519_v40 = vld [vmem:[#allocation6 + $0xcd8] sm:$0xff] }
  0xd1   :  { %3796 = vmatprep.subr.mxu1 %v486_v41  ;;  %3762 = vmatpush3.msra.mxu0 %v438_v42  ;;  %v536_v39 = vld [vmem:[#allocation6 + $0xd60] sm:$0xff]  ;;  %v551_v41 = vld [vmem:[#allocation6 + $0xdd8] sm:$0xff] }
  0xd2   :  { %3797 = vmatpush3.msra.mxu1 %v470_v43  ;;  %3763 = vmatprep.subr.mxu0 %v453_v44  ;;  %v503_v42 = vld [vmem:[#allocation6 + $0xc58] sm:$0xff]  ;;  %v518_v44 = vld [vmem:[#allocation6 + $0xcd0] sm:$0xff] }
  0xd3   :  { %3798 = vmatprep.subr.mxu1 %v485_v45  ;;  %3764 = vmatpush3.msra.mxu0 %v437_v46  ;;  %v535_v43 = vld [vmem:[#allocation6 + $0xd58] sm:$0xff]  ;;  %v550_v45 = vld [vmem:[#allocation6 + $0xdd0] sm:$0xff] }
  0xd4   :  { %3799 = vmatpush3.msra.mxu1 %v469_v47  ;;  %3765 = vmatprep.subr.mxu0 %v452_v48  ;;  %v502_v46 = vld [vmem:[#allocation6 + $0xc50] sm:$0xff]  ;;  %v517_v48 = vld [vmem:[#allocation6 + $0xcc8] sm:$0xff] }
  0xd5   :  { %3800 = vmatprep.subr.mxu1 %v484_v49  ;;  %3766 = vmatpush3.msra.mxu0 %v436_v50  ;;  %v534_v47 = vld [vmem:[#allocation6 + $0xd50] sm:$0xff]  ;;  %v549_v49 = vld [vmem:[#allocation6 + $0xdc8] sm:$0xff] }
  0xd6   :  { %3801 = vmatpush3.msra.mxu1 %v468_v51  ;;  %3767 = vmatprep.subr.mxu0 %v451_v52  ;;  %v501_v50 = vld [vmem:[#allocation6 + $0xc48] sm:$0xff]  ;;  %v516_v52 = vld [vmem:[#allocation6 + $0xcc0] sm:$0xff] }
  0xd7   :  { %3802 = vmatprep.subr.mxu1 %v483_v53  ;;  %3768 = vmatpush3.msra.mxu0 %v435_v54  ;;  %v533_v51 = vld [vmem:[#allocation6 + $0xd48] sm:$0xff]  ;;  %v548_v53 = vld [vmem:[#allocation6 + $0xdc0] sm:$0xff] }
  0xd8   :  { %3803 = vmatpush3.msra.mxu1 %v467_v55  ;;  %3769 = vmatprep.subr.mxu0 %v450_v56  ;;  %v500_v54 = vld [vmem:[#allocation6 + $0xc40] sm:$0xff]  ;;  %v515_v56 = vld [vmem:[#allocation6 + $0xcb8] sm:$0xff] }
  0xd9   :  { %3804 = vmatprep.subr.mxu1 %v482_v57  ;;  %3770 = vmatpush3.msra.mxu0 %v434_v58  ;;  %v532_v55 = vld [vmem:[#allocation6 + $0xd40] sm:$0xff]  ;;  %v547_v57 = vld [vmem:[#allocation6 + $0xdb8] sm:$0xff] }
  0xda   :  { %3805 = vmatpush3.msra.mxu1 %v466_v59  ;;  %3771 = vmatprep.subr.mxu0 %v449_v60  ;;  %v499_v58 = vld [vmem:[#allocation6 + $0xc38] sm:$0xff]  ;;  %v514_v60 = vld [vmem:[#allocation6 + $0xcb0] sm:$0xff] }
  0xdb   :  { %3806 = vmatprep.subr.mxu1 %v481_v61  ;;  %3772 = vmatpush3.msra.mxu0 %v433_v62  ;;  %v531_v59 = vld [vmem:[#allocation6 + $0xd38] sm:$0xff]  ;;  %v546_v61 = vld [vmem:[#allocation6 + $0xdb0] sm:$0xff] }
  0xdc   :  { %3807 = vmatpush3.msra.mxu1 %v465_v63  ;;  %3773 = vmatprep.subr.mxu0 %v448_v0  ;;  %v498_v62 = vld [vmem:[#allocation6 + $0xc30] sm:$0xff]  ;;  %v513_v0 = vld [vmem:[#allocation6 + $0xca8] sm:$0xff] }
  0xdd   :  { %3808 = vmatprep.subr.mxu1 %v480_v1  ;;  %3774 = vmatpush3.msra.mxu0 %v432_v2  ;;  %v530_v63 = vld [vmem:[#allocation6 + $0xd30] sm:$0xff]  ;;  %v545_v1 = vld [vmem:[#allocation6 + $0xda8] sm:$0xff] }
  0xde   :  { %3809 = vmatpush3.msra.mxu1 %v464_v3  ;;  %3775 = vmatprep.subr.mxu0 %v447_v4  ;;  %v497_v2 = vld [vmem:[#allocation6 + $0xc28] sm:$0xff]  ;;  %v512_v4 = vld [vmem:[#allocation6 + $0xca0] sm:$0xff] }
  0xdf   :  { %3810 = vmatprep.subr.mxu1 %v479_v5  ;;  %3776 = vmatpush3.msra.mxu0 %v431_v6  ;;  %v529_v3 = vld [vmem:[#allocation6 + $0xd28] sm:$0xff]  ;;  %v544_v5 = vld [vmem:[#allocation6 + $0xda0] sm:$0xff] }
  0xe0   :  { %3811 = vmatpush3.msra.mxu1 %v463_v7  ;;  %3777 = vmatprep.subr.mxu0 %v446_v8  ;;  %v496_v6 = vld [vmem:[#allocation6 + $0xc20] sm:$0xff]  ;;  %v511_v8 = vld [vmem:[#allocation6 + $0xc98] sm:$0xff] }
  0xe1   :  { %3812 = vmatprep.subr.mxu1 %v478_v9  ;;  %3778 = vmatpush3.msra.mxu0 %v430_v10  ;;  %v528_v7 = vld [vmem:[#allocation6 + $0xd20] sm:$0xff]  ;;  %v543_v9 = vld [vmem:[#allocation6 + $0xd98] sm:$0xff] }
  0xe2   :  { %3813 = vmatpush3.msra.mxu1 %v462_v11  ;;  %3779 = vmatprep.subr.mxu0 %v445_v12  ;;  %v495_v10 = vld [vmem:[#allocation6 + $0xc18] sm:$0xff]  ;;  %v510_v12 = vld [vmem:[#allocation6 + $0xc90] sm:$0xff] }
  0xe3   :  { %3814 = vmatprep.subr.mxu1 %v477_v13  ;;  %3780 = vmatpush3.msra.mxu0 %v429_v14  ;;  %v527_v11 = vld [vmem:[#allocation6 + $0xd18] sm:$0xff]  ;;  %v542_v13 = vld [vmem:[#allocation6 + $0xd90] sm:$0xff] }
  0xe4   :  { %3815 = vmatpush3.msra.mxu1 %v461_v15  ;;  %3781 = vmatprep.subr.mxu0 %v444_v16  ;;  %v494_v14 = vld [vmem:[#allocation6 + $0xc10] sm:$0xff]  ;;  %v509_v16 = vld [vmem:[#allocation6 + $0xc88] sm:$0xff] }
  0xe5   :  { %3816 = vmatprep.subr.mxu1 %v476_v17  ;;  %3782 = vmatpush3.msra.mxu0 %v428_v18  ;;  %v526_v15 = vld [vmem:[#allocation6 + $0xd10] sm:$0xff]  ;;  %v541_v17 = vld [vmem:[#allocation6 + $0xd88] sm:$0xff] }
  0xe6   :  { %1896 = vmatprep.mubr.f32.mxu0 %v65_v19  ;;  %3817 = vmatpush3.msra.mxu1 %v460_v20  ;;  %v493_v18 = vld [vmem:[#allocation6 + $0xc08] sm:$0xff]  ;;  %v508_v20 = vld [vmem:[#allocation6 + $0xc80] sm:$0xff] }
  0xe7   :  { %1897 = vmatmul.mubr.f32.vlgmr.msra.gmra.mxu0 %v64_v21  ;;  %1966 = vmatprep.mubr.f32.mxu1 %v67_v22  ;;  %v525_v19 = vld [vmem:[#allocation6 + $0xd08] sm:$0xff]  ;;  %v540_v21 = vld [vmem:[#allocation6 + $0xd80] sm:$0xff] }
  0xe8   :  { %3821 = vmatprep.subr.mxu0 %v523_v23  ;;  %3856 = vmatprep.subr.mxu1 %v555_v24  ;;  %v492_v22 = vld [vmem:[#allocation6 + $0xc00] sm:$0xff]  ;;  %v69_v23 = vld [vmem:[#allocation3 + $0xc8] sm:$0xff] }
  0xe9   :  { %1967 = vmatmul.mubr.f32.vlgmr.msra.gmra.mxu1 %v66_v25  ;;  %3822 = vmatpush3.msra.mxu0 %v507_v26  ;;  %v524_v24 = vld [vmem:[#allocation6 + $0xd00] sm:$0xff]  ;;  %v71_v26 = vld [vmem:[#allocation3 + $0xd8] sm:$0xff] }
  0xea   :  { %3857 = vmatpush3.msra.mxu1 %v539_v27  ;;  %3823 = vmatprep.subr.mxu0 %v522_v28  ;;  %v68_v25 = vld [vmem:[#allocation3 + $0xc0] sm:$0xff]  ;;  %v587_v27 = vld [vmem:[#allocation6 + $0xef8] sm:$0xff] }
  0xeb   :  { %3858 = vmatprep.subr.mxu1 %v554_v29  ;;  %3824 = vmatpush3.msra.mxu0 %v506_v30  ;;  %v619_v28 = vld [vmem:[#allocation6 + $0xff8] sm:$0xff]  ;;  %v70_v29 = vld [vmem:[#allocation3 + $0xd0] sm:$0xff] }
  0xec   :  { %3859 = vmatpush3.msra.mxu1 %v538_v31  ;;  %3825 = vmatprep.subr.mxu0 %v521_v32  ;;  %v571_v30 = vld [vmem:[#allocation6 + $0xe78] sm:$0xff]  ;;  %v586_v32 = vld [vmem:[#allocation6 + $0xef0] sm:$0xff] }
  0xed   :  { %3860 = vmatprep.subr.mxu1 %v553_v33  ;;  %3826 = vmatpush3.msra.mxu0 %v505_v34  ;;  %v603_v31 = vld [vmem:[#allocation6 + $0xf78] sm:$0xff]  ;;  %v618_v33 = vld [vmem:[#allocation6 + $0xff0] sm:$0xff] }
  0xee   :  { %3861 = vmatpush3.msra.mxu1 %v537_v35  ;;  %3827 = vmatprep.subr.mxu0 %v520_v36  ;;  %v570_v34 = vld [vmem:[#allocation6 + $0xe70] sm:$0xff]  ;;  %v585_v36 = vld [vmem:[#allocation6 + $0xee8] sm:$0xff] }
  0xef   :  { %3862 = vmatprep.subr.mxu1 %v552_v37  ;;  %3828 = vmatpush3.msra.mxu0 %v504_v38  ;;  %v602_v35 = vld [vmem:[#allocation6 + $0xf70] sm:$0xff]  ;;  %v617_v37 = vld [vmem:[#allocation6 + $0xfe8] sm:$0xff] }
  0xf0   :  { %3863 = vmatpush3.msra.mxu1 %v536_v39  ;;  %3829 = vmatprep.subr.mxu0 %v519_v40  ;;  %v569_v38 = vld [vmem:[#allocation6 + $0xe68] sm:$0xff]  ;;  %v584_v40 = vld [vmem:[#allocation6 + $0xee0] sm:$0xff] }
  0xf1   :  { %3864 = vmatprep.subr.mxu1 %v551_v41  ;;  %3830 = vmatpush3.msra.mxu0 %v503_v42  ;;  %v601_v39 = vld [vmem:[#allocation6 + $0xf68] sm:$0xff]  ;;  %v616_v41 = vld [vmem:[#allocation6 + $0xfe0] sm:$0xff] }
  0xf2   :  { %3865 = vmatpush3.msra.mxu1 %v535_v43  ;;  %3831 = vmatprep.subr.mxu0 %v518_v44  ;;  %v568_v42 = vld [vmem:[#allocation6 + $0xe60] sm:$0xff]  ;;  %v583_v44 = vld [vmem:[#allocation6 + $0xed8] sm:$0xff] }
  0xf3   :  { %3866 = vmatprep.subr.mxu1 %v550_v45  ;;  %3832 = vmatpush3.msra.mxu0 %v502_v46  ;;  %v600_v43 = vld [vmem:[#allocation6 + $0xf60] sm:$0xff]  ;;  %v615_v45 = vld [vmem:[#allocation6 + $0xfd8] sm:$0xff] }
  0xf4   :  { %3867 = vmatpush3.msra.mxu1 %v534_v47  ;;  %3833 = vmatprep.subr.mxu0 %v517_v48  ;;  %v567_v46 = vld [vmem:[#allocation6 + $0xe58] sm:$0xff]  ;;  %v582_v48 = vld [vmem:[#allocation6 + $0xed0] sm:$0xff] }
  0xf5   :  { %3868 = vmatprep.subr.mxu1 %v549_v49  ;;  %3834 = vmatpush3.msra.mxu0 %v501_v50  ;;  %v599_v47 = vld [vmem:[#allocation6 + $0xf58] sm:$0xff]  ;;  %v614_v49 = vld [vmem:[#allocation6 + $0xfd0] sm:$0xff] }
  0xf6   :  { %3869 = vmatpush3.msra.mxu1 %v533_v51  ;;  %3835 = vmatprep.subr.mxu0 %v516_v52  ;;  %v566_v50 = vld [vmem:[#allocation6 + $0xe50] sm:$0xff]  ;;  %v581_v52 = vld [vmem:[#allocation6 + $0xec8] sm:$0xff] }
  0xf7   :  { %3870 = vmatprep.subr.mxu1 %v548_v53  ;;  %3836 = vmatpush3.msra.mxu0 %v500_v54  ;;  %v598_v51 = vld [vmem:[#allocation6 + $0xf50] sm:$0xff]  ;;  %v613_v53 = vld [vmem:[#allocation6 + $0xfc8] sm:$0xff] }
  0xf8   :  { %3871 = vmatpush3.msra.mxu1 %v532_v55  ;;  %3837 = vmatprep.subr.mxu0 %v515_v56  ;;  %v565_v54 = vld [vmem:[#allocation6 + $0xe48] sm:$0xff]  ;;  %v580_v56 = vld [vmem:[#allocation6 + $0xec0] sm:$0xff] }
  0xf9   :  { %3872 = vmatprep.subr.mxu1 %v547_v57  ;;  %3838 = vmatpush3.msra.mxu0 %v499_v58  ;;  %v597_v55 = vld [vmem:[#allocation6 + $0xf48] sm:$0xff]  ;;  %v612_v57 = vld [vmem:[#allocation6 + $0xfc0] sm:$0xff] }
  0xfa   :  { %3873 = vmatpush3.msra.mxu1 %v531_v59  ;;  %3839 = vmatprep.subr.mxu0 %v514_v60  ;;  %v564_v58 = vld [vmem:[#allocation6 + $0xe40] sm:$0xff]  ;;  %v579_v60 = vld [vmem:[#allocation6 + $0xeb8] sm:$0xff] }
  0xfb   :  { %3874 = vmatprep.subr.mxu1 %v546_v61  ;;  %3840 = vmatpush3.msra.mxu0 %v498_v62  ;;  %v596_v59 = vld [vmem:[#allocation6 + $0xf40] sm:$0xff]  ;;  %v611_v61 = vld [vmem:[#allocation6 + $0xfb8] sm:$0xff] }
  0xfc   :  { %3875 = vmatpush3.msra.mxu1 %v530_v63  ;;  %3841 = vmatprep.subr.mxu0 %v513_v0  ;;  %v563_v62 = vld [vmem:[#allocation6 + $0xe38] sm:$0xff]  ;;  %v578_v0 = vld [vmem:[#allocation6 + $0xeb0] sm:$0xff] }
  0xfd   :  { %3876 = vmatprep.subr.mxu1 %v545_v1  ;;  %3842 = vmatpush3.msra.mxu0 %v497_v2  ;;  %v595_v63 = vld [vmem:[#allocation6 + $0xf38] sm:$0xff]  ;;  %v610_v1 = vld [vmem:[#allocation6 + $0xfb0] sm:$0xff] }
  0xfe   :  { %3877 = vmatpush3.msra.mxu1 %v529_v3  ;;  %3843 = vmatprep.subr.mxu0 %v512_v4  ;;  %v562_v2 = vld [vmem:[#allocation6 + $0xe30] sm:$0xff]  ;;  %v577_v4 = vld [vmem:[#allocation6 + $0xea8] sm:$0xff] }
  0xff   :  { %3878 = vmatprep.subr.mxu1 %v544_v5  ;;  %3844 = vmatpush3.msra.mxu0 %v496_v6  ;;  %v594_v3 = vld [vmem:[#allocation6 + $0xf30] sm:$0xff]  ;;  %v609_v5 = vld [vmem:[#allocation6 + $0xfa8] sm:$0xff] }
 0x100   :  { %3879 = vmatpush3.msra.mxu1 %v528_v7  ;;  %3845 = vmatprep.subr.mxu0 %v511_v8  ;;  %v561_v6 = vld [vmem:[#allocation6 + $0xe28] sm:$0xff]  ;;  %v576_v8 = vld [vmem:[#allocation6 + $0xea0] sm:$0xff] }
 0x101   :  { %3880 = vmatprep.subr.mxu1 %v543_v9  ;;  %3846 = vmatpush3.msra.mxu0 %v495_v10  ;;  %v593_v7 = vld [vmem:[#allocation6 + $0xf28] sm:$0xff]  ;;  %v608_v9 = vld [vmem:[#allocation6 + $0xfa0] sm:$0xff] }
 0x102   :  { %3881 = vmatpush3.msra.mxu1 %v527_v11  ;;  %3847 = vmatprep.subr.mxu0 %v510_v12  ;;  %v560_v10 = vld [vmem:[#allocation6 + $0xe20] sm:$0xff]  ;;  %v575_v12 = vld [vmem:[#allocation6 + $0xe98] sm:$0xff] }
 0x103   :  { %3882 = vmatprep.subr.mxu1 %v542_v13  ;;  %3848 = vmatpush3.msra.mxu0 %v494_v14  ;;  %v592_v11 = vld [vmem:[#allocation6 + $0xf20] sm:$0xff]  ;;  %v607_v13 = vld [vmem:[#allocation6 + $0xf98] sm:$0xff] }
 0x104   :  { %3883 = vmatpush3.msra.mxu1 %v526_v15  ;;  %3849 = vmatprep.subr.mxu0 %v509_v16  ;;  %v559_v14 = vld [vmem:[#allocation6 + $0xe18] sm:$0xff]  ;;  %v574_v16 = vld [vmem:[#allocation6 + $0xe90] sm:$0xff] }
 0x105   :  { %3884 = vmatprep.subr.mxu1 %v541_v17  ;;  %3850 = vmatpush3.msra.mxu0 %v493_v18  ;;  %v591_v15 = vld [vmem:[#allocation6 + $0xf18] sm:$0xff]  ;;  %v606_v17 = vld [vmem:[#allocation6 + $0xf90] sm:$0xff] }
 0x106   :  { %3885 = vmatpush3.msra.mxu1 %v525_v19  ;;  %3851 = vmatprep.subr.mxu0 %v508_v20  ;;  %v558_v18 = vld [vmem:[#allocation6 + $0xe10] sm:$0xff]  ;;  %v573_v20 = vld [vmem:[#allocation6 + $0xe88] sm:$0xff] }
 0x107   :  { %3886 = vmatprep.subr.mxu1 %v540_v21  ;;  %3852 = vmatpush3.msra.mxu0 %v492_v22  ;;  %v590_v19 = vld [vmem:[#allocation6 + $0xf10] sm:$0xff]  ;;  %v605_v21 = vld [vmem:[#allocation6 + $0xf88] sm:$0xff] }
 0x108   :  { %2036 = vmatprep.mubr.f32.mxu0 %v69_v23  ;;  %3887 = vmatpush3.msra.mxu1 %v524_v24  ;;  %v557_v22 = vld [vmem:[#allocation6 + $0xe08] sm:$0xff]  ;;  %v572_v24 = vld [vmem:[#allocation6 + $0xe80] sm:$0xff] }
 0x109   :  { %2037 = vmatmul.mubr.f32.vlgmr.msra.gmra.mxu0 %v68_v25  ;;  %2106 = vmatprep.mubr.f32.mxu1 %v71_v26  ;;  %v589_v23 = vld [vmem:[#allocation6 + $0xf08] sm:$0xff]  ;;  %v604_v25 = vld [vmem:[#allocation6 + $0xf80] sm:$0xff] }
 0x10a   :  { %3891 = vmatprep.subr.mxu0 %v587_v27  ;;  %3926 = vmatprep.subr.mxu1 %v619_v28  ;;  %v556_v26 = vld [vmem:[#allocation6 + $0xe00] sm:$0xff]  ;;  %v73_v27 = vld [vmem:[#allocation3 + $0xe8] sm:$0xff] }
 0x10b   :  { %2107 = vmatmul.mubr.f32.vlgmr.msra.gmra.mxu1 %v70_v29  ;;  %3892 = vmatpush3.msra.mxu0 %v571_v30  ;;  %v588_v28 = vld [vmem:[#allocation6 + $0xf00] sm:$0xff]  ;;  %v75_v30 = vld [vmem:[#allocation3 + $0xf8] sm:$0xff] }
 0x10c   :  { %3927 = vmatpush3.msra.mxu1 %v603_v31  ;;  %3893 = vmatprep.subr.mxu0 %v586_v32  ;;  %v72_v29 = vld [vmem:[#allocation3 + $0xe0] sm:$0xff]  ;;  %v651_v31 = vld [vmem:[#allocation6 + $0x10f8] sm:$0xff] }
 0x10d   :  { %3928 = vmatprep.subr.mxu1 %v618_v33  ;;  %3894 = vmatpush3.msra.mxu0 %v570_v34  ;;  %v683_v32 = vld [vmem:[#allocation6 + $0x11f8] sm:$0xff]  ;;  %v74_v33 = vld [vmem:[#allocation3 + $0xf0] sm:$0xff] }
 0x10e   :  { %3929 = vmatpush3.msra.mxu1 %v602_v35  ;;  %3895 = vmatprep.subr.mxu0 %v585_v36  ;;  %v635_v34 = vld [vmem:[#allocation6 + $0x1078] sm:$0xff]  ;;  %v650_v36 = vld [vmem:[#allocation6 + $0x10f0] sm:$0xff] }
 0x10f   :  { %3930 = vmatprep.subr.mxu1 %v617_v37  ;;  %3896 = vmatpush3.msra.mxu0 %v569_v38  ;;  %v667_v35 = vld [vmem:[#allocation6 + $0x1178] sm:$0xff]  ;;  %v682_v37 = vld [vmem:[#allocation6 + $0x11f0] sm:$0xff] }
 0x110   :  { %3931 = vmatpush3.msra.mxu1 %v601_v39  ;;  %3897 = vmatprep.subr.mxu0 %v584_v40  ;;  %v634_v38 = vld [vmem:[#allocation6 + $0x1070] sm:$0xff]  ;;  %v649_v40 = vld [vmem:[#allocation6 + $0x10e8] sm:$0xff] }
 0x111   :  { %3932 = vmatprep.subr.mxu1 %v616_v41  ;;  %3898 = vmatpush3.msra.mxu0 %v568_v42  ;;  %v666_v39 = vld [vmem:[#allocation6 + $0x1170] sm:$0xff]  ;;  %v681_v41 = vld [vmem:[#allocation6 + $0x11e8] sm:$0xff] }
 0x112   :  { %3933 = vmatpush3.msra.mxu1 %v600_v43  ;;  %3899 = vmatprep.subr.mxu0 %v583_v44  ;;  %v633_v42 = vld [vmem:[#allocation6 + $0x1068] sm:$0xff]  ;;  %v648_v44 = vld [vmem:[#allocation6 + $0x10e0] sm:$0xff] }
 0x113   :  { %3934 = vmatprep.subr.mxu1 %v615_v45  ;;  %3900 = vmatpush3.msra.mxu0 %v567_v46  ;;  %v665_v43 = vld [vmem:[#allocation6 + $0x1168] sm:$0xff]  ;;  %v680_v45 = vld [vmem:[#allocation6 + $0x11e0] sm:$0xff] }
 0x114   :  { %3935 = vmatpush3.msra.mxu1 %v599_v47  ;;  %3901 = vmatprep.subr.mxu0 %v582_v48  ;;  %v632_v46 = vld [vmem:[#allocation6 + $0x1060] sm:$0xff]  ;;  %v647_v48 = vld [vmem:[#allocation6 + $0x10d8] sm:$0xff] }
 0x115   :  { %3936 = vmatprep.subr.mxu1 %v614_v49  ;;  %3902 = vmatpush3.msra.mxu0 %v566_v50  ;;  %v664_v47 = vld [vmem:[#allocation6 + $0x1160] sm:$0xff]  ;;  %v679_v49 = vld [vmem:[#allocation6 + $0x11d8] sm:$0xff] }
 0x116   :  { %3937 = vmatpush3.msra.mxu1 %v598_v51  ;;  %3903 = vmatprep.subr.mxu0 %v581_v52  ;;  %v631_v50 = vld [vmem:[#allocation6 + $0x1058] sm:$0xff]  ;;  %v646_v52 = vld [vmem:[#allocation6 + $0x10d0] sm:$0xff] }
 0x117   :  { %3938 = vmatprep.subr.mxu1 %v613_v53  ;;  %3904 = vmatpush3.msra.mxu0 %v565_v54  ;;  %v663_v51 = vld [vmem:[#allocation6 + $0x1158] sm:$0xff]  ;;  %v678_v53 = vld [vmem:[#allocation6 + $0x11d0] sm:$0xff] }
 0x118   :  { %3939 = vmatpush3.msra.mxu1 %v597_v55  ;;  %3905 = vmatprep.subr.mxu0 %v580_v56  ;;  %v630_v54 = vld [vmem:[#allocation6 + $0x1050] sm:$0xff]  ;;  %v645_v56 = vld [vmem:[#allocation6 + $0x10c8] sm:$0xff] }
 0x119   :  { %3940 = vmatprep.subr.mxu1 %v612_v57  ;;  %3906 = vmatpush3.msra.mxu0 %v564_v58  ;;  %v662_v55 = vld [vmem:[#allocation6 + $0x1150] sm:$0xff]  ;;  %v677_v57 = vld [vmem:[#allocation6 + $0x11c8] sm:$0xff] }
 0x11a   :  { %3941 = vmatpush3.msra.mxu1 %v596_v59  ;;  %3907 = vmatprep.subr.mxu0 %v579_v60  ;;  %v629_v58 = vld [vmem:[#allocation6 + $0x1048] sm:$0xff]  ;;  %v644_v60 = vld [vmem:[#allocation6 + $0x10c0] sm:$0xff] }
 0x11b   :  { %3942 = vmatprep.subr.mxu1 %v611_v61  ;;  %3908 = vmatpush3.msra.mxu0 %v563_v62  ;;  %v661_v59 = vld [vmem:[#allocation6 + $0x1148] sm:$0xff]  ;;  %v676_v61 = vld [vmem:[#allocation6 + $0x11c0] sm:$0xff] }
 0x11c   :  { %3943 = vmatpush3.msra.mxu1 %v595_v63  ;;  %3909 = vmatprep.subr.mxu0 %v578_v0  ;;  %v628_v62 = vld [vmem:[#allocation6 + $0x1040] sm:$0xff]  ;;  %v643_v0 = vld [vmem:[#allocation6 + $0x10b8] sm:$0xff] }
 0x11d   :  { %3944 = vmatprep.subr.mxu1 %v610_v1  ;;  %3910 = vmatpush3.msra.mxu0 %v562_v2  ;;  %v660_v63 = vld [vmem:[#allocation6 + $0x1140] sm:$0xff]  ;;  %v675_v1 = vld [vmem:[#allocation6 + $0x11b8] sm:$0xff] }
 0x11e   :  { %3945 = vmatpush3.msra.mxu1 %v594_v3  ;;  %3911 = vmatprep.subr.mxu0 %v577_v4  ;;  %v627_v2 = vld [vmem:[#allocation6 + $0x1038] sm:$0xff]  ;;  %v642_v4 = vld [vmem:[#allocation6 + $0x10b0] sm:$0xff] }
 0x11f   :  { %3946 = vmatprep.subr.mxu1 %v609_v5  ;;  %3912 = vmatpush3.msra.mxu0 %v561_v6  ;;  %v659_v3 = vld [vmem:[#allocation6 + $0x1138] sm:$0xff]  ;;  %v674_v5 = vld [vmem:[#allocation6 + $0x11b0] sm:$0xff] }
 0x120   :  { %3947 = vmatpush3.msra.mxu1 %v593_v7  ;;  %3913 = vmatprep.subr.mxu0 %v576_v8  ;;  %v626_v6 = vld [vmem:[#allocation6 + $0x1030] sm:$0xff]  ;;  %v641_v8 = vld [vmem:[#allocation6 + $0x10a8] sm:$0xff] }
 0x121   :  { %3948 = vmatprep.subr.mxu1 %v608_v9  ;;  %3914 = vmatpush3.msra.mxu0 %v560_v10  ;;  %v658_v7 = vld [vmem:[#allocation6 + $0x1130] sm:$0xff]  ;;  %v673_v9 = vld [vmem:[#allocation6 + $0x11a8] sm:$0xff] }
 0x122   :  { %3949 = vmatpush3.msra.mxu1 %v592_v11  ;;  %3915 = vmatprep.subr.mxu0 %v575_v12  ;;  %v625_v10 = vld [vmem:[#allocation6 + $0x1028] sm:$0xff]  ;;  %v640_v12 = vld [vmem:[#allocation6 + $0x10a0] sm:$0xff] }
 0x123   :  { %3950 = vmatprep.subr.mxu1 %v607_v13  ;;  %3916 = vmatpush3.msra.mxu0 %v559_v14  ;;  %v657_v11 = vld [vmem:[#allocation6 + $0x1128] sm:$0xff]  ;;  %v672_v13 = vld [vmem:[#allocation6 + $0x11a0] sm:$0xff] }
 0x124   :  { %3951 = vmatpush3.msra.mxu1 %v591_v15  ;;  %3917 = vmatprep.subr.mxu0 %v574_v16  ;;  %v624_v14 = vld [vmem:[#allocation6 + $0x1020] sm:$0xff]  ;;  %v639_v16 = vld [vmem:[#allocation6 + $0x1098] sm:$0xff] }
 0x125   :  { %3952 = vmatprep.subr.mxu1 %v606_v17  ;;  %3918 = vmatpush3.msra.mxu0 %v558_v18  ;;  %v656_v15 = vld [vmem:[#allocation6 + $0x1120] sm:$0xff]  ;;  %v671_v17 = vld [vmem:[#allocation6 + $0x1198] sm:$0xff] }
 0x126   :  { %3953 = vmatpush3.msra.mxu1 %v590_v19  ;;  %3919 = vmatprep.subr.mxu0 %v573_v20  ;;  %v623_v18 = vld [vmem:[#allocation6 + $0x1018] sm:$0xff]  ;;  %v638_v20 = vld [vmem:[#allocation6 + $0x1090] sm:$0xff] }
 0x127   :  { %3954 = vmatprep.subr.mxu1 %v605_v21  ;;  %3920 = vmatpush3.msra.mxu0 %v557_v22  ;;  %v655_v19 = vld [vmem:[#allocation6 + $0x1118] sm:$0xff]  ;;  %v670_v21 = vld [vmem:[#allocation6 + $0x1190] sm:$0xff] }
 0x128   :  { %3955 = vmatpush3.msra.mxu1 %v589_v23  ;;  %3921 = vmatprep.subr.mxu0 %v572_v24  ;;  %v622_v22 = vld [vmem:[#allocation6 + $0x1010] sm:$0xff]  ;;  %v637_v24 = vld [vmem:[#allocation6 + $0x1088] sm:$0xff] }
 0x129   :  { %3956 = vmatprep.subr.mxu1 %v604_v25  ;;  %3922 = vmatpush3.msra.mxu0 %v556_v26  ;;  %v654_v23 = vld [vmem:[#allocation6 + $0x1110] sm:$0xff]  ;;  %v669_v25 = vld [vmem:[#allocation6 + $0x1188] sm:$0xff] }
 0x12a   :  { %2176 = vmatprep.mubr.f32.mxu0 %v73_v27  ;;  %3957 = vmatpush3.msra.mxu1 %v588_v28  ;;  %v621_v26 = vld [vmem:[#allocation6 + $0x1008] sm:$0xff]  ;;  %v636_v28 = vld [vmem:[#allocation6 + $0x1080] sm:$0xff] }
 0x12b   :  { %2177 = vmatmul.mubr.f32.vlgmr.msra.gmra.mxu0 %v72_v29  ;;  %2246 = vmatprep.mubr.f32.mxu1 %v75_v30  ;;  %v653_v27 = vld [vmem:[#allocation6 + $0x1108] sm:$0xff]  ;;  %v668_v29 = vld [vmem:[#allocation6 + $0x1180] sm:$0xff] }
 0x12c   :  { %3961 = vmatprep.subr.mxu0 %v651_v31  ;;  %3996 = vmatprep.subr.mxu1 %v683_v32  ;;  %v620_v30 = vld [vmem:[#allocation6 + $0x1000] sm:$0xff]  ;;  %v77_v31 = vld [vmem:[#allocation3 + $0x108] sm:$0xff] }
 0x12d   :  { %2247 = vmatmul.mubr.f32.vlgmr.msra.gmra.mxu1 %v74_v33  ;;  %3962 = vmatpush3.msra.mxu0 %v635_v34  ;;  %v652_v32 = vld [vmem:[#allocation6 + $0x1100] sm:$0xff]  ;;  %v79_v34 = vld [vmem:[#allocation3 + $0x118] sm:$0xff] }
 0x12e   :  { %3997 = vmatpush3.msra.mxu1 %v667_v35  ;;  %3963 = vmatprep.subr.mxu0 %v650_v36  ;;  %v76_v33 = vld [vmem:[#allocation3 + $0x100] sm:$0xff]  ;;  %v715_v35 = vld [vmem:[#allocation6 + $0x12f8] sm:$0xff] }
 0x12f   :  { %3998 = vmatprep.subr.mxu1 %v682_v37  ;;  %3964 = vmatpush3.msra.mxu0 %v634_v38  ;;  %v747_v36 = vld [vmem:[#allocation6 + $0x13f8] sm:$0xff]  ;;  %v78_v37 = vld [vmem:[#allocation3 + $0x110] sm:$0xff] }
 0x130   :  { %3999 = vmatpush3.msra.mxu1 %v666_v39  ;;  %3965 = vmatprep.subr.mxu0 %v649_v40  ;;  %v699_v38 = vld [vmem:[#allocation6 + $0x1278] sm:$0xff]  ;;  %v714_v40 = vld [vmem:[#allocation6 + $0x12f0] sm:$0xff] }
 0x131   :  { %4000 = vmatprep.subr.mxu1 %v681_v41  ;;  %3966 = vmatpush3.msra.mxu0 %v633_v42  ;;  %v731_v39 = vld [vmem:[#allocation6 + $0x1378] sm:$0xff]  ;;  %v746_v41 = vld [vmem:[#allocation6 + $0x13f0] sm:$0xff] }
 0x132   :  { %4001 = vmatpush3.msra.mxu1 %v665_v43  ;;  %3967 = vmatprep.subr.mxu0 %v648_v44  ;;  %v698_v42 = vld [vmem:[#allocation6 + $0x1270] sm:$0xff]  ;;  %v713_v44 = vld [vmem:[#allocation6 + $0x12e8] sm:$0xff] }
 0x133   :  { %4002 = vmatprep.subr.mxu1 %v680_v45  ;;  %3968 = vmatpush3.msra.mxu0 %v632_v46  ;;  %v730_v43 = vld [vmem:[#allocation6 + $0x1370] sm:$0xff]  ;;  %v745_v45 = vld [vmem:[#allocation6 + $0x13e8] sm:$0xff] }
 0x134   :  { %4003 = vmatpush3.msra.mxu1 %v664_v47  ;;  %3969 = vmatprep.subr.mxu0 %v647_v48  ;;  %v697_v46 = vld [vmem:[#allocation6 + $0x1268] sm:$0xff]  ;;  %v712_v48 = vld [vmem:[#allocation6 + $0x12e0] sm:$0xff] }
 0x135   :  { %4004 = vmatprep.subr.mxu1 %v679_v49  ;;  %3970 = vmatpush3.msra.mxu0 %v631_v50  ;;  %v729_v47 = vld [vmem:[#allocation6 + $0x1368] sm:$0xff]  ;;  %v744_v49 = vld [vmem:[#allocation6 + $0x13e0] sm:$0xff] }
 0x136   :  { %4005 = vmatpush3.msra.mxu1 %v663_v51  ;;  %3971 = vmatprep.subr.mxu0 %v646_v52  ;;  %v696_v50 = vld [vmem:[#allocation6 + $0x1260] sm:$0xff]  ;;  %v711_v52 = vld [vmem:[#allocation6 + $0x12d8] sm:$0xff] }
 0x137   :  { %4006 = vmatprep.subr.mxu1 %v678_v53  ;;  %3972 = vmatpush3.msra.mxu0 %v630_v54  ;;  %v728_v51 = vld [vmem:[#allocation6 + $0x1360] sm:$0xff]  ;;  %v743_v53 = vld [vmem:[#allocation6 + $0x13d8] sm:$0xff] }
 0x138   :  { %4007 = vmatpush3.msra.mxu1 %v662_v55  ;;  %3973 = vmatprep.subr.mxu0 %v645_v56  ;;  %v695_v54 = vld [vmem:[#allocation6 + $0x1258] sm:$0xff]  ;;  %v710_v56 = vld [vmem:[#allocation6 + $0x12d0] sm:$0xff] }
 0x139   :  { %4008 = vmatprep.subr.mxu1 %v677_v57  ;;  %3974 = vmatpush3.msra.mxu0 %v629_v58  ;;  %v727_v55 = vld [vmem:[#allocation6 + $0x1358] sm:$0xff]  ;;  %v742_v57 = vld [vmem:[#allocation6 + $0x13d0] sm:$0xff] }
 0x13a   :  { %4009 = vmatpush3.msra.mxu1 %v661_v59  ;;  %3975 = vmatprep.subr.mxu0 %v644_v60  ;;  %v694_v58 = vld [vmem:[#allocation6 + $0x1250] sm:$0xff]  ;;  %v709_v60 = vld [vmem:[#allocation6 + $0x12c8] sm:$0xff] }
 0x13b   :  { %4010 = vmatprep.subr.mxu1 %v676_v61  ;;  %3976 = vmatpush3.msra.mxu0 %v628_v62  ;;  %v726_v59 = vld [vmem:[#allocation6 + $0x1350] sm:$0xff]  ;;  %v741_v61 = vld [vmem:[#allocation6 + $0x13c8] sm:$0xff] }
 0x13c   :  { %4011 = vmatpush3.msra.mxu1 %v660_v63  ;;  %3977 = vmatprep.subr.mxu0 %v643_v0  ;;  %v693_v62 = vld [vmem:[#allocation6 + $0x1248] sm:$0xff]  ;;  %v708_v0 = vld [vmem:[#allocation6 + $0x12c0] sm:$0xff] }
 0x13d   :  { %4012 = vmatprep.subr.mxu1 %v675_v1  ;;  %3978 = vmatpush3.msra.mxu0 %v627_v2  ;;  %v725_v63 = vld [vmem:[#allocation6 + $0x1348] sm:$0xff]  ;;  %v740_v1 = vld [vmem:[#allocation6 + $0x13c0] sm:$0xff] }
 0x13e   :  { %4013 = vmatpush3.msra.mxu1 %v659_v3  ;;  %3979 = vmatprep.subr.mxu0 %v642_v4  ;;  %v692_v2 = vld [vmem:[#allocation6 + $0x1240] sm:$0xff]  ;;  %v707_v4 = vld [vmem:[#allocation6 + $0x12b8] sm:$0xff] }
 0x13f   :  { %4014 = vmatprep.subr.mxu1 %v674_v5  ;;  %3980 = vmatpush3.msra.mxu0 %v626_v6  ;;  %v724_v3 = vld [vmem:[#allocation6 + $0x1340] sm:$0xff]  ;;  %v739_v5 = vld [vmem:[#allocation6 + $0x13b8] sm:$0xff] }
 0x140   :  { %4015 = vmatpush3.msra.mxu1 %v658_v7  ;;  %3981 = vmatprep.subr.mxu0 %v641_v8  ;;  %v691_v6 = vld [vmem:[#allocation6 + $0x1238] sm:$0xff]  ;;  %v706_v8 = vld [vmem:[#allocation6 + $0x12b0] sm:$0xff] }
 0x141   :  { %4016 = vmatprep.subr.mxu1 %v673_v9  ;;  %3982 = vmatpush3.msra.mxu0 %v625_v10  ;;  %v723_v7 = vld [vmem:[#allocation6 + $0x1338] sm:$0xff]  ;;  %v738_v9 = vld [vmem:[#allocation6 + $0x13b0] sm:$0xff] }
 0x142   :  { %4017 = vmatpush3.msra.mxu1 %v657_v11  ;;  %3983 = vmatprep.subr.mxu0 %v640_v12  ;;  %v690_v10 = vld [vmem:[#allocation6 + $0x1230] sm:$0xff]  ;;  %v705_v12 = vld [vmem:[#allocation6 + $0x12a8] sm:$0xff] }
 0x143   :  { %4018 = vmatprep.subr.mxu1 %v672_v13  ;;  %3984 = vmatpush3.msra.mxu0 %v624_v14  ;;  %v722_v11 = vld [vmem:[#allocation6 + $0x1330] sm:$0xff]  ;;  %v737_v13 = vld [vmem:[#allocation6 + $0x13a8] sm:$0xff] }
 0x144   :  { %4019 = vmatpush3.msra.mxu1 %v656_v15  ;;  %3985 = vmatprep.subr.mxu0 %v639_v16  ;;  %v689_v14 = vld [vmem:[#allocation6 + $0x1228] sm:$0xff]  ;;  %v704_v16 = vld [vmem:[#allocation6 + $0x12a0] sm:$0xff] }
 0x145   :  { %4020 = vmatprep.subr.mxu1 %v671_v17  ;;  %3986 = vmatpush3.msra.mxu0 %v623_v18  ;;  %v721_v15 = vld [vmem:[#allocation6 + $0x1328] sm:$0xff]  ;;  %v736_v17 = vld [vmem:[#allocation6 + $0x13a0] sm:$0xff] }
 0x146   :  { %4021 = vmatpush3.msra.mxu1 %v655_v19  ;;  %3987 = vmatprep.subr.mxu0 %v638_v20  ;;  %v688_v18 = vld [vmem:[#allocation6 + $0x1220] sm:$0xff]  ;;  %v703_v20 = vld [vmem:[#allocation6 + $0x1298] sm:$0xff] }
 0x147   :  { %4022 = vmatprep.subr.mxu1 %v670_v21  ;;  %3988 = vmatpush3.msra.mxu0 %v622_v22  ;;  %v720_v19 = vld [vmem:[#allocation6 + $0x1320] sm:$0xff]  ;;  %v735_v21 = vld [vmem:[#allocation6 + $0x1398] sm:$0xff] }
 0x148   :  { %4023 = vmatpush3.msra.mxu1 %v654_v23  ;;  %3989 = vmatprep.subr.mxu0 %v637_v24  ;;  %v687_v22 = vld [vmem:[#allocation6 + $0x1218] sm:$0xff]  ;;  %v702_v24 = vld [vmem:[#allocation6 + $0x1290] sm:$0xff] }
 0x149   :  { %4024 = vmatprep.subr.mxu1 %v669_v25  ;;  %3990 = vmatpush3.msra.mxu0 %v621_v26  ;;  %v719_v23 = vld [vmem:[#allocation6 + $0x1318] sm:$0xff]  ;;  %v734_v25 = vld [vmem:[#allocation6 + $0x1390] sm:$0xff] }
 0x14a   :  { %4025 = vmatpush3.msra.mxu1 %v653_v27  ;;  %3991 = vmatprep.subr.mxu0 %v636_v28  ;;  %v686_v26 = vld [vmem:[#allocation6 + $0x1210] sm:$0xff]  ;;  %v701_v28 = vld [vmem:[#allocation6 + $0x1288] sm:$0xff] }
 0x14b   :  { %4026 = vmatprep.subr.mxu1 %v668_v29  ;;  %3992 = vmatpush3.msra.mxu0 %v620_v30  ;;  %v718_v27 = vld [vmem:[#allocation6 + $0x1310] sm:$0xff]  ;;  %v733_v29 = vld [vmem:[#allocation6 + $0x1388] sm:$0xff] }
 0x14c   :  { %2316 = vmatprep.mubr.f32.mxu0 %v77_v31  ;;  %4027 = vmatpush3.msra.mxu1 %v652_v32  ;;  %v685_v30 = vld [vmem:[#allocation6 + $0x1208] sm:$0xff]  ;;  %v700_v32 = vld [vmem:[#allocation6 + $0x1280] sm:$0xff] }
 0x14d   :  { %2317 = vmatmul.mubr.f32.vlgmr.msra.gmra.mxu0 %v76_v33  ;;  %2386 = vmatprep.mubr.f32.mxu1 %v79_v34  ;;  %v717_v31 = vld [vmem:[#allocation6 + $0x1308] sm:$0xff]  ;;  %v732_v33 = vld [vmem:[#allocation6 + $0x1380] sm:$0xff] }
 0x14e   :  { %4031 = vmatprep.subr.mxu0 %v715_v35  ;;  %4066 = vmatprep.subr.mxu1 %v747_v36  ;;  %v684_v34 = vld [vmem:[#allocation6 + $0x1200] sm:$0xff]  ;;  %v81_v35 = vld [vmem:[#allocation3 + $0x128] sm:$0xff] }
 0x14f   :  { %2387 = vmatmul.mubr.f32.vlgmr.msra.gmra.mxu1 %v78_v37  ;;  %4032 = vmatpush3.msra.mxu0 %v699_v38  ;;  %v716_v36 = vld [vmem:[#allocation6 + $0x1300] sm:$0xff]  ;;  %v83_v38 = vld [vmem:[#allocation3 + $0x138] sm:$0xff] }
 0x150   :  { %4067 = vmatpush3.msra.mxu1 %v731_v39  ;;  %4033 = vmatprep.subr.mxu0 %v714_v40  ;;  %v80_v37 = vld [vmem:[#allocation3 + $0x120] sm:$0xff]  ;;  %v779_v39 = vld [vmem:[#allocation6 + $0x14f8] sm:$0xff] }
 0x151   :  { %4068 = vmatprep.subr.mxu1 %v746_v41  ;;  %4034 = vmatpush3.msra.mxu0 %v698_v42  ;;  %v811_v40 = vld [vmem:[#allocation6 + $0x15f8] sm:$0xff]  ;;  %v82_v41 = vld [vmem:[#allocation3 + $0x130] sm:$0xff] }
 0x152   :  { %4069 = vmatpush3.msra.mxu1 %v730_v43  ;;  %4035 = vmatprep.subr.mxu0 %v713_v44  ;;  %v763_v42 = vld [vmem:[#allocation6 + $0x1478] sm:$0xff]  ;;  %v778_v44 = vld [vmem:[#allocation6 + $0x14f0] sm:$0xff] }
 0x153   :  { %4070 = vmatprep.subr.mxu1 %v745_v45  ;;  %4036 = vmatpush3.msra.mxu0 %v697_v46  ;;  %v795_v43 = vld [vmem:[#allocation6 + $0x1578] sm:$0xff]  ;;  %v810_v45 = vld [vmem:[#allocation6 + $0x15f0] sm:$0xff] }
 0x154   :  { %4071 = vmatpush3.msra.mxu1 %v729_v47  ;;  %4037 = vmatprep.subr.mxu0 %v712_v48  ;;  %v762_v46 = vld [vmem:[#allocation6 + $0x1470] sm:$0xff]  ;;  %v777_v48 = vld [vmem:[#allocation6 + $0x14e8] sm:$0xff] }
 0x155   :  { %4072 = vmatprep.subr.mxu1 %v744_v49  ;;  %4038 = vmatpush3.msra.mxu0 %v696_v50  ;;  %v794_v47 = vld [vmem:[#allocation6 + $0x1570] sm:$0xff]  ;;  %v809_v49 = vld [vmem:[#allocation6 + $0x15e8] sm:$0xff] }
 0x156   :  { %4073 = vmatpush3.msra.mxu1 %v728_v51  ;;  %4039 = vmatprep.subr.mxu0 %v711_v52  ;;  %v761_v50 = vld [vmem:[#allocation6 + $0x1468] sm:$0xff]  ;;  %v776_v52 = vld [vmem:[#allocation6 + $0x14e0] sm:$0xff] }
 0x157   :  { %4074 = vmatprep.subr.mxu1 %v743_v53  ;;  %4040 = vmatpush3.msra.mxu0 %v695_v54  ;;  %v793_v51 = vld [vmem:[#allocation6 + $0x1568] sm:$0xff]  ;;  %v808_v53 = vld [vmem:[#allocation6 + $0x15e0] sm:$0xff] }
 0x158   :  { %4075 = vmatpush3.msra.mxu1 %v727_v55  ;;  %4041 = vmatprep.subr.mxu0 %v710_v56  ;;  %v760_v54 = vld [vmem:[#allocation6 + $0x1460] sm:$0xff]  ;;  %v775_v56 = vld [vmem:[#allocation6 + $0x14d8] sm:$0xff] }
 0x159   :  { %4076 = vmatprep.subr.mxu1 %v742_v57  ;;  %4042 = vmatpush3.msra.mxu0 %v694_v58  ;;  %v792_v55 = vld [vmem:[#allocation6 + $0x1560] sm:$0xff]  ;;  %v807_v57 = vld [vmem:[#allocation6 + $0x15d8] sm:$0xff] }
 0x15a   :  { %4077 = vmatpush3.msra.mxu1 %v726_v59  ;;  %4043 = vmatprep.subr.mxu0 %v709_v60  ;;  %v759_v58 = vld [vmem:[#allocation6 + $0x1458] sm:$0xff]  ;;  %v774_v60 = vld [vmem:[#allocation6 + $0x14d0] sm:$0xff] }
 0x15b   :  { %4078 = vmatprep.subr.mxu1 %v741_v61  ;;  %4044 = vmatpush3.msra.mxu0 %v693_v62  ;;  %v791_v59 = vld [vmem:[#allocation6 + $0x1558] sm:$0xff]  ;;  %v806_v61 = vld [vmem:[#allocation6 + $0x15d0] sm:$0xff] }
 0x15c   :  { %4079 = vmatpush3.msra.mxu1 %v725_v63  ;;  %4045 = vmatprep.subr.mxu0 %v708_v0  ;;  %v758_v62 = vld [vmem:[#allocation6 + $0x1450] sm:$0xff]  ;;  %v773_v0 = vld [vmem:[#allocation6 + $0x14c8] sm:$0xff] }
 0x15d   :  { %4080 = vmatprep.subr.mxu1 %v740_v1  ;;  %4046 = vmatpush3.msra.mxu0 %v692_v2  ;;  %v790_v63 = vld [vmem:[#allocation6 + $0x1550] sm:$0xff]  ;;  %v805_v1 = vld [vmem:[#allocation6 + $0x15c8] sm:$0xff] }
 0x15e   :  { %4081 = vmatpush3.msra.mxu1 %v724_v3  ;;  %4047 = vmatprep.subr.mxu0 %v707_v4  ;;  %v757_v2 = vld [vmem:[#allocation6 + $0x1448] sm:$0xff]  ;;  %v772_v4 = vld [vmem:[#allocation6 + $0x14c0] sm:$0xff] }
 0x15f   :  { %4082 = vmatprep.subr.mxu1 %v739_v5  ;;  %4048 = vmatpush3.msra.mxu0 %v691_v6  ;;  %v789_v3 = vld [vmem:[#allocation6 + $0x1548] sm:$0xff]  ;;  %v804_v5 = vld [vmem:[#allocation6 + $0x15c0] sm:$0xff] }
 0x160   :  { %4083 = vmatpush3.msra.mxu1 %v723_v7  ;;  %4049 = vmatprep.subr.mxu0 %v706_v8  ;;  %v756_v6 = vld [vmem:[#allocation6 + $0x1440] sm:$0xff]  ;;  %v771_v8 = vld [vmem:[#allocation6 + $0x14b8] sm:$0xff] }
 0x161   :  { %4084 = vmatprep.subr.mxu1 %v738_v9  ;;  %4050 = vmatpush3.msra.mxu0 %v690_v10  ;;  %v788_v7 = vld [vmem:[#allocation6 + $0x1540] sm:$0xff]  ;;  %v803_v9 = vld [vmem:[#allocation6 + $0x15b8] sm:$0xff] }
 0x162   :  { %4085 = vmatpush3.msra.mxu1 %v722_v11  ;;  %4051 = vmatprep.subr.mxu0 %v705_v12  ;;  %v755_v10 = vld [vmem:[#allocation6 + $0x1438] sm:$0xff]  ;;  %v770_v12 = vld [vmem:[#allocation6 + $0x14b0] sm:$0xff] }
 0x163   :  { %4086 = vmatprep.subr.mxu1 %v737_v13  ;;  %4052 = vmatpush3.msra.mxu0 %v689_v14  ;;  %v787_v11 = vld [vmem:[#allocation6 + $0x1538] sm:$0xff]  ;;  %v802_v13 = vld [vmem:[#allocation6 + $0x15b0] sm:$0xff] }
 0x164   :  { %4087 = vmatpush3.msra.mxu1 %v721_v15  ;;  %4053 = vmatprep.subr.mxu0 %v704_v16  ;;  %v754_v14 = vld [vmem:[#allocation6 + $0x1430] sm:$0xff]  ;;  %v769_v16 = vld [vmem:[#allocation6 + $0x14a8] sm:$0xff] }
 0x165   :  { %4088 = vmatprep.subr.mxu1 %v736_v17  ;;  %4054 = vmatpush3.msra.mxu0 %v688_v18  ;;  %v786_v15 = vld [vmem:[#allocation6 + $0x1530] sm:$0xff]  ;;  %v801_v17 = vld [vmem:[#allocation6 + $0x15a8] sm:$0xff] }
 0x166   :  { %4089 = vmatpush3.msra.mxu1 %v720_v19  ;;  %4055 = vmatprep.subr.mxu0 %v703_v20  ;;  %v753_v18 = vld [vmem:[#allocation6 + $0x1428] sm:$0xff]  ;;  %v768_v20 = vld [vmem:[#allocation6 + $0x14a0] sm:$0xff] }
 0x167   :  { %4090 = vmatprep.subr.mxu1 %v735_v21  ;;  %4056 = vmatpush3.msra.mxu0 %v687_v22  ;;  %v785_v19 = vld [vmem:[#allocation6 + $0x1528] sm:$0xff]  ;;  %v800_v21 = vld [vmem:[#allocation6 + $0x15a0] sm:$0xff] }
 0x168   :  { %4091 = vmatpush3.msra.mxu1 %v719_v23  ;;  %4057 = vmatprep.subr.mxu0 %v702_v24  ;;  %v752_v22 = vld [vmem:[#allocation6 + $0x1420] sm:$0xff]  ;;  %v767_v24 = vld [vmem:[#allocation6 + $0x1498] sm:$0xff] }
 0x169   :  { %4092 = vmatprep.subr.mxu1 %v734_v25  ;;  %4058 = vmatpush3.msra.mxu0 %v686_v26  ;;  %v784_v23 = vld [vmem:[#allocation6 + $0x1520] sm:$0xff]  ;;  %v799_v25 = vld [vmem:[#allocation6 + $0x1598] sm:$0xff] }
 0x16a   :  { %4093 = vmatpush3.msra.mxu1 %v718_v27  ;;  %4059 = vmatprep.subr.mxu0 %v701_v28  ;;  %v751_v26 = vld [vmem:[#allocation6 + $0x1418] sm:$0xff]  ;;  %v766_v28 = vld [vmem:[#allocation6 + $0x1490] sm:$0xff] }
 0x16b   :  { %4094 = vmatprep.subr.mxu1 %v733_v29  ;;  %4060 = vmatpush3.msra.mxu0 %v685_v30  ;;  %v783_v27 = vld [vmem:[#allocation6 + $0x1518] sm:$0xff]  ;;  %v798_v29 = vld [vmem:[#allocation6 + $0x1590] sm:$0xff] }
 0x16c   :  { %4095 = vmatpush3.msra.mxu1 %v717_v31  ;;  %4061 = vmatprep.subr.mxu0 %v700_v32  ;;  %v750_v30 = vld [vmem:[#allocation6 + $0x1410] sm:$0xff]  ;;  %v765_v32 = vld [vmem:[#allocation6 + $0x1488] sm:$0xff] }
 0x16d   :  { %4096 = vmatprep.subr.mxu1 %v732_v33  ;;  %4062 = vmatpush3.msra.mxu0 %v684_v34  ;;  %v782_v31 = vld [vmem:[#allocation6 + $0x1510] sm:$0xff]  ;;  %v797_v33 = vld [vmem:[#allocation6 + $0x1588] sm:$0xff] }
 0x16e   :  { %2456 = vmatprep.mubr.f32.mxu0 %v81_v35  ;;  %4097 = vmatpush3.msra.mxu1 %v716_v36  ;;  %v749_v34 = vld [vmem:[#allocation6 + $0x1408] sm:$0xff]  ;;  %v764_v36 = vld [vmem:[#allocation6 + $0x1480] sm:$0xff] }
 0x16f   :  { %2457 = vmatmul.mubr.f32.vlgmr.msra.gmra.mxu0 %v80_v37  ;;  %2526 = vmatprep.mubr.f32.mxu1 %v83_v38  ;;  %v781_v35 = vld [vmem:[#allocation6 + $0x1508] sm:$0xff]  ;;  %v796_v37 = vld [vmem:[#allocation6 + $0x1580] sm:$0xff] }
 0x170   :  { %4101 = vmatprep.subr.mxu0 %v779_v39  ;;  %4136 = vmatprep.subr.mxu1 %v811_v40  ;;  %v748_v38 = vld [vmem:[#allocation6 + $0x1400] sm:$0xff]  ;;  %v85_v39 = vld [vmem:[#allocation3 + $0x148] sm:$0xff] }
 0x171   :  { %2527 = vmatmul.mubr.f32.vlgmr.msra.gmra.mxu1 %v82_v41  ;;  %4102 = vmatpush3.msra.mxu0 %v763_v42  ;;  %v780_v40 = vld [vmem:[#allocation6 + $0x1500] sm:$0xff]  ;;  %v87_v42 = vld [vmem:[#allocation3 + $0x158] sm:$0xff] }
 0x172   :  { %4137 = vmatpush3.msra.mxu1 %v795_v43  ;;  %4103 = vmatprep.subr.mxu0 %v778_v44  ;;  %v84_v41 = vld [vmem:[#allocation3 + $0x140] sm:$0xff]  ;;  %v843_v43 = vld [vmem:[#allocation6 + $0x16f8] sm:$0xff] }
 0x173   :  { %4138 = vmatprep.subr.mxu1 %v810_v45  ;;  %4104 = vmatpush3.msra.mxu0 %v762_v46  ;;  %v875_v44 = vld [vmem:[#allocation6 + $0x17f8] sm:$0xff]  ;;  %v86_v45 = vld [vmem:[#allocation3 + $0x150] sm:$0xff] }
 0x174   :  { %4139 = vmatpush3.msra.mxu1 %v794_v47  ;;  %4105 = vmatprep.subr.mxu0 %v777_v48  ;;  %v827_v46 = vld [vmem:[#allocation6 + $0x1678] sm:$0xff]  ;;  %v842_v48 = vld [vmem:[#allocation6 + $0x16f0] sm:$0xff] }
 0x175   :  { %4140 = vmatprep.subr.mxu1 %v809_v49  ;;  %4106 = vmatpush3.msra.mxu0 %v761_v50  ;;  %v859_v47 = vld [vmem:[#allocation6 + $0x1778] sm:$0xff]  ;;  %v874_v49 = vld [vmem:[#allocation6 + $0x17f0] sm:$0xff] }
 0x176   :  { %4141 = vmatpush3.msra.mxu1 %v793_v51  ;;  %4107 = vmatprep.subr.mxu0 %v776_v52  ;;  %v826_v50 = vld [vmem:[#allocation6 + $0x1670] sm:$0xff]  ;;  %v841_v52 = vld [vmem:[#allocation6 + $0x16e8] sm:$0xff] }
 0x177   :  { %4142 = vmatprep.subr.mxu1 %v808_v53  ;;  %4108 = vmatpush3.msra.mxu0 %v760_v54  ;;  %v858_v51 = vld [vmem:[#allocation6 + $0x1770] sm:$0xff]  ;;  %v873_v53 = vld [vmem:[#allocation6 + $0x17e8] sm:$0xff] }
 0x178   :  { %4143 = vmatpush3.msra.mxu1 %v792_v55  ;;  %4109 = vmatprep.subr.mxu0 %v775_v56  ;;  %v825_v54 = vld [vmem:[#allocation6 + $0x1668] sm:$0xff]  ;;  %v840_v56 = vld [vmem:[#allocation6 + $0x16e0] sm:$0xff] }
 0x179   :  { %4144 = vmatprep.subr.mxu1 %v807_v57  ;;  %4110 = vmatpush3.msra.mxu0 %v759_v58  ;;  %v857_v55 = vld [vmem:[#allocation6 + $0x1768] sm:$0xff]  ;;  %v872_v57 = vld [vmem:[#allocation6 + $0x17e0] sm:$0xff] }
 0x17a   :  { %4145 = vmatpush3.msra.mxu1 %v791_v59  ;;  %4111 = vmatprep.subr.mxu0 %v774_v60  ;;  %v824_v58 = vld [vmem:[#allocation6 + $0x1660] sm:$0xff]  ;;  %v839_v60 = vld [vmem:[#allocation6 + $0x16d8] sm:$0xff] }
 0x17b   :  { %4146 = vmatprep.subr.mxu1 %v806_v61  ;;  %4112 = vmatpush3.msra.mxu0 %v758_v62  ;;  %v856_v59 = vld [vmem:[#allocation6 + $0x1760] sm:$0xff]  ;;  %v871_v61 = vld [vmem:[#allocation6 + $0x17d8] sm:$0xff] }
 0x17c   :  { %4147 = vmatpush3.msra.mxu1 %v790_v63  ;;  %4113 = vmatprep.subr.mxu0 %v773_v0  ;;  %v823_v62 = vld [vmem:[#allocation6 + $0x1658] sm:$0xff]  ;;  %v838_v0 = vld [vmem:[#allocation6 + $0x16d0] sm:$0xff] }
 0x17d   :  { %4148 = vmatprep.subr.mxu1 %v805_v1  ;;  %4114 = vmatpush3.msra.mxu0 %v757_v2  ;;  %v855_v63 = vld [vmem:[#allocation6 + $0x1758] sm:$0xff]  ;;  %v870_v1 = vld [vmem:[#allocation6 + $0x17d0] sm:$0xff] }
 0x17e   :  { %4149 = vmatpush3.msra.mxu1 %v789_v3  ;;  %4115 = vmatprep.subr.mxu0 %v772_v4  ;;  %v822_v2 = vld [vmem:[#allocation6 + $0x1650] sm:$0xff]  ;;  %v837_v4 = vld [vmem:[#allocation6 + $0x16c8] sm:$0xff] }
 0x17f   :  { %4150 = vmatprep.subr.mxu1 %v804_v5  ;;  %4116 = vmatpush3.msra.mxu0 %v756_v6  ;;  %v854_v3 = vld [vmem:[#allocation6 + $0x1750] sm:$0xff]  ;;  %v869_v5 = vld [vmem:[#allocation6 + $0x17c8] sm:$0xff] }
 0x180   :  { %4151 = vmatpush3.msra.mxu1 %v788_v7  ;;  %4117 = vmatprep.subr.mxu0 %v771_v8  ;;  %v821_v6 = vld [vmem:[#allocation6 + $0x1648] sm:$0xff]  ;;  %v836_v8 = vld [vmem:[#allocation6 + $0x16c0] sm:$0xff] }
 0x181   :  { %4152 = vmatprep.subr.mxu1 %v803_v9  ;;  %4118 = vmatpush3.msra.mxu0 %v755_v10  ;;  %v853_v7 = vld [vmem:[#allocation6 + $0x1748] sm:$0xff]  ;;  %v868_v9 = vld [vmem:[#allocation6 + $0x17c0] sm:$0xff] }
 0x182   :  { %4153 = vmatpush3.msra.mxu1 %v787_v11  ;;  %4119 = vmatprep.subr.mxu0 %v770_v12  ;;  %v820_v10 = vld [vmem:[#allocation6 + $0x1640] sm:$0xff]  ;;  %v835_v12 = vld [vmem:[#allocation6 + $0x16b8] sm:$0xff] }
 0x183   :  { %4154 = vmatprep.subr.mxu1 %v802_v13  ;;  %4120 = vmatpush3.msra.mxu0 %v754_v14  ;;  %v852_v11 = vld [vmem:[#allocation6 + $0x1740] sm:$0xff]  ;;  %v867_v13 = vld [vmem:[#allocation6 + $0x17b8] sm:$0xff] }
 0x184   :  { %4155 = vmatpush3.msra.mxu1 %v786_v15  ;;  %4121 = vmatprep.subr.mxu0 %v769_v16  ;;  %v819_v14 = vld [vmem:[#allocation6 + $0x1638] sm:$0xff]  ;;  %v834_v16 = vld [vmem:[#allocation6 + $0x16b0] sm:$0xff] }
 0x185   :  { %4156 = vmatprep.subr.mxu1 %v801_v17  ;;  %4122 = vmatpush3.msra.mxu0 %v753_v18  ;;  %v851_v15 = vld [vmem:[#allocation6 + $0x1738] sm:$0xff]  ;;  %v866_v17 = vld [vmem:[#allocation6 + $0x17b0] sm:$0xff] }
 0x186   :  { %4157 = vmatpush3.msra.mxu1 %v785_v19  ;;  %4123 = vmatprep.subr.mxu0 %v768_v20  ;;  %v818_v18 = vld [vmem:[#allocation6 + $0x1630] sm:$0xff]  ;;  %v833_v20 = vld [vmem:[#allocation6 + $0x16a8] sm:$0xff] }
 0x187   :  { %4158 = vmatprep.subr.mxu1 %v800_v21  ;;  %4124 = vmatpush3.msra.mxu0 %v752_v22  ;;  %v850_v19 = vld [vmem:[#allocation6 + $0x1730] sm:$0xff]  ;;  %v865_v21 = vld [vmem:[#allocation6 + $0x17a8] sm:$0xff] }
 0x188   :  { %4159 = vmatpush3.msra.mxu1 %v784_v23  ;;  %4125 = vmatprep.subr.mxu0 %v767_v24  ;;  %v817_v22 = vld [vmem:[#allocation6 + $0x1628] sm:$0xff]  ;;  %v832_v24 = vld [vmem:[#allocation6 + $0x16a0] sm:$0xff] }
 0x189   :  { %4160 = vmatprep.subr.mxu1 %v799_v25  ;;  %4126 = vmatpush3.msra.mxu0 %v751_v26  ;;  %v849_v23 = vld [vmem:[#allocation6 + $0x1728] sm:$0xff]  ;;  %v864_v25 = vld [vmem:[#allocation6 + $0x17a0] sm:$0xff] }
 0x18a   :  { %4161 = vmatpush3.msra.mxu1 %v783_v27  ;;  %4127 = vmatprep.subr.mxu0 %v766_v28  ;;  %v816_v26 = vld [vmem:[#allocation6 + $0x1620] sm:$0xff]  ;;  %v831_v28 = vld [vmem:[#allocation6 + $0x1698] sm:$0xff] }
 0x18b   :  { %4162 = vmatprep.subr.mxu1 %v798_v29  ;;  %4128 = vmatpush3.msra.mxu0 %v750_v30  ;;  %v848_v27 = vld [vmem:[#allocation6 + $0x1720] sm:$0xff]  ;;  %v863_v29 = vld [vmem:[#allocation6 + $0x1798] sm:$0xff] }
 0x18c   :  { %4163 = vmatpush3.msra.mxu1 %v782_v31  ;;  %4129 = vmatprep.subr.mxu0 %v765_v32  ;;  %v815_v30 = vld [vmem:[#allocation6 + $0x1618] sm:$0xff]  ;;  %v830_v32 = vld [vmem:[#allocation6 + $0x1690] sm:$0xff] }
 0x18d   :  { %4164 = vmatprep.subr.mxu1 %v797_v33  ;;  %4130 = vmatpush3.msra.mxu0 %v749_v34  ;;  %v847_v31 = vld [vmem:[#allocation6 + $0x1718] sm:$0xff]  ;;  %v862_v33 = vld [vmem:[#allocation6 + $0x1790] sm:$0xff] }
 0x18e   :  { %4165 = vmatpush3.msra.mxu1 %v781_v35  ;;  %4131 = vmatprep.subr.mxu0 %v764_v36  ;;  %v814_v34 = vld [vmem:[#allocation6 + $0x1610] sm:$0xff]  ;;  %v829_v36 = vld [vmem:[#allocation6 + $0x1688] sm:$0xff] }
 0x18f   :  { %4166 = vmatprep.subr.mxu1 %v796_v37  ;;  %4132 = vmatpush3.msra.mxu0 %v748_v38  ;;  %v846_v35 = vld [vmem:[#allocation6 + $0x1710] sm:$0xff]  ;;  %v861_v37 = vld [vmem:[#allocation6 + $0x1788] sm:$0xff] }
 0x190   :  { %2596 = vmatprep.mubr.f32.mxu0 %v85_v39  ;;  %4167 = vmatpush3.msra.mxu1 %v780_v40  ;;  %v813_v38 = vld [vmem:[#allocation6 + $0x1608] sm:$0xff]  ;;  %v828_v40 = vld [vmem:[#allocation6 + $0x1680] sm:$0xff] }
 0x191   :  { %2597 = vmatmul.mubr.f32.vlgmr.msra.gmra.mxu0 %v84_v41  ;;  %2666 = vmatprep.mubr.f32.mxu1 %v87_v42  ;;  %v845_v39 = vld [vmem:[#allocation6 + $0x1708] sm:$0xff]  ;;  %v860_v41 = vld [vmem:[#allocation6 + $0x1780] sm:$0xff] }
 0x192   :  { %4171 = vmatprep.subr.mxu0 %v843_v43  ;;  %4206 = vmatprep.subr.mxu1 %v875_v44  ;;  %v812_v42 = vld [vmem:[#allocation6 + $0x1600] sm:$0xff]  ;;  %v89_v43 = vld [vmem:[#allocation3 + $0x168] sm:$0xff] }
 0x193   :  { %2667 = vmatmul.mubr.f32.vlgmr.msra.gmra.mxu1 %v86_v45  ;;  %4172 = vmatpush3.msra.mxu0 %v827_v46  ;;  %v844_v44 = vld [vmem:[#allocation6 + $0x1700] sm:$0xff]  ;;  %v91_v46 = vld [vmem:[#allocation3 + $0x178] sm:$0xff] }
 0x194   :  { %4207 = vmatpush3.msra.mxu1 %v859_v47  ;;  %4173 = vmatprep.subr.mxu0 %v842_v48  ;;  %v88_v45 = vld [vmem:[#allocation3 + $0x160] sm:$0xff]  ;;  %v907_v47 = vld [vmem:[#allocation6 + $0x18f8] sm:$0xff] }
 0x195   :  { %4208 = vmatprep.subr.mxu1 %v874_v49  ;;  %4174 = vmatpush3.msra.mxu0 %v826_v50  ;;  %v939_v48 = vld [vmem:[#allocation6 + $0x19f8] sm:$0xff]  ;;  %v90_v49 = vld [vmem:[#allocation3 + $0x170] sm:$0xff] }
 0x196   :  { %4209 = vmatpush3.msra.mxu1 %v858_v51  ;;  %4175 = vmatprep.subr.mxu0 %v841_v52  ;;  %v891_v50 = vld [vmem:[#allocation6 + $0x1878] sm:$0xff]  ;;  %v906_v52 = vld [vmem:[#allocation6 + $0x18f0] sm:$0xff] }
 0x197   :  { %4210 = vmatprep.subr.mxu1 %v873_v53  ;;  %4176 = vmatpush3.msra.mxu0 %v825_v54  ;;  %v923_v51 = vld [vmem:[#allocation6 + $0x1978] sm:$0xff]  ;;  %v938_v53 = vld [vmem:[#allocation6 + $0x19f0] sm:$0xff] }
 0x198   :  { %4211 = vmatpush3.msra.mxu1 %v857_v55  ;;  %4177 = vmatprep.subr.mxu0 %v840_v56  ;;  %v890_v54 = vld [vmem:[#allocation6 + $0x1870] sm:$0xff]  ;;  %v905_v56 = vld [vmem:[#allocation6 + $0x18e8] sm:$0xff] }
 0x199   :  { %4212 = vmatprep.subr.mxu1 %v872_v57  ;;  %4178 = vmatpush3.msra.mxu0 %v824_v58  ;;  %v922_v55 = vld [vmem:[#allocation6 + $0x1970] sm:$0xff]  ;;  %v937_v57 = vld [vmem:[#allocation6 + $0x19e8] sm:$0xff] }
 0x19a   :  { %4213 = vmatpush3.msra.mxu1 %v856_v59  ;;  %4179 = vmatprep.subr.mxu0 %v839_v60  ;;  %v889_v58 = vld [vmem:[#allocation6 + $0x1868] sm:$0xff]  ;;  %v904_v60 = vld [vmem:[#allocation6 + $0x18e0] sm:$0xff] }
 0x19b   :  { %4214 = vmatprep.subr.mxu1 %v871_v61  ;;  %4180 = vmatpush3.msra.mxu0 %v823_v62  ;;  %v921_v59 = vld [vmem:[#allocation6 + $0x1968] sm:$0xff]  ;;  %v936_v61 = vld [vmem:[#allocation6 + $0x19e0] sm:$0xff] }
 0x19c   :  { %4215 = vmatpush3.msra.mxu1 %v855_v63  ;;  %4181 = vmatprep.subr.mxu0 %v838_v0  ;;  %v888_v62 = vld [vmem:[#allocation6 + $0x1860] sm:$0xff]  ;;  %v903_v0 = vld [vmem:[#allocation6 + $0x18d8] sm:$0xff] }
 0x19d   :  { %4216 = vmatprep.subr.mxu1 %v870_v1  ;;  %4182 = vmatpush3.msra.mxu0 %v822_v2  ;;  %v920_v63 = vld [vmem:[#allocation6 + $0x1960] sm:$0xff]  ;;  %v935_v1 = vld [vmem:[#allocation6 + $0x19d8] sm:$0xff] }
 0x19e   :  { %4217 = vmatpush3.msra.mxu1 %v854_v3  ;;  %4183 = vmatprep.subr.mxu0 %v837_v4  ;;  %v887_v2 = vld [vmem:[#allocation6 + $0x1858] sm:$0xff]  ;;  %v902_v4 = vld [vmem:[#allocation6 + $0x18d0] sm:$0xff] }
 0x19f   :  { %4218 = vmatprep.subr.mxu1 %v869_v5  ;;  %4184 = vmatpush3.msra.mxu0 %v821_v6  ;;  %v919_v3 = vld [vmem:[#allocation6 + $0x1958] sm:$0xff]  ;;  %v934_v5 = vld [vmem:[#allocation6 + $0x19d0] sm:$0xff] }
 0x1a0   :  { %4219 = vmatpush3.msra.mxu1 %v853_v7  ;;  %4185 = vmatprep.subr.mxu0 %v836_v8  ;;  %v886_v6 = vld [vmem:[#allocation6 + $0x1850] sm:$0xff]  ;;  %v901_v8 = vld [vmem:[#allocation6 + $0x18c8] sm:$0xff] }
 0x1a1   :  { %4220 = vmatprep.subr.mxu1 %v868_v9  ;;  %4186 = vmatpush3.msra.mxu0 %v820_v10  ;;  %v918_v7 = vld [vmem:[#allocation6 + $0x1950] sm:$0xff]  ;;  %v933_v9 = vld [vmem:[#allocation6 + $0x19c8] sm:$0xff] }
 0x1a2   :  { %4221 = vmatpush3.msra.mxu1 %v852_v11  ;;  %4187 = vmatprep.subr.mxu0 %v835_v12  ;;  %v885_v10 = vld [vmem:[#allocation6 + $0x1848] sm:$0xff]  ;;  %v900_v12 = vld [vmem:[#allocation6 + $0x18c0] sm:$0xff] }
 0x1a3   :  { %4222 = vmatprep.subr.mxu1 %v867_v13  ;;  %4188 = vmatpush3.msra.mxu0 %v819_v14  ;;  %v917_v11 = vld [vmem:[#allocation6 + $0x1948] sm:$0xff]  ;;  %v932_v13 = vld [vmem:[#allocation6 + $0x19c0] sm:$0xff] }
 0x1a4   :  { %4223 = vmatpush3.msra.mxu1 %v851_v15  ;;  %4189 = vmatprep.subr.mxu0 %v834_v16  ;;  %v884_v14 = vld [vmem:[#allocation6 + $0x1840] sm:$0xff]  ;;  %v899_v16 = vld [vmem:[#allocation6 + $0x18b8] sm:$0xff] }
 0x1a5   :  { %4224 = vmatprep.subr.mxu1 %v866_v17  ;;  %4190 = vmatpush3.msra.mxu0 %v818_v18  ;;  %v916_v15 = vld [vmem:[#allocation6 + $0x1940] sm:$0xff]  ;;  %v931_v17 = vld [vmem:[#allocation6 + $0x19b8] sm:$0xff] }
 0x1a6   :  { %4225 = vmatpush3.msra.mxu1 %v850_v19  ;;  %4191 = vmatprep.subr.mxu0 %v833_v20  ;;  %v883_v18 = vld [vmem:[#allocation6 + $0x1838] sm:$0xff]  ;;  %v898_v20 = vld [vmem:[#allocation6 + $0x18b0] sm:$0xff] }
 0x1a7   :  { %4226 = vmatprep.subr.mxu1 %v865_v21  ;;  %4192 = vmatpush3.msra.mxu0 %v817_v22  ;;  %v915_v19 = vld [vmem:[#allocation6 + $0x1938] sm:$0xff]  ;;  %v930_v21 = vld [vmem:[#allocation6 + $0x19b0] sm:$0xff] }
 0x1a8   :  { %4227 = vmatpush3.msra.mxu1 %v849_v23  ;;  %4193 = vmatprep.subr.mxu0 %v832_v24  ;;  %v882_v22 = vld [vmem:[#allocation6 + $0x1830] sm:$0xff]  ;;  %v897_v24 = vld [vmem:[#allocation6 + $0x18a8] sm:$0xff] }
 0x1a9   :  { %4228 = vmatprep.subr.mxu1 %v864_v25  ;;  %4194 = vmatpush3.msra.mxu0 %v816_v26  ;;  %v914_v23 = vld [vmem:[#allocation6 + $0x1930] sm:$0xff]  ;;  %v929_v25 = vld [vmem:[#allocation6 + $0x19a8] sm:$0xff] }
 0x1aa   :  { %4229 = vmatpush3.msra.mxu1 %v848_v27  ;;  %4195 = vmatprep.subr.mxu0 %v831_v28  ;;  %v881_v26 = vld [vmem:[#allocation6 + $0x1828] sm:$0xff]  ;;  %v896_v28 = vld [vmem:[#allocation6 + $0x18a0] sm:$0xff] }
 0x1ab   :  { %4230 = vmatprep.subr.mxu1 %v863_v29  ;;  %4196 = vmatpush3.msra.mxu0 %v815_v30  ;;  %v913_v27 = vld [vmem:[#allocation6 + $0x1928] sm:$0xff]  ;;  %v928_v29 = vld [vmem:[#allocation6 + $0x19a0] sm:$0xff] }
 0x1ac   :  { %4231 = vmatpush3.msra.mxu1 %v847_v31  ;;  %4197 = vmatprep.subr.mxu0 %v830_v32  ;;  %v880_v30 = vld [vmem:[#allocation6 + $0x1820] sm:$0xff]  ;;  %v895_v32 = vld [vmem:[#allocation6 + $0x1898] sm:$0xff] }
 0x1ad   :  { %4232 = vmatprep.subr.mxu1 %v862_v33  ;;  %4198 = vmatpush3.msra.mxu0 %v814_v34  ;;  %v912_v31 = vld [vmem:[#allocation6 + $0x1920] sm:$0xff]  ;;  %v927_v33 = vld [vmem:[#allocation6 + $0x1998] sm:$0xff] }
 0x1ae   :  { %4233 = vmatpush3.msra.mxu1 %v846_v35  ;;  %4199 = vmatprep.subr.mxu0 %v829_v36  ;;  %v879_v34 = vld [vmem:[#allocation6 + $0x1818] sm:$0xff]  ;;  %v894_v36 = vld [vmem:[#allocation6 + $0x1890] sm:$0xff] }
 0x1af   :  { %4234 = vmatprep.subr.mxu1 %v861_v37  ;;  %4200 = vmatpush3.msra.mxu0 %v813_v38  ;;  %v911_v35 = vld [vmem:[#allocation6 + $0x1918] sm:$0xff]  ;;  %v926_v37 = vld [vmem:[#allocation6 + $0x1990] sm:$0xff] }
 0x1b0   :  { %4235 = vmatpush3.msra.mxu1 %v845_v39  ;;  %4201 = vmatprep.subr.mxu0 %v828_v40  ;;  %v878_v38 = vld [vmem:[#allocation6 + $0x1810] sm:$0xff]  ;;  %v893_v40 = vld [vmem:[#allocation6 + $0x1888] sm:$0xff] }
 0x1b1   :  { %4236 = vmatprep.subr.mxu1 %v860_v41  ;;  %4202 = vmatpush3.msra.mxu0 %v812_v42  ;;  %v910_v39 = vld [vmem:[#allocation6 + $0x1910] sm:$0xff]  ;;  %v925_v41 = vld [vmem:[#allocation6 + $0x1988] sm:$0xff] }
 0x1b2   :  { %2736 = vmatprep.mubr.f32.mxu0 %v89_v43  ;;  %4237 = vmatpush3.msra.mxu1 %v844_v44  ;;  %v877_v42 = vld [vmem:[#allocation6 + $0x1808] sm:$0xff]  ;;  %v892_v44 = vld [vmem:[#allocation6 + $0x1880] sm:$0xff] }
 0x1b3   :  { %2737 = vmatmul.mubr.f32.vlgmr.msra.gmra.mxu0 %v88_v45  ;;  %2806 = vmatprep.mubr.f32.mxu1 %v91_v46  ;;  %v909_v43 = vld [vmem:[#allocation6 + $0x1908] sm:$0xff]  ;;  %v924_v45 = vld [vmem:[#allocation6 + $0x1980] sm:$0xff] }
 0x1b4   :  { %4241 = vmatprep.subr.mxu0 %v907_v47  ;;  %4276 = vmatprep.subr.mxu1 %v939_v48  ;;  %v876_v46 = vld [vmem:[#allocation6 + $0x1800] sm:$0xff]  ;;  %v93_v47 = vld [vmem:[#allocation3 + $0x188] sm:$0xff] }
 0x1b5   :  { %2807 = vmatmul.mubr.f32.vlgmr.msra.gmra.mxu1 %v90_v49  ;;  %4242 = vmatpush3.msra.mxu0 %v891_v50  ;;  %v908_v48 = vld [vmem:[#allocation6 + $0x1900] sm:$0xff]  ;;  %v95_v50 = vld [vmem:[#allocation3 + $0x198] sm:$0xff] }
 0x1b6   :  { %4277 = vmatpush3.msra.mxu1 %v923_v51  ;;  %4243 = vmatprep.subr.mxu0 %v906_v52  ;;  %v92_v49 = vld [vmem:[#allocation3 + $0x180] sm:$0xff]  ;;  %v971_v51 = vld [vmem:[#allocation6 + $0x1af8] sm:$0xff] }
 0x1b7   :  { %4278 = vmatprep.subr.mxu1 %v938_v53  ;;  %4244 = vmatpush3.msra.mxu0 %v890_v54  ;;  %v1003_v52 = vld [vmem:[#allocation6 + $0x1bf8] sm:$0xff]  ;;  %v94_v53 = vld [vmem:[#allocation3 + $0x190] sm:$0xff] }
 0x1b8   :  { %4279 = vmatpush3.msra.mxu1 %v922_v55  ;;  %4245 = vmatprep.subr.mxu0 %v905_v56  ;;  %v955_v54 = vld [vmem:[#allocation6 + $0x1a78] sm:$0xff]  ;;  %v970_v56 = vld [vmem:[#allocation6 + $0x1af0] sm:$0xff] }
 0x1b9   :  { %4280 = vmatprep.subr.mxu1 %v937_v57  ;;  %4246 = vmatpush3.msra.mxu0 %v889_v58  ;;  %v987_v55 = vld [vmem:[#allocation6 + $0x1b78] sm:$0xff]  ;;  %v1002_v57 = vld [vmem:[#allocation6 + $0x1bf0] sm:$0xff] }
 0x1ba   :  { %4281 = vmatpush3.msra.mxu1 %v921_v59  ;;  %4247 = vmatprep.subr.mxu0 %v904_v60  ;;  %v954_v58 = vld [vmem:[#allocation6 + $0x1a70] sm:$0xff]  ;;  %v969_v60 = vld [vmem:[#allocation6 + $0x1ae8] sm:$0xff] }
 0x1bb   :  { %4282 = vmatprep.subr.mxu1 %v936_v61  ;;  %4248 = vmatpush3.msra.mxu0 %v888_v62  ;;  %v986_v59 = vld [vmem:[#allocation6 + $0x1b70] sm:$0xff]  ;;  %v1001_v61 = vld [vmem:[#allocation6 + $0x1be8] sm:$0xff] }
 0x1bc   :  { %4283 = vmatpush3.msra.mxu1 %v920_v63  ;;  %4249 = vmatprep.subr.mxu0 %v903_v0  ;;  %v953_v62 = vld [vmem:[#allocation6 + $0x1a68] sm:$0xff]  ;;  %v968_v0 = vld [vmem:[#allocation6 + $0x1ae0] sm:$0xff] }
 0x1bd   :  { %4284 = vmatprep.subr.mxu1 %v935_v1  ;;  %4250 = vmatpush3.msra.mxu0 %v887_v2  ;;  %v985_v63 = vld [vmem:[#allocation6 + $0x1b68] sm:$0xff]  ;;  %v1000_v1 = vld [vmem:[#allocation6 + $0x1be0] sm:$0xff] }
 0x1be   :  { %4285 = vmatpush3.msra.mxu1 %v919_v3  ;;  %4251 = vmatprep.subr.mxu0 %v902_v4  ;;  %v952_v2 = vld [vmem:[#allocation6 + $0x1a60] sm:$0xff]  ;;  %v967_v4 = vld [vmem:[#allocation6 + $0x1ad8] sm:$0xff] }
 0x1bf   :  { %4286 = vmatprep.subr.mxu1 %v934_v5  ;;  %4252 = vmatpush3.msra.mxu0 %v886_v6  ;;  %v984_v3 = vld [vmem:[#allocation6 + $0x1b60] sm:$0xff]  ;;  %v999_v5 = vld [vmem:[#allocation6 + $0x1bd8] sm:$0xff] }
 0x1c0   :  { %4287 = vmatpush3.msra.mxu1 %v918_v7  ;;  %4253 = vmatprep.subr.mxu0 %v901_v8  ;;  %v951_v6 = vld [vmem:[#allocation6 + $0x1a58] sm:$0xff]  ;;  %v966_v8 = vld [vmem:[#allocation6 + $0x1ad0] sm:$0xff] }
 0x1c1   :  { %4288 = vmatprep.subr.mxu1 %v933_v9  ;;  %4254 = vmatpush3.msra.mxu0 %v885_v10  ;;  %v983_v7 = vld [vmem:[#allocation6 + $0x1b58] sm:$0xff]  ;;  %v998_v9 = vld [vmem:[#allocation6 + $0x1bd0] sm:$0xff] }
 0x1c2   :  { %4289 = vmatpush3.msra.mxu1 %v917_v11  ;;  %4255 = vmatprep.subr.mxu0 %v900_v12  ;;  %v950_v10 = vld [vmem:[#allocation6 + $0x1a50] sm:$0xff]  ;;  %v965_v12 = vld [vmem:[#allocation6 + $0x1ac8] sm:$0xff] }
 0x1c3   :  { %4290 = vmatprep.subr.mxu1 %v932_v13  ;;  %4256 = vmatpush3.msra.mxu0 %v884_v14  ;;  %v982_v11 = vld [vmem:[#allocation6 + $0x1b50] sm:$0xff]  ;;  %v997_v13 = vld [vmem:[#allocation6 + $0x1bc8] sm:$0xff] }
 0x1c4   :  { %4291 = vmatpush3.msra.mxu1 %v916_v15  ;;  %4257 = vmatprep.subr.mxu0 %v899_v16  ;;  %v949_v14 = vld [vmem:[#allocation6 + $0x1a48] sm:$0xff]  ;;  %v964_v16 = vld [vmem:[#allocation6 + $0x1ac0] sm:$0xff] }
 0x1c5   :  { %4292 = vmatprep.subr.mxu1 %v931_v17  ;;  %4258 = vmatpush3.msra.mxu0 %v883_v18  ;;  %v981_v15 = vld [vmem:[#allocation6 + $0x1b48] sm:$0xff]  ;;  %v996_v17 = vld [vmem:[#allocation6 + $0x1bc0] sm:$0xff] }
 0x1c6   :  { %4293 = vmatpush3.msra.mxu1 %v915_v19  ;;  %4259 = vmatprep.subr.mxu0 %v898_v20  ;;  %v948_v18 = vld [vmem:[#allocation6 + $0x1a40] sm:$0xff]  ;;  %v963_v20 = vld [vmem:[#allocation6 + $0x1ab8] sm:$0xff] }
 0x1c7   :  { %4294 = vmatprep.subr.mxu1 %v930_v21  ;;  %4260 = vmatpush3.msra.mxu0 %v882_v22  ;;  %v980_v19 = vld [vmem:[#allocation6 + $0x1b40] sm:$0xff]  ;;  %v995_v21 = vld [vmem:[#allocation6 + $0x1bb8] sm:$0xff] }
 0x1c8   :  { %4295 = vmatpush3.msra.mxu1 %v914_v23  ;;  %4261 = vmatprep.subr.mxu0 %v897_v24  ;;  %v947_v22 = vld [vmem:[#allocation6 + $0x1a38] sm:$0xff]  ;;  %v962_v24 = vld [vmem:[#allocation6 + $0x1ab0] sm:$0xff] }
 0x1c9   :  { %4296 = vmatprep.subr.mxu1 %v929_v25  ;;  %4262 = vmatpush3.msra.mxu0 %v881_v26  ;;  %v979_v23 = vld [vmem:[#allocation6 + $0x1b38] sm:$0xff]  ;;  %v994_v25 = vld [vmem:[#allocation6 + $0x1bb0] sm:$0xff] }
 0x1ca   :  { %4297 = vmatpush3.msra.mxu1 %v913_v27  ;;  %4263 = vmatprep.subr.mxu0 %v896_v28  ;;  %v946_v26 = vld [vmem:[#allocation6 + $0x1a30] sm:$0xff]  ;;  %v961_v28 = vld [vmem:[#allocation6 + $0x1aa8] sm:$0xff] }
 0x1cb   :  { %4298 = vmatprep.subr.mxu1 %v928_v29  ;;  %4264 = vmatpush3.msra.mxu0 %v880_v30  ;;  %v978_v27 = vld [vmem:[#allocation6 + $0x1b30] sm:$0xff]  ;;  %v993_v29 = vld [vmem:[#allocation6 + $0x1ba8] sm:$0xff] }
 0x1cc   :  { %4299 = vmatpush3.msra.mxu1 %v912_v31  ;;  %4265 = vmatprep.subr.mxu0 %v895_v32  ;;  %v945_v30 = vld [vmem:[#allocation6 + $0x1a28] sm:$0xff]  ;;  %v960_v32 = vld [vmem:[#allocation6 + $0x1aa0] sm:$0xff] }
 0x1cd   :  { %4300 = vmatprep.subr.mxu1 %v927_v33  ;;  %4266 = vmatpush3.msra.mxu0 %v879_v34  ;;  %v977_v31 = vld [vmem:[#allocation6 + $0x1b28] sm:$0xff]  ;;  %v992_v33 = vld [vmem:[#allocation6 + $0x1ba0] sm:$0xff] }
 0x1ce   :  { %4301 = vmatpush3.msra.mxu1 %v911_v35  ;;  %4267 = vmatprep.subr.mxu0 %v894_v36  ;;  %v944_v34 = vld [vmem:[#allocation6 + $0x1a20] sm:$0xff]  ;;  %v959_v36 = vld [vmem:[#allocation6 + $0x1a98] sm:$0xff] }
 0x1cf   :  { %4302 = vmatprep.subr.mxu1 %v926_v37  ;;  %4268 = vmatpush3.msra.mxu0 %v878_v38  ;;  %v976_v35 = vld [vmem:[#allocation6 + $0x1b20] sm:$0xff]  ;;  %v991_v37 = vld [vmem:[#allocation6 + $0x1b98] sm:$0xff] }
 0x1d0   :  { %4303 = vmatpush3.msra.mxu1 %v910_v39  ;;  %4269 = vmatprep.subr.mxu0 %v893_v40  ;;  %v943_v38 = vld [vmem:[#allocation6 + $0x1a18] sm:$0xff]  ;;  %v958_v40 = vld [vmem:[#allocation6 + $0x1a90] sm:$0xff] }
 0x1d1   :  { %4304 = vmatprep.subr.mxu1 %v925_v41  ;;  %4270 = vmatpush3.msra.mxu0 %v877_v42  ;;  %v975_v39 = vld [vmem:[#allocation6 + $0x1b18] sm:$0xff]  ;;  %v990_v41 = vld [vmem:[#allocation6 + $0x1b90] sm:$0xff] }
 0x1d2   :  { %4305 = vmatpush3.msra.mxu1 %v909_v43  ;;  %4271 = vmatprep.subr.mxu0 %v892_v44  ;;  %v942_v42 = vld [vmem:[#allocation6 + $0x1a10] sm:$0xff]  ;;  %v957_v44 = vld [vmem:[#allocation6 + $0x1a88] sm:$0xff] }
 0x1d3   :  { %4306 = vmatprep.subr.mxu1 %v924_v45  ;;  %4272 = vmatpush3.msra.mxu0 %v876_v46  ;;  %v974_v43 = vld [vmem:[#allocation6 + $0x1b10] sm:$0xff]  ;;  %v989_v45 = vld [vmem:[#allocation6 + $0x1b88] sm:$0xff] }
 0x1d4   :  { %2876 = vmatprep.mubr.f32.mxu0 %v93_v47  ;;  %4307 = vmatpush3.msra.mxu1 %v908_v48  ;;  %v941_v46 = vld [vmem:[#allocation6 + $0x1a08] sm:$0xff]  ;;  %v956_v48 = vld [vmem:[#allocation6 + $0x1a80] sm:$0xff] }
 0x1d5   :  { %2877 = vmatmul.mubr.f32.vlgmr.msra.gmra.mxu0 %v92_v49  ;;  %2946 = vmatprep.mubr.f32.mxu1 %v95_v50  ;;  %v973_v47 = vld [vmem:[#allocation6 + $0x1b08] sm:$0xff]  ;;  %v988_v49 = vld [vmem:[#allocation6 + $0x1b80] sm:$0xff] }
 0x1d6   :  { %4311 = vmatprep.subr.mxu0 %v971_v51  ;;  %4346 = vmatprep.subr.mxu1 %v1003_v52  ;;  %v940_v50 = vld [vmem:[#allocation6 + $0x1a00] sm:$0xff]  ;;  %v97_v51 = vld [vmem:[#allocation3 + $0x1a8] sm:$0xff] }
 0x1d7   :  { %2947 = vmatmul.mubr.f32.vlgmr.msra.gmra.mxu1 %v94_v53  ;;  %4312 = vmatpush3.msra.mxu0 %v955_v54  ;;  %v972_v52 = vld [vmem:[#allocation6 + $0x1b00] sm:$0xff]  ;;  %v99_v54 = vld [vmem:[#allocation3 + $0x1b8] sm:$0xff] }
 0x1d8   :  { %4347 = vmatpush3.msra.mxu1 %v987_v55  ;;  %4313 = vmatprep.subr.mxu0 %v970_v56  ;;  %v96_v53 = vld [vmem:[#allocation3 + $0x1a0] sm:$0xff]  ;;  %v1035_v55 = vld [vmem:[#allocation6 + $0x1cf8] sm:$0xff] }
 0x1d9   :  { %4348 = vmatprep.subr.mxu1 %v1002_v57  ;;  %4314 = vmatpush3.msra.mxu0 %v954_v58  ;;  %v1067_v56 = vld [vmem:[#allocation6 + $0x1df8] sm:$0xff]  ;;  %v98_v57 = vld [vmem:[#allocation3 + $0x1b0] sm:$0xff] }
 0x1da   :  { %4349 = vmatpush3.msra.mxu1 %v986_v59  ;;  %4315 = vmatprep.subr.mxu0 %v969_v60  ;;  %v1019_v58 = vld [vmem:[#allocation6 + $0x1c78] sm:$0xff]  ;;  %v1034_v60 = vld [vmem:[#allocation6 + $0x1cf0] sm:$0xff] }
 0x1db   :  { %4350 = vmatprep.subr.mxu1 %v1001_v61  ;;  %4316 = vmatpush3.msra.mxu0 %v953_v62  ;;  %v1051_v59 = vld [vmem:[#allocation6 + $0x1d78] sm:$0xff]  ;;  %v1066_v61 = vld [vmem:[#allocation6 + $0x1df0] sm:$0xff] }
 0x1dc   :  { %4351 = vmatpush3.msra.mxu1 %v985_v63  ;;  %4317 = vmatprep.subr.mxu0 %v968_v0  ;;  %v1018_v62 = vld [vmem:[#allocation6 + $0x1c70] sm:$0xff]  ;;  %v1033_v0 = vld [vmem:[#allocation6 + $0x1ce8] sm:$0xff] }
 0x1dd   :  { %4352 = vmatprep.subr.mxu1 %v1000_v1  ;;  %4318 = vmatpush3.msra.mxu0 %v952_v2  ;;  %v1050_v63 = vld [vmem:[#allocation6 + $0x1d70] sm:$0xff]  ;;  %v1065_v1 = vld [vmem:[#allocation6 + $0x1de8] sm:$0xff] }
 0x1de   :  { %4353 = vmatpush3.msra.mxu1 %v984_v3  ;;  %4319 = vmatprep.subr.mxu0 %v967_v4  ;;  %v1017_v2 = vld [vmem:[#allocation6 + $0x1c68] sm:$0xff]  ;;  %v1032_v4 = vld [vmem:[#allocation6 + $0x1ce0] sm:$0xff] }
 0x1df   :  { %4354 = vmatprep.subr.mxu1 %v999_v5  ;;  %4320 = vmatpush3.msra.mxu0 %v951_v6  ;;  %v1049_v3 = vld [vmem:[#allocation6 + $0x1d68] sm:$0xff]  ;;  %v1064_v5 = vld [vmem:[#allocation6 + $0x1de0] sm:$0xff] }
 0x1e0   :  { %4355 = vmatpush3.msra.mxu1 %v983_v7  ;;  %4321 = vmatprep.subr.mxu0 %v966_v8  ;;  %v1016_v6 = vld [vmem:[#allocation6 + $0x1c60] sm:$0xff]  ;;  %v1031_v8 = vld [vmem:[#allocation6 + $0x1cd8] sm:$0xff] }
 0x1e1   :  { %4356 = vmatprep.subr.mxu1 %v998_v9  ;;  %4322 = vmatpush3.msra.mxu0 %v950_v10  ;;  %v1048_v7 = vld [vmem:[#allocation6 + $0x1d60] sm:$0xff]  ;;  %v1063_v9 = vld [vmem:[#allocation6 + $0x1dd8] sm:$0xff] }
 0x1e2   :  { %4357 = vmatpush3.msra.mxu1 %v982_v11  ;;  %4323 = vmatprep.subr.mxu0 %v965_v12  ;;  %v1015_v10 = vld [vmem:[#allocation6 + $0x1c58] sm:$0xff]  ;;  %v1030_v12 = vld [vmem:[#allocation6 + $0x1cd0] sm:$0xff] }
 0x1e3   :  { %4358 = vmatprep.subr.mxu1 %v997_v13  ;;  %4324 = vmatpush3.msra.mxu0 %v949_v14  ;;  %v1047_v11 = vld [vmem:[#allocation6 + $0x1d58] sm:$0xff]  ;;  %v1062_v13 = vld [vmem:[#allocation6 + $0x1dd0] sm:$0xff] }
 0x1e4   :  { %4359 = vmatpush3.msra.mxu1 %v981_v15  ;;  %4325 = vmatprep.subr.mxu0 %v964_v16  ;;  %v1014_v14 = vld [vmem:[#allocation6 + $0x1c50] sm:$0xff]  ;;  %v1029_v16 = vld [vmem:[#allocation6 + $0x1cc8] sm:$0xff] }
 0x1e5   :  { %4360 = vmatprep.subr.mxu1 %v996_v17  ;;  %4326 = vmatpush3.msra.mxu0 %v948_v18  ;;  %v1046_v15 = vld [vmem:[#allocation6 + $0x1d50] sm:$0xff]  ;;  %v1061_v17 = vld [vmem:[#allocation6 + $0x1dc8] sm:$0xff] }
 0x1e6   :  { %4361 = vmatpush3.msra.mxu1 %v980_v19  ;;  %4327 = vmatprep.subr.mxu0 %v963_v20  ;;  %v1013_v18 = vld [vmem:[#allocation6 + $0x1c48] sm:$0xff]  ;;  %v1028_v20 = vld [vmem:[#allocation6 + $0x1cc0] sm:$0xff] }
 0x1e7   :  { %4362 = vmatprep.subr.mxu1 %v995_v21  ;;  %4328 = vmatpush3.msra.mxu0 %v947_v22  ;;  %v1045_v19 = vld [vmem:[#allocation6 + $0x1d48] sm:$0xff]  ;;  %v1060_v21 = vld [vmem:[#allocation6 + $0x1dc0] sm:$0xff] }
 0x1e8   :  { %4363 = vmatpush3.msra.mxu1 %v979_v23  ;;  %4329 = vmatprep.subr.mxu0 %v962_v24  ;;  %v1012_v22 = vld [vmem:[#allocation6 + $0x1c40] sm:$0xff]  ;;  %v1027_v24 = vld [vmem:[#allocation6 + $0x1cb8] sm:$0xff] }
 0x1e9   :  { %4364 = vmatprep.subr.mxu1 %v994_v25  ;;  %4330 = vmatpush3.msra.mxu0 %v946_v26  ;;  %v1044_v23 = vld [vmem:[#allocation6 + $0x1d40] sm:$0xff]  ;;  %v1059_v25 = vld [vmem:[#allocation6 + $0x1db8] sm:$0xff] }
 0x1ea   :  { %4365 = vmatpush3.msra.mxu1 %v978_v27  ;;  %4331 = vmatprep.subr.mxu0 %v961_v28  ;;  %v1011_v26 = vld [vmem:[#allocation6 + $0x1c38] sm:$0xff]  ;;  %v1026_v28 = vld [vmem:[#allocation6 + $0x1cb0] sm:$0xff] }
 0x1eb   :  { %4366 = vmatprep.subr.mxu1 %v993_v29  ;;  %4332 = vmatpush3.msra.mxu0 %v945_v30  ;;  %v1043_v27 = vld [vmem:[#allocation6 + $0x1d38] sm:$0xff]  ;;  %v1058_v29 = vld [vmem:[#allocation6 + $0x1db0] sm:$0xff] }
 0x1ec   :  { %4367 = vmatpush3.msra.mxu1 %v977_v31  ;;  %4333 = vmatprep.subr.mxu0 %v960_v32  ;;  %v1010_v30 = vld [vmem:[#allocation6 + $0x1c30] sm:$0xff]  ;;  %v1025_v32 = vld [vmem:[#allocation6 + $0x1ca8] sm:$0xff] }
 0x1ed   :  { %4368 = vmatprep.subr.mxu1 %v992_v33  ;;  %4334 = vmatpush3.msra.mxu0 %v944_v34  ;;  %v1042_v31 = vld [vmem:[#allocation6 + $0x1d30] sm:$0xff]  ;;  %v1057_v33 = vld [vmem:[#allocation6 + $0x1da8] sm:$0xff] }
 0x1ee   :  { %4369 = vmatpush3.msra.mxu1 %v976_v35  ;;  %4335 = vmatprep.subr.mxu0 %v959_v36  ;;  %v1009_v34 = vld [vmem:[#allocation6 + $0x1c28] sm:$0xff]  ;;  %v1024_v36 = vld [vmem:[#allocation6 + $0x1ca0] sm:$0xff] }
 0x1ef   :  { %4370 = vmatprep.subr.mxu1 %v991_v37  ;;  %4336 = vmatpush3.msra.mxu0 %v943_v38  ;;  %v1041_v35 = vld [vmem:[#allocation6 + $0x1d28] sm:$0xff]  ;;  %v1056_v37 = vld [vmem:[#allocation6 + $0x1da0] sm:$0xff] }
 0x1f0   :  { %4371 = vmatpush3.msra.mxu1 %v975_v39  ;;  %4337 = vmatprep.subr.mxu0 %v958_v40  ;;  %v1008_v38 = vld [vmem:[#allocation6 + $0x1c20] sm:$0xff]  ;;  %v1023_v40 = vld [vmem:[#allocation6 + $0x1c98] sm:$0xff] }
 0x1f1   :  { %4372 = vmatprep.subr.mxu1 %v990_v41  ;;  %4338 = vmatpush3.msra.mxu0 %v942_v42  ;;  %v1040_v39 = vld [vmem:[#allocation6 + $0x1d20] sm:$0xff]  ;;  %v1055_v41 = vld [vmem:[#allocation6 + $0x1d98] sm:$0xff] }
 0x1f2   :  { %4373 = vmatpush3.msra.mxu1 %v974_v43  ;;  %4339 = vmatprep.subr.mxu0 %v957_v44  ;;  %v1007_v42 = vld [vmem:[#allocation6 + $0x1c18] sm:$0xff]  ;;  %v1022_v44 = vld [vmem:[#allocation6 + $0x1c90] sm:$0xff] }
 0x1f3   :  { %4374 = vmatprep.subr.mxu1 %v989_v45  ;;  %4340 = vmatpush3.msra.mxu0 %v941_v46  ;;  %v1039_v43 = vld [vmem:[#allocation6 + $0x1d18] sm:$0xff]  ;;  %v1054_v45 = vld [vmem:[#allocation6 + $0x1d90] sm:$0xff] }
 0x1f4   :  { %4375 = vmatpush3.msra.mxu1 %v973_v47  ;;  %4341 = vmatprep.subr.mxu0 %v956_v48  ;;  %v1006_v46 = vld [vmem:[#allocation6 + $0x1c10] sm:$0xff]  ;;  %v1021_v48 = vld [vmem:[#allocation6 + $0x1c88] sm:$0xff] }
 0x1f5   :  { %4376 = vmatprep.subr.mxu1 %v988_v49  ;;  %4342 = vmatpush3.msra.mxu0 %v940_v50  ;;  %v1038_v47 = vld [vmem:[#allocation6 + $0x1d10] sm:$0xff]  ;;  %v1053_v49 = vld [vmem:[#allocation6 + $0x1d88] sm:$0xff] }
 0x1f6   :  { %3016 = vmatprep.mubr.f32.mxu0 %v97_v51  ;;  %4377 = vmatpush3.msra.mxu1 %v972_v52  ;;  %v1005_v50 = vld [vmem:[#allocation6 + $0x1c08] sm:$0xff]  ;;  %v1020_v52 = vld [vmem:[#allocation6 + $0x1c80] sm:$0xff] }
 0x1f7   :  { %3017 = vmatmul.mubr.f32.vlgmr.msra.gmra.mxu0 %v96_v53  ;;  %3086 = vmatprep.mubr.f32.mxu1 %v99_v54  ;;  %v1037_v51 = vld [vmem:[#allocation6 + $0x1d08] sm:$0xff]  ;;  %v1052_v53 = vld [vmem:[#allocation6 + $0x1d80] sm:$0xff] }
 0x1f8   :  { %4381 = vmatprep.subr.mxu0 %v1035_v55  ;;  %4416 = vmatprep.subr.mxu1 %v1067_v56  ;;  %v1004_v54 = vld [vmem:[#allocation6 + $0x1c00] sm:$0xff]  ;;  %v101_v55 = vld [vmem:[#allocation3 + $0x1c8] sm:$0xff] }
 0x1f9   :  { %3087 = vmatmul.mubr.f32.vlgmr.msra.gmra.mxu1 %v98_v57  ;;  %4382 = vmatpush3.msra.mxu0 %v1019_v58  ;;  %v1036_v56 = vld [vmem:[#allocation6 + $0x1d00] sm:$0xff]  ;;  %v103_v58 = vld [vmem:[#allocation3 + $0x1d8] sm:$0xff] }
 0x1fa   :  { %4417 = vmatpush3.msra.mxu1 %v1051_v59  ;;  %4383 = vmatprep.subr.mxu0 %v1034_v60  ;;  %v100_v57 = vld [vmem:[#allocation3 + $0x1c0] sm:$0xff]  ;;  %v1099_v59 = vld [vmem:[#allocation6 + $0x1ef8] sm:$0xff] }
 0x1fb   :  { %4418 = vmatprep.subr.mxu1 %v1066_v61  ;;  %4384 = vmatpush3.msra.mxu0 %v1018_v62  ;;  %v1131_v60 = vld [vmem:[#allocation6 + $0x1ff8] sm:$0xff]  ;;  %v102_v61 = vld [vmem:[#allocation3 + $0x1d0] sm:$0xff] }
 0x1fc   :  { %4419 = vmatpush3.msra.mxu1 %v1050_v63  ;;  %4385 = vmatprep.subr.mxu0 %v1033_v0  ;;  %v1083_v62 = vld [vmem:[#allocation6 + $0x1e78] sm:$0xff]  ;;  %v1098_v0 = vld [vmem:[#allocation6 + $0x1ef0] sm:$0xff] }
 0x1fd   :  { %4420 = vmatprep.subr.mxu1 %v1065_v1  ;;  %4386 = vmatpush3.msra.mxu0 %v1017_v2  ;;  %v1115_v63 = vld [vmem:[#allocation6 + $0x1f78] sm:$0xff]  ;;  %v1130_v1 = vld [vmem:[#allocation6 + $0x1ff0] sm:$0xff] }
 0x1fe   :  { %4421 = vmatpush3.msra.mxu1 %v1049_v3  ;;  %4387 = vmatprep.subr.mxu0 %v1032_v4  ;;  %v1082_v2 = vld [vmem:[#allocation6 + $0x1e70] sm:$0xff]  ;;  %v1097_v4 = vld [vmem:[#allocation6 + $0x1ee8] sm:$0xff] }
 0x1ff   :  { %4422 = vmatprep.subr.mxu1 %v1064_v5  ;;  %4388 = vmatpush3.msra.mxu0 %v1016_v6  ;;  %v1114_v3 = vld [vmem:[#allocation6 + $0x1f70] sm:$0xff]  ;;  %v1129_v5 = vld [vmem:[#allocation6 + $0x1fe8] sm:$0xff] }
 0x200   :  { %4423 = vmatpush3.msra.mxu1 %v1048_v7  ;;  %4389 = vmatprep.subr.mxu0 %v1031_v8  ;;  %v1081_v6 = vld [vmem:[#allocation6 + $0x1e68] sm:$0xff]  ;;  %v1096_v8 = vld [vmem:[#allocation6 + $0x1ee0] sm:$0xff] }
 0x201   :  { %4424 = vmatprep.subr.mxu1 %v1063_v9  ;;  %4390 = vmatpush3.msra.mxu0 %v1015_v10  ;;  %v1113_v7 = vld [vmem:[#allocation6 + $0x1f68] sm:$0xff]  ;;  %v1128_v9 = vld [vmem:[#allocation6 + $0x1fe0] sm:$0xff] }
 0x202   :  { %4425 = vmatpush3.msra.mxu1 %v1047_v11  ;;  %4391 = vmatprep.subr.mxu0 %v1030_v12  ;;  %v1080_v10 = vld [vmem:[#allocation6 + $0x1e60] sm:$0xff]  ;;  %v1095_v12 = vld [vmem:[#allocation6 + $0x1ed8] sm:$0xff] }
 0x203   :  { %4426 = vmatprep.subr.mxu1 %v1062_v13  ;;  %4392 = vmatpush3.msra.mxu0 %v1014_v14  ;;  %v1112_v11 = vld [vmem:[#allocation6 + $0x1f60] sm:$0xff]  ;;  %v1127_v13 = vld [vmem:[#allocation6 + $0x1fd8] sm:$0xff] }
 0x204   :  { %4427 = vmatpush3.msra.mxu1 %v1046_v15  ;;  %4393 = vmatprep.subr.mxu0 %v1029_v16  ;;  %v1079_v14 = vld [vmem:[#allocation6 + $0x1e58] sm:$0xff]  ;;  %v1094_v16 = vld [vmem:[#allocation6 + $0x1ed0] sm:$0xff] }
 0x205   :  { %4428 = vmatprep.subr.mxu1 %v1061_v17  ;;  %4394 = vmatpush3.msra.mxu0 %v1013_v18  ;;  %v1111_v15 = vld [vmem:[#allocation6 + $0x1f58] sm:$0xff]  ;;  %v1126_v17 = vld [vmem:[#allocation6 + $0x1fd0] sm:$0xff] }
 0x206   :  { %4429 = vmatpush3.msra.mxu1 %v1045_v19  ;;  %4395 = vmatprep.subr.mxu0 %v1028_v20  ;;  %v1078_v18 = vld [vmem:[#allocation6 + $0x1e50] sm:$0xff]  ;;  %v1093_v20 = vld [vmem:[#allocation6 + $0x1ec8] sm:$0xff] }
 0x207   :  { %4430 = vmatprep.subr.mxu1 %v1060_v21  ;;  %4396 = vmatpush3.msra.mxu0 %v1012_v22  ;;  %v1110_v19 = vld [vmem:[#allocation6 + $0x1f50] sm:$0xff]  ;;  %v1125_v21 = vld [vmem:[#allocation6 + $0x1fc8] sm:$0xff] }
 0x208   :  { %4431 = vmatpush3.msra.mxu1 %v1044_v23  ;;  %4397 = vmatprep.subr.mxu0 %v1027_v24  ;;  %v1077_v22 = vld [vmem:[#allocation6 + $0x1e48] sm:$0xff]  ;;  %v1092_v24 = vld [vmem:[#allocation6 + $0x1ec0] sm:$0xff] }
 0x209   :  { %4432 = vmatprep.subr.mxu1 %v1059_v25  ;;  %4398 = vmatpush3.msra.mxu0 %v1011_v26  ;;  %v1109_v23 = vld [vmem:[#allocation6 + $0x1f48] sm:$0xff]  ;;  %v1124_v25 = vld [vmem:[#allocation6 + $0x1fc0] sm:$0xff] }
 0x20a   :  { %4433 = vmatpush3.msra.mxu1 %v1043_v27  ;;  %4399 = vmatprep.subr.mxu0 %v1026_v28  ;;  %v1076_v26 = vld [vmem:[#allocation6 + $0x1e40] sm:$0xff]  ;;  %v1091_v28 = vld [vmem:[#allocation6 + $0x1eb8] sm:$0xff] }
 0x20b   :  { %4434 = vmatprep.subr.mxu1 %v1058_v29  ;;  %4400 = vmatpush3.msra.mxu0 %v1010_v30  ;;  %v1108_v27 = vld [vmem:[#allocation6 + $0x1f40] sm:$0xff]  ;;  %v1123_v29 = vld [vmem:[#allocation6 + $0x1fb8] sm:$0xff] }
 0x20c   :  { %4435 = vmatpush3.msra.mxu1 %v1042_v31  ;;  %4401 = vmatprep.subr.mxu0 %v1025_v32  ;;  %v1075_v30 = vld [vmem:[#allocation6 + $0x1e38] sm:$0xff]  ;;  %v1090_v32 = vld [vmem:[#allocation6 + $0x1eb0] sm:$0xff] }
 0x20d   :  { %4436 = vmatprep.subr.mxu1 %v1057_v33  ;;  %4402 = vmatpush3.msra.mxu0 %v1009_v34  ;;  %v1107_v31 = vld [vmem:[#allocation6 + $0x1f38] sm:$0xff]  ;;  %v1122_v33 = vld [vmem:[#allocation6 + $0x1fb0] sm:$0xff] }
 0x20e   :  { %4437 = vmatpush3.msra.mxu1 %v1041_v35  ;;  %4403 = vmatprep.subr.mxu0 %v1024_v36  ;;  %v1074_v34 = vld [vmem:[#allocation6 + $0x1e30] sm:$0xff]  ;;  %v1089_v36 = vld [vmem:[#allocation6 + $0x1ea8] sm:$0xff] }
 0x20f   :  { %4438 = vmatprep.subr.mxu1 %v1056_v37  ;;  %4404 = vmatpush3.msra.mxu0 %v1008_v38  ;;  %v1106_v35 = vld [vmem:[#allocation6 + $0x1f30] sm:$0xff]  ;;  %v1121_v37 = vld [vmem:[#allocation6 + $0x1fa8] sm:$0xff] }
 0x210   :  { %4439 = vmatpush3.msra.mxu1 %v1040_v39  ;;  %4405 = vmatprep.subr.mxu0 %v1023_v40  ;;  %v1073_v38 = vld [vmem:[#allocation6 + $0x1e28] sm:$0xff]  ;;  %v1088_v40 = vld [vmem:[#allocation6 + $0x1ea0] sm:$0xff] }
 0x211   :  { %4440 = vmatprep.subr.mxu1 %v1055_v41  ;;  %4406 = vmatpush3.msra.mxu0 %v1007_v42  ;;  %v1105_v39 = vld [vmem:[#allocation6 + $0x1f28] sm:$0xff]  ;;  %v1120_v41 = vld [vmem:[#allocation6 + $0x1fa0] sm:$0xff] }
 0x212   :  { %4441 = vmatpush3.msra.mxu1 %v1039_v43  ;;  %4407 = vmatprep.subr.mxu0 %v1022_v44  ;;  %v1072_v42 = vld [vmem:[#allocation6 + $0x1e20] sm:$0xff]  ;;  %v1087_v44 = vld [vmem:[#allocation6 + $0x1e98] sm:$0xff] }
 0x213   :  { %4442 = vmatprep.subr.mxu1 %v1054_v45  ;;  %4408 = vmatpush3.msra.mxu0 %v1006_v46  ;;  %v1104_v43 = vld [vmem:[#allocation6 + $0x1f20] sm:$0xff]  ;;  %v1119_v45 = vld [vmem:[#allocation6 + $0x1f98] sm:$0xff] }
 0x214   :  { %4443 = vmatpush3.msra.mxu1 %v1038_v47  ;;  %4409 = vmatprep.subr.mxu0 %v1021_v48  ;;  %v1071_v46 = vld [vmem:[#allocation6 + $0x1e18] sm:$0xff]  ;;  %v1086_v48 = vld [vmem:[#allocation6 + $0x1e90] sm:$0xff] }
 0x215   :  { %4444 = vmatprep.subr.mxu1 %v1053_v49  ;;  %4410 = vmatpush3.msra.mxu0 %v1005_v50  ;;  %v1103_v47 = vld [vmem:[#allocation6 + $0x1f18] sm:$0xff]  ;;  %v1118_v49 = vld [vmem:[#allocation6 + $0x1f90] sm:$0xff] }
 0x216   :  { %4445 = vmatpush3.msra.mxu1 %v1037_v51  ;;  %4411 = vmatprep.subr.mxu0 %v1020_v52  ;;  %v1070_v50 = vld [vmem:[#allocation6 + $0x1e10] sm:$0xff]  ;;  %v1085_v52 = vld [vmem:[#allocation6 + $0x1e88] sm:$0xff] }
 0x217   :  { %4446 = vmatprep.subr.mxu1 %v1052_v53  ;;  %4412 = vmatpush3.msra.mxu0 %v1004_v54  ;;  %v1102_v51 = vld [vmem:[#allocation6 + $0x1f10] sm:$0xff]  ;;  %v1117_v53 = vld [vmem:[#allocation6 + $0x1f88] sm:$0xff] }
 0x218   :  { %3156 = vmatprep.mubr.f32.mxu0 %v101_v55  ;;  %4447 = vmatpush3.msra.mxu1 %v1036_v56  ;;  %v1069_v54 = vld [vmem:[#allocation6 + $0x1e08] sm:$0xff]  ;;  %v1084_v56 = vld [vmem:[#allocation6 + $0x1e80] sm:$0xff] }
 0x219   :  { %3157 = vmatmul.mubr.f32.vlgmr.msra.gmra.mxu0 %v100_v57  ;;  %3226 = vmatprep.mubr.f32.mxu1 %v103_v58  ;;  %v1101_v55 = vld [vmem:[#allocation6 + $0x1f08] sm:$0xff]  ;;  %v1116_v57 = vld [vmem:[#allocation6 + $0x1f80] sm:$0xff] }
 0x21a   :  { %4451 = vmatprep.subr.mxu0 %v1099_v59  ;;  %4486 = vmatprep.subr.mxu1 %v1131_v60  ;;  %v1068_v58 = vld [vmem:[#allocation6 + $0x1e00] sm:$0xff]  ;;  %v105_v59 = vld [vmem:[#allocation3 + $0x1e8] sm:$0xff] }
 0x21b   :  { %3227 = vmatmul.mubr.f32.vlgmr.msra.gmra.mxu1 %v102_v61  ;;  %4452 = vmatpush3.msra.mxu0 %v1083_v62  ;;  %v1100_v60 = vld [vmem:[#allocation6 + $0x1f00] sm:$0xff]  ;;  %v107_v61 = vld [vmem:[#allocation3 + $0x1f8] sm:$0xff] }
 0x21c   :  { %4487 = vmatpush3.msra.mxu1 %v1115_v63  ;;  %4453 = vmatprep.subr.mxu0 %v1098_v0  ;;  %v104_v62 = vld [vmem:[#allocation3 + $0x1e0] sm:$0xff]  ;;  %v106_v63 = vld [vmem:[#allocation3 + $0x1f0] sm:$0xff]  ;;  %v3433_v0 = vpop.f32.mrf.mxu0 }
 0x21d   :  { %4488 = vmatprep.subr.mxu1 %v1130_v1  ;;  %4454 = vmatpush3.msra.mxu0 %v1082_v2  ;;  %v3468_v1 = vpop.f32.mrf.mxu1 }
 0x21e   :  { %4489 = vmatpush3.msra.mxu1 %v1114_v3  ;;  %4455 = vmatprep.subr.mxu0 %v1097_v4  ;;  %v3434_v2 = vpop.f32.mrf.mxu0 }
 0x21f   :  { %4490 = vmatprep.subr.mxu1 %v1129_v5  ;;  %4456 = vmatpush3.msra.mxu0 %v1081_v6  ;;  %v3469_v4 = vpop.f32.mrf.mxu1 }
 0x220   :  { %4491 = vmatpush3.msra.mxu1 %v1113_v7  ;;  %4457 = vmatprep.subr.mxu0 %v1096_v8  ;;  %v3503_v3 = vpop.f32.mrf.mxu0  ;;  %v3435_v7 = vadd.f32 %v3434_v2, %v3433_v0  ;;  %v3470_v8 = vadd.f32 %v3469_v4, %v3468_v1 }
 0x221   :  { %4492 = vmatprep.subr.mxu1 %v1128_v9  ;;  %4458 = vmatpush3.msra.mxu0 %v1080_v10  ;;  %v3538_v5 = vpop.f32.mrf.mxu1 }
 0x222   :  { %4493 = vmatpush3.msra.mxu1 %v1112_v11  ;;  %4459 = vmatprep.subr.mxu0 %v1095_v12  ;;  %v3504_v6 = vpop.f32.mrf.mxu0  ;;  %v1269_v12 = vadd.f32 %v3470_v8, %v3435_v7 }
 0x223   :  { %4494 = vmatprep.subr.mxu1 %v1127_v13  ;;  %4460 = vmatpush3.msra.mxu0 %v1079_v14  ;;  %v3505_v10 = vadd.f32 %v3504_v6, %v3503_v3  ;;  %v3539_v11 = vpop.f32.mrf.mxu1 }
 0x224   :  { %4495 = vmatpush3.msra.mxu1 %v1111_v15  ;;  %4461 = vmatprep.subr.mxu0 %v1094_v16  ;;  %v3573_v9 = vpop.f32.mrf.mxu0  ;;  %v3540_v16 = vadd.f32 %v3539_v11, %v3538_v5 }
 0x225   :  { %4496 = vmatprep.subr.mxu1 %v1126_v17  ;;  %4462 = vmatpush3.msra.mxu0 %v1078_v18  ;;  %v3608_v13 = vpop.f32.mrf.mxu1  ;;  %v1339_v15 = vadd.f32 %v3505_v10, %v1269_v12 }
 0x226   :  { %4497 = vmatpush3.msra.mxu1 %v1110_v19  ;;  %4463 = vmatprep.subr.mxu0 %v1093_v20  ;;  %v3574_v14 = vpop.f32.mrf.mxu0 }
 0x227   :  { %4498 = vmatprep.subr.mxu1 %v1125_v21  ;;  %4464 = vmatpush3.msra.mxu0 %v1077_v22  ;;  %v3575_v18 = vadd.f32 %v3574_v14, %v3573_v9  ;;  %v3609_v19 = vpop.f32.mrf.mxu1  ;;  %v1409_v20 = vadd.f32 %v3540_v16, %v1339_v15 }
 0x228   :  { %4499 = vmatpush3.msra.mxu1 %v1109_v23  ;;  %4465 = vmatprep.subr.mxu0 %v1092_v24  ;;  %v3643_v17 = vpop.f32.mrf.mxu0  ;;  %v3610_v24 = vadd.f32 %v3609_v19, %v3608_v13 }
 0x229   :  { %4500 = vmatprep.subr.mxu1 %v1124_v25  ;;  %4466 = vmatpush3.msra.mxu0 %v1076_v26  ;;  %v3678_v21 = vpop.f32.mrf.mxu1  ;;  %v1479_v23 = vadd.f32 %v3575_v18, %v1409_v20 }
 0x22a   :  { %4501 = vmatpush3.msra.mxu1 %v1108_v27  ;;  %4467 = vmatprep.subr.mxu0 %v1091_v28  ;;  %v3644_v22 = vpop.f32.mrf.mxu0 }
 0x22b   :  { %4502 = vmatprep.subr.mxu1 %v1123_v29  ;;  %4468 = vmatpush3.msra.mxu0 %v1075_v30  ;;  %v3645_v26 = vadd.f32 %v3644_v22, %v3643_v17  ;;  %v3679_v27 = vpop.f32.mrf.mxu1  ;;  %v1549_v28 = vadd.f32 %v3610_v24, %v1479_v23 }
 0x22c   :  { %4503 = vmatpush3.msra.mxu1 %v1107_v31  ;;  %4469 = vmatprep.subr.mxu0 %v1090_v32  ;;  %v3713_v25 = vpop.f32.mrf.mxu0  ;;  %v3680_v32 = vadd.f32 %v3679_v27, %v3678_v21 }
 0x22d   :  { %4504 = vmatprep.subr.mxu1 %v1122_v33  ;;  %4470 = vmatpush3.msra.mxu0 %v1074_v34  ;;  %v3748_v29 = vpop.f32.mrf.mxu1  ;;  %v1619_v31 = vadd.f32 %v3645_v26, %v1549_v28 }
 0x22e   :  { %4505 = vmatpush3.msra.mxu1 %v1106_v35  ;;  %4471 = vmatprep.subr.mxu0 %v1089_v36  ;;  %v3714_v30 = vpop.f32.mrf.mxu0 }
 0x22f   :  { %4506 = vmatprep.subr.mxu1 %v1121_v37  ;;  %4472 = vmatpush3.msra.mxu0 %v1073_v38  ;;  %v3715_v34 = vadd.f32 %v3714_v30, %v3713_v25  ;;  %v3749_v35 = vpop.f32.mrf.mxu1  ;;  %v1689_v36 = vadd.f32 %v3680_v32, %v1619_v31 }
 0x230   :  { %4507 = vmatpush3.msra.mxu1 %v1105_v39  ;;  %4473 = vmatprep.subr.mxu0 %v1088_v40  ;;  %v3783_v33 = vpop.f32.mrf.mxu0  ;;  %v3750_v40 = vadd.f32 %v3749_v35, %v3748_v29 }
 0x231   :  { %4508 = vmatprep.subr.mxu1 %v1120_v41  ;;  %4474 = vmatpush3.msra.mxu0 %v1072_v42  ;;  %v3818_v37 = vpop.f32.mrf.mxu1  ;;  %v1759_v39 = vadd.f32 %v3715_v34, %v1689_v36 }
 0x232   :  { %4509 = vmatpush3.msra.mxu1 %v1104_v43  ;;  %4475 = vmatprep.subr.mxu0 %v1087_v44  ;;  %v3784_v38 = vpop.f32.mrf.mxu0 }
 0x233   :  { %4510 = vmatprep.subr.mxu1 %v1119_v45  ;;  %4476 = vmatpush3.msra.mxu0 %v1071_v46  ;;  %v3785_v42 = vadd.f32 %v3784_v38, %v3783_v33  ;;  %v3819_v43 = vpop.f32.mrf.mxu1  ;;  %v1829_v44 = vadd.f32 %v3750_v40, %v1759_v39 }
 0x234   :  { %4511 = vmatpush3.msra.mxu1 %v1103_v47  ;;  %4477 = vmatprep.subr.mxu0 %v1086_v48  ;;  %v3853_v41 = vpop.f32.mrf.mxu0  ;;  %v3820_v48 = vadd.f32 %v3819_v43, %v3818_v37 }
 0x235   :  { %4512 = vmatprep.subr.mxu1 %v1118_v49  ;;  %4478 = vmatpush3.msra.mxu0 %v1070_v50  ;;  %v3888_v45 = vpop.f32.mrf.mxu1  ;;  %v1899_v47 = vadd.f32 %v3785_v42, %v1829_v44 }
 0x236   :  { %4513 = vmatpush3.msra.mxu1 %v1102_v51  ;;  %4479 = vmatprep.subr.mxu0 %v1085_v52  ;;  %v3854_v46 = vpop.f32.mrf.mxu0 }
 0x237   :  { %4514 = vmatprep.subr.mxu1 %v1117_v53  ;;  %4480 = vmatpush3.msra.mxu0 %v1069_v54  ;;  %v3855_v50 = vadd.f32 %v3854_v46, %v3853_v41  ;;  %v3889_v51 = vpop.f32.mrf.mxu1  ;;  %v1969_v52 = vadd.f32 %v3820_v48, %v1899_v47 }
 0x238   :  { %4515 = vmatpush3.msra.mxu1 %v1101_v55  ;;  %4481 = vmatprep.subr.mxu0 %v1084_v56  ;;  %v3923_v49 = vpop.f32.mrf.mxu0  ;;  %v3890_v56 = vadd.f32 %v3889_v51, %v3888_v45 }
 0x239   :  { %4516 = vmatprep.subr.mxu1 %v1116_v57  ;;  %4482 = vmatpush3.msra.mxu0 %v1068_v58  ;;  %v3958_v53 = vpop.f32.mrf.mxu1  ;;  %v2039_v55 = vadd.f32 %v3855_v50, %v1969_v52 }
 0x23a   :  { %3296 = vmatprep.mubr.f32.mxu0 %v105_v59  ;;  %4517 = vmatpush3.msra.mxu1 %v1100_v60  ;;  %v3924_v54 = vpop.f32.mrf.mxu0 }
 0x23b   :  { %3366 = vmatprep.mubr.f32.mxu1 %v107_v61  ;;  %3297 = vmatmul.mubr.f32.vlgmr.msra.gmra.mxu0 %v104_v62  ;;  %v3925_v58 = vadd.f32 %v3924_v54, %v3923_v49  ;;  %v3959_v59 = vpop.f32.mrf.mxu1  ;;  %v2109_v60 = vadd.f32 %v3890_v56, %v2039_v55 }
 0x23c   :  { %3367 = vmatmul.mubr.f32.vlgmr.msra.gmra.mxu1 %v106_v63  ;;  %v3993_v57 = vpop.f32.mrf.mxu0  ;;  %v3960_v0 = vadd.f32 %v3959_v59, %v3958_v53 }
 0x23d   :  { %v4028_v61 = vpop.f32.mrf.mxu1  ;;  %v2179_v63 = vadd.f32 %v3925_v58, %v2109_v60 }
 0x23e   :  { %v3994_v62 = vpop.f32.mrf.mxu0 }
 0x23f   :  { %v3995_v2 = vadd.f32 %v3994_v62, %v3993_v57  ;;  %v4029_v3 = vpop.f32.mrf.mxu1  ;;  %v2249_v4 = vadd.f32 %v3960_v0, %v2179_v63 }
 0x240   :  { %v4063_v1 = vpop.f32.mrf.mxu0  ;;  %v4030_v8 = vadd.f32 %v4029_v3, %v4028_v61 }
 0x241   :  { %v4098_v5 = vpop.f32.mrf.mxu1  ;;  %v2319_v7 = vadd.f32 %v3995_v2, %v2249_v4 }
 0x242   :  { %v4064_v6 = vpop.f32.mrf.mxu0 }
 0x243   :  { %v4065_v10 = vadd.f32 %v4064_v6, %v4063_v1  ;;  %v4099_v11 = vpop.f32.mrf.mxu1  ;;  %v2389_v12 = vadd.f32 %v4030_v8, %v2319_v7 }
 0x244   :  { %v4100_v16 = vadd.f32 %v4099_v11, %v4098_v5 }
 0x245   :  { %v2459_v15 = vadd.f32 %v4065_v10, %v2389_v12 }
 0x247   :  { %v2529_v20 = vadd.f32 %v4100_v16, %v2459_v15 }
 0x251   :  { %v4133_v9 = vpop.f32.mrf.mxu0 }
 0x253   :  { %v4168_v13 = vpop.f32.mrf.mxu1  ;;  %v4134_v14 = vpop.f32.mrf.mxu0 }
 0x254   :  { %v4135_v18 = vadd.f32 %v4134_v14, %v4133_v9 }
 0x255   :  { %v4169_v19 = vpop.f32.mrf.mxu1 }
 0x256   :  { %v2599_v23 = vadd.f32 %v4135_v18, %v2529_v20  ;;  %v4170_v24 = vadd.f32 %v4169_v19, %v4168_v13 }
 0x258   :  { %v2669_v28 = vadd.f32 %v4170_v24, %v2599_v23 }
 0x273   :  { %v4203_v17 = vpop.f32.mrf.mxu0 }
 0x275   :  { %v4238_v21 = vpop.f32.mrf.mxu1  ;;  %v4204_v22 = vpop.f32.mrf.mxu0 }
 0x276   :  { %v4205_v26 = vadd.f32 %v4204_v22, %v4203_v17 }
 0x277   :  { %v4239_v27 = vpop.f32.mrf.mxu1 }
 0x278   :  { %v2739_v31 = vadd.f32 %v4205_v26, %v2669_v28  ;;  %v4240_v32 = vadd.f32 %v4239_v27, %v4238_v21 }
 0x27a   :  { %v2809_v36 = vadd.f32 %v4240_v32, %v2739_v31 }
 0x295   :  { %v4273_v25 = vpop.f32.mrf.mxu0 }
 0x297   :  { %v4308_v29 = vpop.f32.mrf.mxu1  ;;  %v4274_v30 = vpop.f32.mrf.mxu0 }
 0x298   :  { %v4275_v34 = vadd.f32 %v4274_v30, %v4273_v25 }
 0x299   :  { %v4309_v35 = vpop.f32.mrf.mxu1 }
 0x29a   :  { %v2879_v39 = vadd.f32 %v4275_v34, %v2809_v36  ;;  %v4310_v40 = vadd.f32 %v4309_v35, %v4308_v29 }
 0x29c   :  { %v2949_v44 = vadd.f32 %v4310_v40, %v2879_v39 }
 0x2b7   :  { %v4343_v33 = vpop.f32.mrf.mxu0 }
 0x2b9   :  { %v4378_v37 = vpop.f32.mrf.mxu1  ;;  %v4344_v38 = vpop.f32.mrf.mxu0 }
 0x2ba   :  { %v4345_v42 = vadd.f32 %v4344_v38, %v4343_v33 }
 0x2bb   :  { %v4379_v43 = vpop.f32.mrf.mxu1 }
 0x2bc   :  { %v3019_v47 = vadd.f32 %v4345_v42, %v2949_v44  ;;  %v4380_v48 = vadd.f32 %v4379_v43, %v4378_v37 }
 0x2be   :  { %v3089_v51 = vadd.f32 %v4380_v48, %v3019_v47 }
 0x2d9   :  { %v4413_v41 = vpop.f32.mrf.mxu0 }
 0x2db   :  { %v4448_v45 = vpop.f32.mrf.mxu1  ;;  %v4414_v46 = vpop.f32.mrf.mxu0 }
 0x2dc   :  { %v4415_v49 = vadd.f32 %v4414_v46, %v4413_v41 }
 0x2dd   :  { %v4449_v50 = vpop.f32.mrf.mxu1 }
 0x2de   :  { %v3159_v52 = vadd.f32 %v4415_v49, %v3089_v51  ;;  %v4450_v53 = vadd.f32 %v4449_v50, %v4448_v45 }
 0x2e0   :  { %v3229_v58 = vadd.f32 %v4450_v53, %v3159_v52 }
 0x2fb   :  { %v4483_v54 = vpop.f32.mrf.mxu0 }
 0x2fc   :  { %v4518_v55 = vpop.f32.mrf.mxu1 }
 0x2fd   :  { %v4484_v56 = vpop.f32.mrf.mxu0 }
 0x2fe   :  { %v4519_v57 = vpop.f32.mrf.mxu1  ;;  %v4485_v59 = vadd.f32 %v4484_v56, %v4483_v54 }
 0x2ff   :  { %v4520_v61 = vadd.f32 %v4519_v57, %v4518_v55 }
 0x300   :  { %v3299_v60 = vadd.f32 %v4485_v59, %v3229_v58 }
 0x302   :  { %v3369_v62 = vadd.f32 %v4520_v61, %v3299_v60 }
 0x304   :  { %v3378_v63 = vmul.f32 %v3369_v62, %v3369_v62 }
 0x306   :  { %3379 = vadd.xlane.f32.xlu0 %v3378_v63 }
 0x38f   :  { %v3380_v0 = vpop.xlane.xlu0 %3379 }
 0x390   :  { %v3381_v1 = vmax.f32 %v3380_v0, 1e-24 }
 0x392   :  { %4526 = vrsqrt.f32 %v3381_v1 }
 0x39f   :  { %v4527_v2 = vpop.eup %4526 }
 0x3a0   :  { %v3383_v3 = vmul.f32 %v4527_v2, %v3369_v62 }
 0x3a2   :  { %3384 = vst [vmem:[#allocation8] sm:$0xff] %v3383_v3 }
 0x3a3   :  { %4579 = shalt.err (!%p4576_p0)
}
 0x3a4   :  { %3394 = dma.vmem_to_hbm [thread:$0]  %s3392_s1, 128, %s4625_s2, [#allocation5]  }
 0x3a5   :  { %4592 = dma.done.wait [#allocation5], 128  }
 0x3a6   :  { %4593 = vsyncadd [#allocation5], 4294967168 }
 0x3a7   :  { %3398 = vsyncpa [#allocation4], 1 }
 0x3a8   :  { %3399 = vsyncpa [#allocation7], 1 }
 0x3a9   :  { %3400 = vsyncpa [#allocation5], 1 }

</bundles_post_ra>
